<compile_context>
chip_gen: v6e
topology: v6e:2x2x1
jax: 0.10.0
libtpu: 0.0.40
codegen_flags: <defaults>
</compile_context>

<pallas_src>
import functools

import numpy as np
import jax
import jax.numpy as jnp
from jax.experimental import pallas as pl
from jax.experimental.pallas import tpu as pltpu


def _round_up(x, m):
    return ((x + m - 1) // m) * m


# ------------------------------------------------------------------------------------
# Fused forward kernel: 4 MXU matmuls + 1 tiny lane-merge per batch tile
# ------------------------------------------------------------------------------------
def _fused_actor_critic_kernel(
        x_ref,      # (NPOS*TB, KP)      bf16  host-built conv1 patches, rows (ij, b)
        w1_ref,     # (KP, 9*F1)         bf16  block-diag conv1 weights (one block/tap)
        b1_ref,     # (1, 9*F1)          f32   conv1 bias tiled over the 9 taps
        w2_ref,     # (9*F1, F2)         bf16  conv2 weights, taps merged into K
        b2_ref,     # (1, F2)            f32
        wfc_ref,    # (NPOS*F2, NFC)     bf16  fc weights in (i, j, channel) order
        bfc_ref,    # (1, NFC)           f32
        wh_ref,     # (NFC, HEAD_N)      bf16  [actor | critic | zero-pad] heads
        bh_ref,     # (1, HEAD_N)        f32
        out_ref,    # (TB, HEAD_N)       f32
        h2_scr,     # (NPOS*TB, F2)      bf16  scratch: conv2 output, rows (ij, b)
        h2m_scr,    # (TB, NPOS*F2)      bf16  scratch: lane-dense fc input
        *, TB, NPOS, F2):
    # ---- conv1 (+bias, ReLU) for all 9 conv2 taps of the 36 sampled positions:
    #      ONE block-diagonal matmul, K = 324.  Output == conv2 im2col patch. --------
    p2 = jnp.dot(x_ref[...], w1_ref[...], preferred_element_type=jnp.float32)
    p2 = jnp.maximum(p2 + b1_ref[...], 0.0).astype(jnp.bfloat16)      # (NPOS*TB, 9*F1)

    # ---- conv2 (+bias, ReLU): taps already merged into K -> ONE matmul, K = 144 ----
    h2 = jnp.dot(p2, w2_ref[...], preferred_element_type=jnp.float32)  # (NPOS*TB, F2)
    h2 = jnp.maximum(h2 + b2_ref[...], 0.0).astype(jnp.bfloat16)
    h2_scr[...] = h2

    # ---- merge (ij-major rows, F2 lanes) -> lane-dense (TB, NPOS*F2) fc input.
    #      36 aligned (TB, F2) copies: contiguous reads, static lane-block writes. ----
    for ij in range(NPOS):
        h2m_scr[:, ij * F2:(ij + 1) * F2] = h2_scr[ij * TB:(ij + 1) * TB, :]

    # ---- fc (+bias, ReLU): ONE matmul, K = NPOS*F2 = 576 ----------------------------
    h3 = jnp.dot(h2m_scr[...], wfc_ref[...], preferred_element_type=jnp.float32)
    h3 = jnp.maximum(h3 + bfc_ref[...], 0.0).astype(jnp.bfloat16)      # (TB, NFC)

    # ---- fused actor+critic heads, lane-dense 128-wide output -----------------------
    out_ref[...] = jnp.dot(h3, wh_ref[...],
                           preferred_element_type=jnp.float32) + bh_ref[...]


# ------------------------------------------------------------------------------------
# Host-side weight preprocessing (done once, outside the forward path)
# ------------------------------------------------------------------------------------
def prepare_params(params, in_shape, n_actions):
    C, H, W = in_shape
    OH1, OW1 = H - 2, W - 2                                # conv1: k=3, s=1
    OH2, OW2 = (OH1 - 3) // 2 + 1, (OW1 - 3) // 2 + 1      # conv2: k=3, s=2
    F1 = params["conv1_w"].shape[0]
    F2 = params["conv2_w"].shape[0]
    NFC = params["fc_w"].shape[0]
    NPOS = OH2 * OW2                                       # sampled conv2 positions
    KC = 9 * C                                             # conv1 patch width per tap
    KP = 9 * KC                                            # full per-position patch width
    HEAD_N = _round_up(n_actions + 1, 128)

    # conv1 -> (r, s, c)-ordered (KC, F1) matrix, replicated block-diagonally over the
    # 9 conv2 taps so conv1 runs as one K=KP matmul whose output is the conv2 patch.
    w1 = jnp.transpose(params["conv1_w"], (2, 3, 1, 0)).reshape(KC, F1).astype(jnp.float32)
    w1bd = jnp.kron(jnp.eye(9, dtype=jnp.float32), w1).astype(jnp.bfloat16)   # (KP, 9*F1)
    b1 = jnp.tile(params["conv1_b"].astype(jnp.float32), 9).reshape(1, 9 * F1)

    # conv2 with the 9 taps merged into K (row order (kh, kw, f1)).
    w2 = jnp.transpose(params["conv2_w"], (2, 3, 1, 0)).reshape(9 * F1, F2).astype(jnp.bfloat16)
    b2 = params["conv2_b"].reshape(1, F2).astype(jnp.float32)

    # fc weights re-ordered from torch's (channel, i, j) flatten to the kernel's
    # (i, j, channel) order -> one K = NPOS*F2 matmul.
    wfc = params["fc_w"].reshape(NFC, F2, OH2, OW2)
    wfc = jnp.transpose(wfc, (2, 3, 1, 0)).reshape(NPOS * F2, NFC).astype(jnp.bfloat16)
    bfc = params["fc_b"].reshape(1, NFC).astype(jnp.float32)

    # actor + critic heads fused and zero-padded to a lane-dense width.
    head_w = jnp.concatenate([params["actor_w"], params["critic_w"]], axis=0)  # (n_actions+1, NFC)
    head_b = jnp.concatenate([params["actor_b"], params["critic_b"]], axis=0)
    wh = jnp.zeros((NFC, HEAD_N), jnp.float32).at[:, :n_actions + 1].set(head_w.T)
    wh = wh.astype(jnp.bfloat16)
    bh = jnp.zeros((1, HEAD_N), jnp.float32).at[0, :n_actions + 1].set(head_b)

    weights = dict(w1bd=w1bd, b1=b1, w2=w2, b2=b2, wfc=wfc, bfc=bfc, wh=wh, bh=bh)
    meta = dict(C=C, H=H, W=W, OH1=OH1, OW1=OW1, OH2=OH2, OW2=OW2,
                F1=F1, F2=F2, NFC=NFC, NPOS=NPOS, KP=KP,
                HEAD_N=HEAD_N, n_actions=n_actions)
    return weights, meta


# ------------------------------------------------------------------------------------
# Forward pass wrapper (only input-side layout glue lives in XLA)
# ------------------------------------------------------------------------------------
def actor_critic_forward(x_nchw, weights, meta, *, block_b=64):
    OH1, OW1 = meta["OH1"], meta["OW1"]
    OH2, OW2 = meta["OH2"], meta["OW2"]
    F2, NPOS, KP = meta["F2"], meta["NPOS"], meta["KP"]
    HEAD_N, n_actions = meta["HEAD_N"], meta["n_actions"]

    B = x_nchw.shape[0]
    block_b = max(16, _round_up(block_b, 16))     # bf16 sublane tile = 16
    B16 = _round_up(B, 16)
    TB = min(block_b, B16)
    if TB == B16 and B16 >= 32:                   # >=2 tiles so both v7x TCs get work
        TB = _round_up(B16 // 2, 16)
    B_pad = _round_up(B16, TB)
    NB = B_pad // TB
    assert TB % 16 == 0 and (NPOS * TB) % 16 == 0

    # ---- host-side im2col: conv1 patches for the 9 taps of each of the 36 sampled
    #      conv2 positions.  Only valid windows are gathered (no edge garbage). -------
    xh = jnp.transpose(x_nchw, (0, 2, 3, 1))                                   # (B,H,W,C)
    p1 = jnp.concatenate(
        [xh[:, r:r + OH1, s:s + OW1, :] for r in range(3) for s in range(3)],
        axis=-1)                                                               # (B,OH1,OW1,9C)
    taps = [p1[:, kh:kh + 2 * OH2 - 1:2, kw:kw + 2 * OW2 - 1:2, :]
            for kh in range(3) for kw in range(3)]                             # 9 x (B,OH2,OW2,9C)
    xp = jnp.stack(taps, axis=3).reshape(B, NPOS, KP)                          # (B,36,324)
    xp = jnp.pad(xp, ((0, B_pad - B), (0, 0), (0, 0)))
    # rows within each batch tile ordered (ij, b_local) so the in-kernel merge reads
    # are contiguous and aligned.
    xp = xp.reshape(NB, TB, NPOS, KP).transpose(0, 2, 1, 3).reshape(NB * NPOS * TB, KP)
    xp = xp.astype(jnp.bfloat16)

    kernel = functools.partial(_fused_actor_critic_kernel, TB=TB, NPOS=NPOS, F2=F2)

    def _const2d(a):
        return pl.BlockSpec(a.shape, lambda i: (0, 0))

    w = weights
    out = pl.pallas_call(
        kernel,
        out_shape=jax.ShapeDtypeStruct((B_pad, HEAD_N), jnp.float32),
        grid=(NB,),
        in_specs=[
            pl.BlockSpec((NPOS * TB, KP), lambda i: (i, 0)),
            _const2d(w["w1bd"]), _const2d(w["b1"]),
            _const2d(w["w2"]), _const2d(w["b2"]),
            _const2d(w["wfc"]), _const2d(w["bfc"]),
            _const2d(w["wh"]), _const2d(w["bh"]),
        ],
        out_specs=pl.BlockSpec((TB, HEAD_N), lambda i: (i, 0)),
        scratch_shapes=[
            pltpu.VMEM((NPOS * TB, F2), jnp.bfloat16),
            pltpu.VMEM((TB, NPOS * F2), jnp.bfloat16),
        ],
        compiler_params=pltpu.CompilerParams(
            dimension_semantics=("parallel",),
            vmem_limit_bytes=32 * 1024 * 1024),
    )(xp, w["w1bd"], w["b1"], w["w2"], w["b2"], w["wfc"], w["bfc"], w["wh"], w["bh"])

    logit = out[:B, :n_actions]
    value = out[:B, n_actions:n_actions + 1]
    return logit, value


# ------------------------------------------------------------------------------------
# Pure-JAX reference (correctness check only)
# ------------------------------------------------------------------------------------
def reference_forward(x_nchw, params):
    dn = ("NCHW", "OIHW", "NCHW")
    h = jax.lax.conv_general_dilated(x_nchw, params["conv1_w"], (1, 1), "VALID",
                                     dimension_numbers=dn)
    h = jax.nn.relu(h + params["conv1_b"][None, :, None, None])
    h = jax.lax.conv_general_dilated(h, params["conv2_w"], (2, 2), "VALID",
                                     dimension_numbers=dn)
    h = jax.nn.relu(h + params["conv2_b"][None, :, None, None])
    h = h.reshape(h.shape[0], -1)
    h = jax.nn.relu(h @ params["fc_w"].T + params["fc_b"])
    logit = h @ params["actor_w"].T + params["actor_b"]
    value = h @ params["critic_w"].T + params["critic_b"]
    return logit, value


# ------------------------------------------------------------------------------------
# Deterministic parameter construction (shapes from ActorCritic.__init__)
# ------------------------------------------------------------------------------------
def make_params(key, in_shape, n_actions):
    c_in, H, W = in_shape
    oh1, ow1 = H - 2, W - 2
    oh2, ow2 = (oh1 - 3) // 2 + 1, (ow1 - 3) // 2 + 1
    feat_size = 16 * oh2 * ow2                    # == feature_size() in the torch module

    ks = jax.random.split(key, 10)
    s = 0.05
    return {
        "conv1_w": jax.random.normal(ks[0], (16, c_in, 3, 3), jnp.float32) * s,
        "conv1_b": jax.random.normal(ks[1], (16,), jnp.float32) * s,
        "conv2_w": jax.random.normal(ks[2], (16, 16, 3, 3), jnp.float32) * s,
        "conv2_b": jax.random.normal(ks[3], (16,), jnp.float32) * s,
        "fc_w": jax.random.normal(ks[4], (256, feat_size), jnp.float32) * s,
        "fc_b": jax.random.normal(ks[5], (256,), jnp.float32) * s,
        "actor_w": jax.random.normal(ks[6], (n_actions, 256), jnp.float32) * s,
        "actor_b": jax.random.normal(ks[7], (n_actions,), jnp.float32) * s,
        "critic_w": jax.random.normal(ks[8], (1, 256), jnp.float32) * s,
        "critic_b": jax.random.normal(ks[9], (1,), jnp.float32) * s,
    }


if __name__ == "__main__":
    in_shape = (4, 16, 16)   # (C, H, W) like the torch module's in_shape
    n_actions = 6
    batch = 2

    root = jax.random.PRNGKey(0)
    kx, kp = jax.random.split(root)
    x = jax.random.normal(kx, (batch,) + in_shape, jnp.float32)   # NCHW input
    params = make_params(kp, in_shape, n_actions)

    weights, meta = prepare_params(params, in_shape, n_actions)
    fwd = jax.jit(lambda xx: actor_critic_forward(xx, weights, meta))

    logit, value = fwd(x)
    logit = jax.block_until_ready(logit)
    value = jax.block_until_ready(value)

    # shapes match torch forward -> (logit (B, n_actions), value (B, 1))
    assert logit.shape == (batch, n_actions)
    assert value.shape == (batch, 1)

    logit_ref, value_ref = reference_forward(x, params)
    np.testing.assert_allclose(np.asarray(logit), np.asarray(logit_ref), rtol=2e-2, atol=2e-2)
    np.testing.assert_allclose(np.asarray(value), np.asarray(value_ref), rtol=2e-2, atol=2e-2)

    # TODO(synk): act()/evaluate_actions() (softmax sampling, Categorical, entropy) are
    # RL utilities outside the requested forward pass and are not implemented here.

    print("KERNEL_OK")
</pallas_src>

<mosaic_0001>
module attributes {stable_mosaic.version = 11 : i64} {
  func.func @_fused_actor_critic_kernel(%arg0: i32, %arg1: memref<576x324xbf16, #tpu.memory_space<vmem>>, %arg2: memref<324x144xbf16, #tpu.memory_space<vmem>>, %arg3: memref<1x144xf32, #tpu.memory_space<vmem>>, %arg4: memref<144x16xbf16, #tpu.memory_space<vmem>>, %arg5: memref<1x16xf32, #tpu.memory_space<vmem>>, %arg6: memref<576x256xbf16, #tpu.memory_space<vmem>>, %arg7: memref<1x256xf32, #tpu.memory_space<vmem>>, %arg8: memref<256x128xbf16, #tpu.memory_space<vmem>>, %arg9: memref<1x128xf32, #tpu.memory_space<vmem>>, %arg10: memref<16x128xf32, #tpu.memory_space<vmem>>, %arg11: memref<576x16xbf16, #tpu.memory_space<vmem>>, %arg12: memref<16x576xbf16, #tpu.memory_space<vmem>>) attributes {dimension_semantics = [#tpu.dimension_semantics<parallel>], iteration_bounds = array<i64: 1>, scalar_prefetch = 0 : i64, scratch_operands = 2 : i64, tpu.core_type = #tpu.core_type<tc>, window_params = [{transform_indices = @transform_0, window_bounds = array<i64: 576, 324>}, {pipeline_mode = #tpu.pipeline_mode<synchronous>, transform_indices = @transform_1, window_bounds = array<i64: 324, 144>}, {pipeline_mode = #tpu.pipeline_mode<synchronous>, transform_indices = @transform_2, window_bounds = array<i64: 1, 144>}, {pipeline_mode = #tpu.pipeline_mode<synchronous>, transform_indices = @transform_3, window_bounds = array<i64: 144, 16>}, {pipeline_mode = #tpu.pipeline_mode<synchronous>, transform_indices = @transform_4, window_bounds = array<i64: 1, 16>}, {pipeline_mode = #tpu.pipeline_mode<synchronous>, transform_indices = @transform_5, window_bounds = array<i64: 576, 256>}, {pipeline_mode = #tpu.pipeline_mode<synchronous>, transform_indices = @transform_6, window_bounds = array<i64: 1, 256>}, {pipeline_mode = #tpu.pipeline_mode<synchronous>, transform_indices = @transform_7, window_bounds = array<i64: 256, 128>}, {pipeline_mode = #tpu.pipeline_mode<synchronous>, transform_indices = @transform_8, window_bounds = array<i64: 1, 128>}, {transform_indices = @transform_9, window_bounds = array<i64: 16, 128>}]} {
    %c0 = arith.constant 0 : index
    %c0_0 = arith.constant 0 : index
    %0 = vector.load %arg1[%c0, %c0_0] : memref<576x324xbf16, #tpu.memory_space<vmem>>, vector<576x324xbf16>
    %c0_1 = arith.constant 0 : index
    %c0_2 = arith.constant 0 : index
    %1 = vector.load %arg2[%c0_1, %c0_2] : memref<324x144xbf16, #tpu.memory_space<vmem>>, vector<324x144xbf16>
    %cst = arith.constant dense<0.000000e+00> : vector<576x144xf32>
    %2 = tpu.matmul %0, %1, %cst {dimension_numbers = #tpu.dot_dimension_numbers<[1], [0], [0], [1], [0, 0, 1, 1], [], []>} : vector<576x324xbf16>, vector<324x144xbf16>, vector<576x144xf32> -> vector<576x144xf32>
    %c0_3 = arith.constant 0 : index
    %c0_4 = arith.constant 0 : index
    %3 = vector.load %arg3[%c0_3, %c0_4] : memref<1x144xf32, #tpu.memory_space<vmem>>, vector<1x144xf32>
    %4 = vector.broadcast %3 : vector<1x144xf32> to vector<576x144xf32>
    %5 = arith.addf %2, %4 : vector<576x144xf32>
    %cst_5 = arith.constant 0.000000e+00 : f32
    %6 = vector.broadcast %cst_5 : f32 to vector<576x144xf32>
    %7 = arith.maximumf %5, %6 : vector<576x144xf32>
    %8 = arith.truncf %7 : vector<576x144xf32> to vector<576x144xbf16>
    %c0_6 = arith.constant 0 : index
    %c0_7 = arith.constant 0 : index
    %9 = vector.load %arg4[%c0_6, %c0_7] : memref<144x16xbf16, #tpu.memory_space<vmem>>, vector<144x16xbf16>
    %cst_8 = arith.constant dense<0.000000e+00> : vector<576x16xf32>
    %10 = tpu.matmul %8, %9, %cst_8 {dimension_numbers = #tpu.dot_dimension_numbers<[1], [0], [0], [1], [0, 0, 1, 1], [], []>} : vector<576x144xbf16>, vector<144x16xbf16>, vector<576x16xf32> -> vector<576x16xf32>
    %c0_9 = arith.constant 0 : index
    %c0_10 = arith.constant 0 : index
    %11 = vector.load %arg5[%c0_9, %c0_10] : memref<1x16xf32, #tpu.memory_space<vmem>>, vector<1x16xf32>
    %12 = vector.broadcast %11 : vector<1x16xf32> to vector<576x16xf32>
    %13 = arith.addf %10, %12 : vector<576x16xf32>
    %cst_11 = arith.constant 0.000000e+00 : f32
    %14 = vector.broadcast %cst_11 : f32 to vector<576x16xf32>
    %15 = arith.maximumf %13, %14 : vector<576x16xf32>
    %16 = arith.truncf %15 : vector<576x16xf32> to vector<576x16xbf16>
    %c0_12 = arith.constant 0 : index
    %c0_13 = arith.constant 0 : index
    %17 = vector.load %arg11[%c0_12, %c0_13] : memref<576x16xbf16, #tpu.memory_space<vmem>>, vector<576x16xbf16>
    tpu.vector_store %arg11[%c0_12, %c0_13], %16 {strides = array<i32>} : memref<576x16xbf16, #tpu.memory_space<vmem>>, vector<576x16xbf16>,
    %c0_14 = arith.constant 0 : index
    %c0_15 = arith.constant 0 : index
    %18 = vector.load %arg11[%c0_14, %c0_15] : memref<576x16xbf16, #tpu.memory_space<vmem>>, vector<16x16xbf16>
    %c0_16 = arith.constant 0 : index
    %c0_17 = arith.constant 0 : index
    %19 = vector.load %arg12[%c0_16, %c0_17] : memref<16x576xbf16, #tpu.memory_space<vmem>>, vector<16x16xbf16>
    tpu.vector_store %arg12[%c0_16, %c0_17], %18 {strides = array<i32>} : memref<16x576xbf16, #tpu.memory_space<vmem>>, vector<16x16xbf16>,
    %c16 = arith.constant 16 : index
    %c0_18 = arith.constant 0 : index
    %20 = vector.load %arg11[%c16, %c0_18] : memref<576x16xbf16, #tpu.memory_space<vmem>>, vector<16x16xbf16>
    %c0_19 = arith.constant 0 : index
    %c16_20 = arith.constant 16 : index
    %21 = vector.load %arg12[%c0_19, %c16_20] : memref<16x576xbf16, #tpu.memory_space<vmem>>, vector<16x16xbf16>
    tpu.vector_store %arg12[%c0_19, %c16_20], %20 {strides = array<i32>} : memref<16x576xbf16, #tpu.memory_space<vmem>>, vector<16x16xbf16>,
    %c32 = arith.constant 32 : index
    %c0_21 = arith.constant 0 : index
    %22 = vector.load %arg11[%c32, %c0_21] : memref<576x16xbf16, #tpu.memory_space<vmem>>, vector<16x16xbf16>
    %c0_22 = arith.constant 0 : index
    %c32_23 = arith.constant 32 : index
    %23 = vector.load %arg12[%c0_22, %c32_23] : memref<16x576xbf16, #tpu.memory_space<vmem>>, vector<16x16xbf16>
    tpu.vector_store %arg12[%c0_22, %c32_23], %22 {strides = array<i32>} : memref<16x576xbf16, #tpu.memory_space<vmem>>, vector<16x16xbf16>,
    %c48 = arith.constant 48 : index
    %c0_24 = arith.constant 0 : index
    %24 = vector.load %arg11[%c48, %c0_24] : memref<576x16xbf16, #tpu.memory_space<vmem>>, vector<16x16xbf16>
    %c0_25 = arith.constant 0 : index
    %c48_26 = arith.constant 48 : index
    %25 = vector.load %arg12[%c0_25, %c48_26] : memref<16x576xbf16, #tpu.memory_space<vmem>>, vector<16x16xbf16>
    tpu.vector_store %arg12[%c0_25, %c48_26], %24 {strides = array<i32>} : memref<16x576xbf16, #tpu.memory_space<vmem>>, vector<16x16xbf16>,
    %c64 = arith.constant 64 : index
    %c0_27 = arith.constant 0 : index
    %26 = vector.load %arg11[%c64, %c0_27] : memref<576x16xbf16, #tpu.memory_space<vmem>>, vector<16x16xbf16>
    %c0_28 = arith.constant 0 : index
    %c64_29 = arith.constant 64 : index
    %27 = vector.load %arg12[%c0_28, %c64_29] : memref<16x576xbf16, #tpu.memory_space<vmem>>, vector<16x16xbf16>
    tpu.vector_store %arg12[%c0_28, %c64_29], %26 {strides = array<i32>} : memref<16x576xbf16, #tpu.memory_space<vmem>>, vector<16x16xbf16>,
    %c80 = arith.constant 80 : index
    %c0_30 = arith.constant 0 : index
    %28 = vector.load %arg11[%c80, %c0_30] : memref<576x16xbf16, #tpu.memory_space<vmem>>, vector<16x16xbf16>
    %c0_31 = arith.constant 0 : index
    %c80_32 = arith.constant 80 : index
    %29 = vector.load %arg12[%c0_31, %c80_32] : memref<16x576xbf16, #tpu.memory_space<vmem>>, vector<16x16xbf16>
    tpu.vector_store %arg12[%c0_31, %c80_32], %28 {strides = array<i32>} : memref<16x576xbf16, #tpu.memory_space<vmem>>, vector<16x16xbf16>,
    %c96 = arith.constant 96 : index
    %c0_33 = arith.constant 0 : index
    %30 = vector.load %arg11[%c96, %c0_33] : memref<576x16xbf16, #tpu.memory_space<vmem>>, vector<16x16xbf16>
    %c0_34 = arith.constant 0 : index
    %c96_35 = arith.constant 96 : index
    %31 = vector.load %arg12[%c0_34, %c96_35] : memref<16x576xbf16, #tpu.memory_space<vmem>>, vector<16x16xbf16>
    tpu.vector_store %arg12[%c0_34, %c96_35], %30 {strides = array<i32>} : memref<16x576xbf16, #tpu.memory_space<vmem>>, vector<16x16xbf16>,
    %c112 = arith.constant 112 : index
    %c0_36 = arith.constant 0 : index
    %32 = vector.load %arg11[%c112, %c0_36] : memref<576x16xbf16, #tpu.memory_space<vmem>>, vector<16x16xbf16>
    %c0_37 = arith.constant 0 : index
    %c112_38 = arith.constant 112 : index
    %33 = vector.load %arg12[%c0_37, %c112_38] : memref<16x576xbf16, #tpu.memory_space<vmem>>, vector<16x16xbf16>
    tpu.vector_store %arg12[%c0_37, %c112_38], %32 {strides = array<i32>} : memref<16x576xbf16, #tpu.memory_space<vmem>>, vector<16x16xbf16>,
    %c128 = arith.constant 128 : index
    %c0_39 = arith.constant 0 : index
    %34 = vector.load %arg11[%c128, %c0_39] : memref<576x16xbf16, #tpu.memory_space<vmem>>, vector<16x16xbf16>
    %c0_40 = arith.constant 0 : index
    %c128_41 = arith.constant 128 : index
    %35 = vector.load %arg12[%c0_40, %c128_41] : memref<16x576xbf16, #tpu.memory_space<vmem>>, vector<16x16xbf16>
    tpu.vector_store %arg12[%c0_40, %c128_41], %34 {strides = array<i32>} : memref<16x576xbf16, #tpu.memory_space<vmem>>, vector<16x16xbf16>,
    %c144 = arith.constant 144 : index
    %c0_42 = arith.constant 0 : index
    %36 = vector.load %arg11[%c144, %c0_42] : memref<576x16xbf16, #tpu.memory_space<vmem>>, vector<16x16xbf16>
    %c0_43 = arith.constant 0 : index
    %c144_44 = arith.constant 144 : index
    %37 = vector.load %arg12[%c0_43, %c144_44] : memref<16x576xbf16, #tpu.memory_space<vmem>>, vector<16x16xbf16>
    tpu.vector_store %arg12[%c0_43, %c144_44], %36 {strides = array<i32>} : memref<16x576xbf16, #tpu.memory_space<vmem>>, vector<16x16xbf16>,
    %c160 = arith.constant 160 : index
    %c0_45 = arith.constant 0 : index
    %38 = vector.load %arg11[%c160, %c0_45] : memref<576x16xbf16, #tpu.memory_space<vmem>>, vector<16x16xbf16>
    %c0_46 = arith.constant 0 : index
    %c160_47 = arith.constant 160 : index
    %39 = vector.load %arg12[%c0_46, %c160_47] : memref<16x576xbf16, #tpu.memory_space<vmem>>, vector<16x16xbf16>
    tpu.vector_store %arg12[%c0_46, %c160_47], %38 {strides = array<i32>} : memref<16x576xbf16, #tpu.memory_space<vmem>>, vector<16x16xbf16>,
    %c176 = arith.constant 176 : index
    %c0_48 = arith.constant 0 : index
    %40 = vector.load %arg11[%c176, %c0_48] : memref<576x16xbf16, #tpu.memory_space<vmem>>, vector<16x16xbf16>
    %c0_49 = arith.constant 0 : index
    %c176_50 = arith.constant 176 : index
    %41 = vector.load %arg12[%c0_49, %c176_50] : memref<16x576xbf16, #tpu.memory_space<vmem>>, vector<16x16xbf16>
    tpu.vector_store %arg12[%c0_49, %c176_50], %40 {strides = array<i32>} : memref<16x576xbf16, #tpu.memory_space<vmem>>, vector<16x16xbf16>,
    %c192 = arith.constant 192 : index
    %c0_51 = arith.constant 0 : index
    %42 = vector.load %arg11[%c192, %c0_51] : memref<576x16xbf16, #tpu.memory_space<vmem>>, vector<16x16xbf16>
    %c0_52 = arith.constant 0 : index
    %c192_53 = arith.constant 192 : index
    %43 = vector.load %arg12[%c0_52, %c192_53] : memref<16x576xbf16, #tpu.memory_space<vmem>>, vector<16x16xbf16>
    tpu.vector_store %arg12[%c0_52, %c192_53], %42 {strides = array<i32>} : memref<16x576xbf16, #tpu.memory_space<vmem>>, vector<16x16xbf16>,
    %c208 = arith.constant 208 : index
    %c0_54 = arith.constant 0 : index
    %44 = vector.load %arg11[%c208, %c0_54] : memref<576x16xbf16, #tpu.memory_space<vmem>>, vector<16x16xbf16>
    %c0_55 = arith.constant 0 : index
    %c208_56 = arith.constant 208 : index
    %45 = vector.load %arg12[%c0_55, %c208_56] : memref<16x576xbf16, #tpu.memory_space<vmem>>, vector<16x16xbf16>
    tpu.vector_store %arg12[%c0_55, %c208_56], %44 {strides = array<i32>} : memref<16x576xbf16, #tpu.memory_space<vmem>>, vector<16x16xbf16>,
    %c224 = arith.constant 224 : index
    %c0_57 = arith.constant 0 : index
    %46 = vector.load %arg11[%c224, %c0_57] : memref<576x16xbf16, #tpu.memory_space<vmem>>, vector<16x16xbf16>
    %c0_58 = arith.constant 0 : index
    %c224_59 = arith.constant 224 : index
    %47 = vector.load %arg12[%c0_58, %c224_59] : memref<16x576xbf16, #tpu.memory_space<vmem>>, vector<16x16xbf16>
    tpu.vector_store %arg12[%c0_58, %c224_59], %46 {strides = array<i32>} : memref<16x576xbf16, #tpu.memory_space<vmem>>, vector<16x16xbf16>,
    %c240 = arith.constant 240 : index
    %c0_60 = arith.constant 0 : index
    %48 = vector.load %arg11[%c240, %c0_60] : memref<576x16xbf16, #tpu.memory_space<vmem>>, vector<16x16xbf16>
    %c0_61 = arith.constant 0 : index
    %c240_62 = arith.constant 240 : index
    %49 = vector.load %arg12[%c0_61, %c240_62] : memref<16x576xbf16, #tpu.memory_space<vmem>>, vector<16x16xbf16>
    tpu.vector_store %arg12[%c0_61, %c240_62], %48 {strides = array<i32>} : memref<16x576xbf16, #tpu.memory_space<vmem>>, vector<16x16xbf16>,
    %c256 = arith.constant 256 : index
    %c0_63 = arith.constant 0 : index
    %50 = vector.load %arg11[%c256, %c0_63] : memref<576x16xbf16, #tpu.memory_space<vmem>>, vector<16x16xbf16>
    %c0_64 = arith.constant 0 : index
    %c256_65 = arith.constant 256 : index
    %51 = vector.load %arg12[%c0_64, %c256_65] : memref<16x576xbf16, #tpu.memory_space<vmem>>, vector<16x16xbf16>
    tpu.vector_store %arg12[%c0_64, %c256_65], %50 {strides = array<i32>} : memref<16x576xbf16, #tpu.memory_space<vmem>>, vector<16x16xbf16>,
    %c272 = arith.constant 272 : index
    %c0_66 = arith.constant 0 : index
    %52 = vector.load %arg11[%c272, %c0_66] : memref<576x16xbf16, #tpu.memory_space<vmem>>, vector<16x16xbf16>
    %c0_67 = arith.constant 0 : index
    %c272_68 = arith.constant 272 : index
    %53 = vector.load %arg12[%c0_67, %c272_68] : memref<16x576xbf16, #tpu.memory_space<vmem>>, vector<16x16xbf16>
    tpu.vector_store %arg12[%c0_67, %c272_68], %52 {strides = array<i32>} : memref<16x576xbf16, #tpu.memory_space<vmem>>, vector<16x16xbf16>,
    %c288 = arith.constant 288 : index
    %c0_69 = arith.constant 0 : index
    %54 = vector.load %arg11[%c288, %c0_69] : memref<576x16xbf16, #tpu.memory_space<vmem>>, vector<16x16xbf16>
    %c0_70 = arith.constant 0 : index
    %c288_71 = arith.constant 288 : index
    %55 = vector.load %arg12[%c0_70, %c288_71] : memref<16x576xbf16, #tpu.memory_space<vmem>>, vector<16x16xbf16>
    tpu.vector_store %arg12[%c0_70, %c288_71], %54 {strides = array<i32>} : memref<16x576xbf16, #tpu.memory_space<vmem>>, vector<16x16xbf16>,
    %c304 = arith.constant 304 : index
    %c0_72 = arith.constant 0 : index
    %56 = vector.load %arg11[%c304, %c0_72] : memref<576x16xbf16, #tpu.memory_space<vmem>>, vector<16x16xbf16>
    %c0_73 = arith.constant 0 : index
    %c304_74 = arith.constant 304 : index
    %57 = vector.load %arg12[%c0_73, %c304_74] : memref<16x576xbf16, #tpu.memory_space<vmem>>, vector<16x16xbf16>
    tpu.vector_store %arg12[%c0_73, %c304_74], %56 {strides = array<i32>} : memref<16x576xbf16, #tpu.memory_space<vmem>>, vector<16x16xbf16>,
    %c320 = arith.constant 320 : index
    %c0_75 = arith.constant 0 : index
    %58 = vector.load %arg11[%c320, %c0_75] : memref<576x16xbf16, #tpu.memory_space<vmem>>, vector<16x16xbf16>
    %c0_76 = arith.constant 0 : index
    %c320_77 = arith.constant 320 : index
    %59 = vector.load %arg12[%c0_76, %c320_77] : memref<16x576xbf16, #tpu.memory_space<vmem>>, vector<16x16xbf16>
    tpu.vector_store %arg12[%c0_76, %c320_77], %58 {strides = array<i32>} : memref<16x576xbf16, #tpu.memory_space<vmem>>, vector<16x16xbf16>,
    %c336 = arith.constant 336 : index
    %c0_78 = arith.constant 0 : index
    %60 = vector.load %arg11[%c336, %c0_78] : memref<576x16xbf16, #tpu.memory_space<vmem>>, vector<16x16xbf16>
    %c0_79 = arith.constant 0 : index
    %c336_80 = arith.constant 336 : index
    %61 = vector.load %arg12[%c0_79, %c336_80] : memref<16x576xbf16, #tpu.memory_space<vmem>>, vector<16x16xbf16>
    tpu.vector_store %arg12[%c0_79, %c336_80], %60 {strides = array<i32>} : memref<16x576xbf16, #tpu.memory_space<vmem>>, vector<16x16xbf16>,
    %c352 = arith.constant 352 : index
    %c0_81 = arith.constant 0 : index
    %62 = vector.load %arg11[%c352, %c0_81] : memref<576x16xbf16, #tpu.memory_space<vmem>>, vector<16x16xbf16>
    %c0_82 = arith.constant 0 : index
    %c352_83 = arith.constant 352 : index
    %63 = vector.load %arg12[%c0_82, %c352_83] : memref<16x576xbf16, #tpu.memory_space<vmem>>, vector<16x16xbf16>
    tpu.vector_store %arg12[%c0_82, %c352_83], %62 {strides = array<i32>} : memref<16x576xbf16, #tpu.memory_space<vmem>>, vector<16x16xbf16>,
    %c368 = arith.constant 368 : index
    %c0_84 = arith.constant 0 : index
    %64 = vector.load %arg11[%c368, %c0_84] : memref<576x16xbf16, #tpu.memory_space<vmem>>, vector<16x16xbf16>
    %c0_85 = arith.constant 0 : index
    %c368_86 = arith.constant 368 : index
    %65 = vector.load %arg12[%c0_85, %c368_86] : memref<16x576xbf16, #tpu.memory_space<vmem>>, vector<16x16xbf16>
    tpu.vector_store %arg12[%c0_85, %c368_86], %64 {strides = array<i32>} : memref<16x576xbf16, #tpu.memory_space<vmem>>, vector<16x16xbf16>,
    %c384 = arith.constant 384 : index
    %c0_87 = arith.constant 0 : index
    %66 = vector.load %arg11[%c384, %c0_87] : memref<576x16xbf16, #tpu.memory_space<vmem>>, vector<16x16xbf16>
    %c0_88 = arith.constant 0 : index
    %c384_89 = arith.constant 384 : index
    %67 = vector.load %arg12[%c0_88, %c384_89] : memref<16x576xbf16, #tpu.memory_space<vmem>>, vector<16x16xbf16>
    tpu.vector_store %arg12[%c0_88, %c384_89], %66 {strides = array<i32>} : memref<16x576xbf16, #tpu.memory_space<vmem>>, vector<16x16xbf16>,
    %c400 = arith.constant 400 : index
    %c0_90 = arith.constant 0 : index
    %68 = vector.load %arg11[%c400, %c0_90] : memref<576x16xbf16, #tpu.memory_space<vmem>>, vector<16x16xbf16>
    %c0_91 = arith.constant 0 : index
    %c400_92 = arith.constant 400 : index
    %69 = vector.load %arg12[%c0_91, %c400_92] : memref<16x576xbf16, #tpu.memory_space<vmem>>, vector<16x16xbf16>
    tpu.vector_store %arg12[%c0_91, %c400_92], %68 {strides = array<i32>} : memref<16x576xbf16, #tpu.memory_space<vmem>>, vector<16x16xbf16>,
    %c416 = arith.constant 416 : index
    %c0_93 = arith.constant 0 : index
    %70 = vector.load %arg11[%c416, %c0_93] : memref<576x16xbf16, #tpu.memory_space<vmem>>, vector<16x16xbf16>
    %c0_94 = arith.constant 0 : index
    %c416_95 = arith.constant 416 : index
    %71 = vector.load %arg12[%c0_94, %c416_95] : memref<16x576xbf16, #tpu.memory_space<vmem>>, vector<16x16xbf16>
    tpu.vector_store %arg12[%c0_94, %c416_95], %70 {strides = array<i32>} : memref<16x576xbf16, #tpu.memory_space<vmem>>, vector<16x16xbf16>,
    %c432 = arith.constant 432 : index
    %c0_96 = arith.constant 0 : index
    %72 = vector.load %arg11[%c432, %c0_96] : memref<576x16xbf16, #tpu.memory_space<vmem>>, vector<16x16xbf16>
    %c0_97 = arith.constant 0 : index
    %c432_98 = arith.constant 432 : index
    %73 = vector.load %arg12[%c0_97, %c432_98] : memref<16x576xbf16, #tpu.memory_space<vmem>>, vector<16x16xbf16>
    tpu.vector_store %arg12[%c0_97, %c432_98], %72 {strides = array<i32>} : memref<16x576xbf16, #tpu.memory_space<vmem>>, vector<16x16xbf16>,
    %c448 = arith.constant 448 : index
    %c0_99 = arith.constant 0 : index
    %74 = vector.load %arg11[%c448, %c0_99] : memref<576x16xbf16, #tpu.memory_space<vmem>>, vector<16x16xbf16>
    %c0_100 = arith.constant 0 : index
    %c448_101 = arith.constant 448 : index
    %75 = vector.load %arg12[%c0_100, %c448_101] : memref<16x576xbf16, #tpu.memory_space<vmem>>, vector<16x16xbf16>
    tpu.vector_store %arg12[%c0_100, %c448_101], %74 {strides = array<i32>} : memref<16x576xbf16, #tpu.memory_space<vmem>>, vector<16x16xbf16>,
    %c464 = arith.constant 464 : index
    %c0_102 = arith.constant 0 : index
    %76 = vector.load %arg11[%c464, %c0_102] : memref<576x16xbf16, #tpu.memory_space<vmem>>, vector<16x16xbf16>
    %c0_103 = arith.constant 0 : index
    %c464_104 = arith.constant 464 : index
    %77 = vector.load %arg12[%c0_103, %c464_104] : memref<16x576xbf16, #tpu.memory_space<vmem>>, vector<16x16xbf16>
    tpu.vector_store %arg12[%c0_103, %c464_104], %76 {strides = array<i32>} : memref<16x576xbf16, #tpu.memory_space<vmem>>, vector<16x16xbf16>,
    %c480 = arith.constant 480 : index
    %c0_105 = arith.constant 0 : index
    %78 = vector.load %arg11[%c480, %c0_105] : memref<576x16xbf16, #tpu.memory_space<vmem>>, vector<16x16xbf16>
    %c0_106 = arith.constant 0 : index
    %c480_107 = arith.constant 480 : index
    %79 = vector.load %arg12[%c0_106, %c480_107] : memref<16x576xbf16, #tpu.memory_space<vmem>>, vector<16x16xbf16>
    tpu.vector_store %arg12[%c0_106, %c480_107], %78 {strides = array<i32>} : memref<16x576xbf16, #tpu.memory_space<vmem>>, vector<16x16xbf16>,
    %c496 = arith.constant 496 : index
    %c0_108 = arith.constant 0 : index
    %80 = vector.load %arg11[%c496, %c0_108] : memref<576x16xbf16, #tpu.memory_space<vmem>>, vector<16x16xbf16>
    %c0_109 = arith.constant 0 : index
    %c496_110 = arith.constant 496 : index
    %81 = vector.load %arg12[%c0_109, %c496_110] : memref<16x576xbf16, #tpu.memory_space<vmem>>, vector<16x16xbf16>
    tpu.vector_store %arg12[%c0_109, %c496_110], %80 {strides = array<i32>} : memref<16x576xbf16, #tpu.memory_space<vmem>>, vector<16x16xbf16>,
    %c512 = arith.constant 512 : index
    %c0_111 = arith.constant 0 : index
    %82 = vector.load %arg11[%c512, %c0_111] : memref<576x16xbf16, #tpu.memory_space<vmem>>, vector<16x16xbf16>
    %c0_112 = arith.constant 0 : index
    %c512_113 = arith.constant 512 : index
    %83 = vector.load %arg12[%c0_112, %c512_113] : memref<16x576xbf16, #tpu.memory_space<vmem>>, vector<16x16xbf16>
    tpu.vector_store %arg12[%c0_112, %c512_113], %82 {strides = array<i32>} : memref<16x576xbf16, #tpu.memory_space<vmem>>, vector<16x16xbf16>,
    %c528 = arith.constant 528 : index
    %c0_114 = arith.constant 0 : index
    %84 = vector.load %arg11[%c528, %c0_114] : memref<576x16xbf16, #tpu.memory_space<vmem>>, vector<16x16xbf16>
    %c0_115 = arith.constant 0 : index
    %c528_116 = arith.constant 528 : index
    %85 = vector.load %arg12[%c0_115, %c528_116] : memref<16x576xbf16, #tpu.memory_space<vmem>>, vector<16x16xbf16>
    tpu.vector_store %arg12[%c0_115, %c528_116], %84 {strides = array<i32>} : memref<16x576xbf16, #tpu.memory_space<vmem>>, vector<16x16xbf16>,
    %c544 = arith.constant 544 : index
    %c0_117 = arith.constant 0 : index
    %86 = vector.load %arg11[%c544, %c0_117] : memref<576x16xbf16, #tpu.memory_space<vmem>>, vector<16x16xbf16>
    %c0_118 = arith.constant 0 : index
    %c544_119 = arith.constant 544 : index
    %87 = vector.load %arg12[%c0_118, %c544_119] : memref<16x576xbf16, #tpu.memory_space<vmem>>, vector<16x16xbf16>
    tpu.vector_store %arg12[%c0_118, %c544_119], %86 {strides = array<i32>} : memref<16x576xbf16, #tpu.memory_space<vmem>>, vector<16x16xbf16>,
    %c560 = arith.constant 560 : index
    %c0_120 = arith.constant 0 : index
    %88 = vector.load %arg11[%c560, %c0_120] : memref<576x16xbf16, #tpu.memory_space<vmem>>, vector<16x16xbf16>
    %c0_121 = arith.constant 0 : index
    %c560_122 = arith.constant 560 : index
    %89 = vector.load %arg12[%c0_121, %c560_122] : memref<16x576xbf16, #tpu.memory_space<vmem>>, vector<16x16xbf16>
    tpu.vector_store %arg12[%c0_121, %c560_122], %88 {strides = array<i32>} : memref<16x576xbf16, #tpu.memory_space<vmem>>, vector<16x16xbf16>,
    %c0_123 = arith.constant 0 : index
    %c0_124 = arith.constant 0 : index
    %90 = vector.load %arg12[%c0_123, %c0_124] : memref<16x576xbf16, #tpu.memory_space<vmem>>, vector<16x576xbf16>
    %c0_125 = arith.constant 0 : index
    %c0_126 = arith.constant 0 : index
    %91 = vector.load %arg6[%c0_125, %c0_126] : memref<576x256xbf16, #tpu.memory_space<vmem>>, vector<576x256xbf16>
    %cst_127 = arith.constant dense<0.000000e+00> : vector<16x256xf32>
    %92 = tpu.matmul %90, %91, %cst_127 {dimension_numbers = #tpu.dot_dimension_numbers<[1], [0], [0], [1], [0, 0, 1, 1], [], []>} : vector<16x576xbf16>, vector<576x256xbf16>, vector<16x256xf32> -> vector<16x256xf32>
    %c0_128 = arith.constant 0 : index
    %c0_129 = arith.constant 0 : index
    %93 = vector.load %arg7[%c0_128, %c0_129] : memref<1x256xf32, #tpu.memory_space<vmem>>, vector<1x256xf32>
    %94 = vector.broadcast %93 : vector<1x256xf32> to vector<16x256xf32>
    %95 = arith.addf %92, %94 : vector<16x256xf32>
    %cst_130 = arith.constant 0.000000e+00 : f32
    %96 = vector.broadcast %cst_130 : f32 to vector<16x256xf32>
    %97 = arith.maximumf %95, %96 : vector<16x256xf32>
    %98 = arith.truncf %97 : vector<16x256xf32> to vector<16x256xbf16>
    %c0_131 = arith.constant 0 : index
    %c0_132 = arith.constant 0 : index
    %99 = vector.load %arg8[%c0_131, %c0_132] : memref<256x128xbf16, #tpu.memory_space<vmem>>, vector<256x128xbf16>
    %cst_133 = arith.constant dense<0.000000e+00> : vector<16x128xf32>
    %100 = tpu.matmul %98, %99, %cst_133 {dimension_numbers = #tpu.dot_dimension_numbers<[1], [0], [0], [1], [0, 0, 1, 1], [], []>} : vector<16x256xbf16>, vector<256x128xbf16>, vector<16x128xf32> -> vector<16x128xf32>
    %c0_134 = arith.constant 0 : index
    %c0_135 = arith.constant 0 : index
    %101 = vector.load %arg9[%c0_134, %c0_135] : memref<1x128xf32, #tpu.memory_space<vmem>>, vector<1x128xf32>
    %102 = vector.broadcast %101 : vector<1x128xf32> to vector<16x128xf32>
    %103 = arith.addf %100, %102 : vector<16x128xf32>
    %c0_136 = arith.constant 0 : index
    %c0_137 = arith.constant 0 : index
    %104 = vector.load %arg10[%c0_136, %c0_137] : memref<16x128xf32, #tpu.memory_space<vmem>>, vector<16x128xf32>
    tpu.vector_store %arg10[%c0_136, %c0_137], %103 {strides = array<i32>} : memref<16x128xf32, #tpu.memory_space<vmem>>, vector<16x128xf32>,
    return
  }
  func.func @transform_0(%arg0: i32) -> (i32, i32) {
    %c0_i32 = arith.constant 0 : i32
    %c0_i32_0 = arith.constant 0 : i32
    return %arg0, %c0_i32 : i32, i32
  }
  func.func @transform_1(%arg0: i32) -> (i32, i32) {
    %c0_i32 = arith.constant 0 : i32
    %c0_i32_0 = arith.constant 0 : i32
    %c0_i32_1 = arith.constant 0 : i32
    return %c0_i32, %c0_i32_0 : i32, i32
  }
  func.func @transform_2(%arg0: i32) -> (i32, i32) {
    %c0_i32 = arith.constant 0 : i32
    %c0_i32_0 = arith.constant 0 : i32
    %c0_i32_1 = arith.constant 0 : i32
    return %c0_i32, %c0_i32_0 : i32, i32
  }
  func.func @transform_3(%arg0: i32) -> (i32, i32) {
    %c0_i32 = arith.constant 0 : i32
    %c0_i32_0 = arith.constant 0 : i32
    %c0_i32_1 = arith.constant 0 : i32
    return %c0_i32, %c0_i32_0 : i32, i32
  }
  func.func @transform_4(%arg0: i32) -> (i32, i32) {
    %c0_i32 = arith.constant 0 : i32
    %c0_i32_0 = arith.constant 0 : i32
    %c0_i32_1 = arith.constant 0 : i32
    return %c0_i32, %c0_i32_0 : i32, i32
  }
  func.func @transform_5(%arg0: i32) -> (i32, i32) {
    %c0_i32 = arith.constant 0 : i32
    %c0_i32_0 = arith.constant 0 : i32
    %c0_i32_1 = arith.constant 0 : i32
    return %c0_i32, %c0_i32_0 : i32, i32
  }
  func.func @transform_6(%arg0: i32) -> (i32, i32) {
    %c0_i32 = arith.constant 0 : i32
    %c0_i32_0 = arith.constant 0 : i32
    %c0_i32_1 = arith.constant 0 : i32
    return %c0_i32, %c0_i32_0 : i32, i32
  }
  func.func @transform_7(%arg0: i32) -> (i32, i32) {
    %c0_i32 = arith.constant 0 : i32
    %c0_i32_0 = arith.constant 0 : i32
    %c0_i32_1 = arith.constant 0 : i32
    return %c0_i32, %c0_i32_0 : i32, i32
  }
  func.func @transform_8(%arg0: i32) -> (i32, i32) {
    %c0_i32 = arith.constant 0 : i32
    %c0_i32_0 = arith.constant 0 : i32
    %c0_i32_1 = arith.constant 0 : i32
    return %c0_i32, %c0_i32_0 : i32, i32
  }
  func.func @transform_9(%arg0: i32) -> (i32, i32) {
    %c0_i32 = arith.constant 0 : i32
    %c0_i32_0 = arith.constant 0 : i32
    return %arg0, %c0_i32 : i32, i32
  }
}

</mosaic_0001>

<bundles_post_ra>
// kernel: _lambda_.1
= control target key start
LH: loop header
LB: loop body
LE: loop exit
PB: predicated region body
PF: predicated region fallthrough
CT: control target
= control target key end

     0   :  { %v5079_v1 = vmov 0   ;;  %vm1084_vm0 = vcmask 1041408   ;;  %vm975_vm1 = vcmask 556032   ;;  %vm2172_vm2 = vcmask 130048   ;;  %s5080_s12 = smov 16   ;;  %s5081_s15 = smov 32   ;;  %s7104_s1 = inlined_call_operand.vmem [shape: bf16[324,144], index: 1, kind: input, shape index: {}]   ;;  %s7105_s0 = inlined_call_operand.vmem [shape: bf16[576,324], index: 0, kind: input, shape index: {}]   ;;  %s7106_s3 = inlined_call_operand.vmem [shape: bf16[144,16], index: 3, kind: input, shape index: {}]   ;;  %s7107_s2 = inlined_call_operand.vmem [shape: f32[1,144], index: 2, kind: input, shape index: {}]   ;;  %s7108_s5 = inlined_call_operand.vmem [shape: bf16[576,256], index: 5, kind: input, shape index: {}]   ;;  %s7109_s4 = inlined_call_operand.vmem [shape: f32[1,16], index: 4, kind: input, shape index: {}]   ;;  %s7110_s7 = inlined_call_operand.vmem [shape: bf16[256,128], index: 7, kind: input, shape index: {}]   ;;  %s7111_s6 = inlined_call_operand.vmem [shape: f32[1,256], index: 6, kind: input, shape index: {}]   ;;  %s7112_s8 = inlined_call_operand.vmem [shape: f32[1,128], index: 8, kind: input, shape index: {}]   ;;  %s7113_s9 = inlined_call_operand.vmem [shape: f32[16,128], index: 9, kind: output, shape index: {}]  }
   0x1   :  { %v4732_v0 = vld [vmem:[%s7104_s1 + $0x74] ss:$8 sps:$4 sm:$0xff]   ;;  %1516 = vmatprep.mubr.bf16.mxu1 %v5079_v1  ;;  %v217_v2 = vld [vmem:[%s7104_s1 + $0x140] sm:$0x33]  ;;  %v4735_v3 = vld [vmem:[%s7104_s1 + $0x70] ss:$8 sps:$4 sm:$0xff]  }
   0x2   :  { %1091 = vmatprep.subr.bf16.mxu0 %v4732_v0  ;;  %v4379_v4 = vcombine.high %v217_v2, %v217_v2  ;;  %v4378_v5 = vcombine.low %v217_v2, %v217_v2  ;;  %v4737_v6 = vld [vmem:[%s7104_s1 + $0x64] ss:$8 sps:$4 sm:$0xff]   ;;  %v4739_v7 = vld [vmem:[%s7104_s1 + $0x134] ss:$8 sps:$4 sm:$0xff]   ;;  %v4741_v8 = vld [vmem:[%s7104_s1 + $0x60] ss:$8 sps:$4 sm:$0xff]  }
   0x3   :  { %1092 = vmatpush1.bf16.msra.mxu0 %v4735_v3  ;;  %v4742_v10 = vld [vmem:[%s7104_s1 + $0x130] ss:$8 sps:$4 sm:$0xff]   ;;  %v4743_v11 = vld [vmem:[%s7104_s1 + $0x54] ss:$8 sps:$4 sm:$0xff]   ;;  %v4745_v12 = vld [vmem:[%s7104_s1 + $0x124] ss:$8 sps:$4 sm:$0xff]  }
   0x4   :  { %4380 = vmatprep.subr.msk.bf16.mxu1 %vm1084_vm0, %v4379_v4  ;;  %v1086_v9 = vsel %vm1084_vm0, %v4378_v5, 0  ;;  %1093 = vmatprep.subr.bf16.mxu0 %v4737_v6  ;;  %v4747_v13 = vld [vmem:[%s7104_s1 + $0x50] ss:$8 sps:$4 sm:$0xff]   ;;  %v4749_v14 = vld [vmem:[%s7104_s1 + $0x44] ss:$8 sps:$4 sm:$0xff]   ;;  %vm2962_vm3 = vcmask 125952  }
   0x5   :  { %1491 = vmatpush1.bf16.msra.mxu1 %v1086_v9  ;;  %v4748_v15 = vld [vmem:[%s7104_s1 + $0x120] ss:$8 sps:$4 sm:$0xff]   ;;  %v4751_v16 = vld [vmem:[%s7104_s1 + $0x114] ss:$8 sps:$4 sm:$0xff]   ;;  %v4754_v19 = vld [vmem:[%s7104_s1 + $0x110] ss:$8 sps:$4 sm:$0xff]  }
   0x6   :  { %1492 = vmatprep.subr.bf16.mxu1 %v4739_v7  ;;  %v4753_v17 = vld [vmem:[%s7104_s1 + $0x40] ss:$8 sps:$4 sm:$0xff]   ;;  %v4755_v18 = vld [vmem:[%s7104_s1 + $0x34] ss:$8 sps:$4 sm:$0xff]   ;;  %v4757_v20 = vld [vmem:[%s7104_s1 + $0x104] ss:$8 sps:$4 sm:$0xff]  }
   0x7   :  { %1094 = vmatpush1.bf16.msra.mxu0 %v4741_v8  ;;  %v4759_v21 = vld [vmem:[%s7104_s1 + $0x30] ss:$8 sps:$4 sm:$0xff]   ;;  %v4761_v22 = vld [vmem:[%s7104_s1 + $0x24] ss:$8 sps:$4 sm:$0xff]   ;;  %v4760_v23 = vld [vmem:[%s7104_s1 + $0x100] ss:$8 sps:$4 sm:$0xff]  }
   0x8   :  { %1095 = vmatprep.subr.bf16.mxu0 %v4743_v11  ;;  %v4764_v24 = vld [vmem:[%s7104_s1 + $0x20] ss:$8 sps:$4 sm:$0xff]   ;;  %v4766_v26 = vld [vmem:[%s7104_s1 + $0x14] ss:$8 sps:$4 sm:$0xff]   ;;  %v4768_v28 = vld [vmem:[%s7104_s1 + $0x10] ss:$8 sps:$4 sm:$0xff]  }
   0x9   :  { %1493 = vmatpush1.bf16.msra.mxu1 %v4742_v10  ;;  %v4763_v25 = vld [vmem:[%s7105_s0 + $0x8] ss:$12 sps:$4 sm:$0xff]   ;;  %v4765_v27 = vld [vmem:[%s7106_s3 + $0x38] sm:$0xff]   ;;  %v4769_v29 = vld [vmem:[%s7104_s1 + $0x4] ss:$8 sps:$4 sm:$0xff]   ;;  %s5082_s16 = smov 48  }
   0xa   :  { %1494 = vmatprep.subr.bf16.mxu1 %v4745_v12  ;;  %v4771_v30 = vld [vmem:[%s7105_s0 + $0x20] ss:$12 sps:$4 sm:$0xff]   ;;  %v4773_v32 = vld [vmem:[%s7104_s1 + $0xf4] ss:$8 sps:$4 sm:$0xff]   ;;  %v4775_v33 = vld [vmem:[%s7104_s1 + $0xf0] ss:$8 sps:$4 sm:$0xff]  }
   0xb   :  { %1096 = vmatpush1.bf16.msra.mxu0 %v4747_v13  ;;  %v4772_v31 = vld [vmem:[%s7104_s1] ss:$8 sps:$4 sm:$0xff]   ;;  %v4794_v34 = vld [vmem:[%s7106_s3 + $0x30] sm:$0xff]   ;;  %v4776_v35 = vld [vmem:[%s7104_s1 + $0xe4] ss:$8 sps:$4 sm:$0xff]   ;;  %s5083_s21 = smov 64  }
   0xc   :  { %1097 = vmatprep.subr.bf16.mxu0 %v4749_v14  ;;  %v4778_v36 = vld [vmem:[%s7105_s0 + $0x38] ss:$12 sps:$4 sm:$0xff]   ;;  %v4779_v37 = vld [vmem:[%s7104_s1 + $0xe0] ss:$8 sps:$4 sm:$0xff]   ;;  %v4780_v38 = vld [vmem:[%s7104_s1 + $0xd4] ss:$8 sps:$4 sm:$0xff]  }
   0xd   :  { %1495 = vmatpush1.bf16.msra.mxu1 %v4748_v15  ;;  %v4804_v39 = vld [vmem:[%s7105_s0 + $0x4] ss:$12 sps:$4 sm:$0xff]   ;;  %v4814_v43 = vld [vmem:[%s7106_s3 + $0x28] sm:$0xff]   ;;  %v4787_v45 = vld [vmem:[%s7104_s1 + $0xb4] ss:$8 sps:$4 sm:$0xff]   ;;  %s5084_s22 = smov 80  }
   0xe   :  { %1496 = vmatprep.subr.bf16.mxu1 %v4751_v16  ;;  %1123 = vmatprep.mubr.bf16.mxu0 %v4804_v39  ;;  %v4782_v40 = vld [vmem:[%s7104_s1 + $0xd0] ss:$8 sps:$4 sm:$0xff]   ;;  %v4783_v41 = vld [vmem:[%s7104_s1 + $0xc4] ss:$8 sps:$4 sm:$0xff]   ;;  %v4786_v44 = vld [vmem:[%s7104_s1 + $0xc0] ss:$8 sps:$4 sm:$0xff]  }
   0xf   :  { %1098 = vmatpush1.bf16.msra.mxu0 %v4753_v17  ;;  %v4785_v42 = vld [vmem:[%s7105_s0 + $0x50] ss:$12 sps:$4 sm:$0xff]   ;;  %v4790_v47 = vld [vmem:[%s7104_s1 + $0xa4] ss:$8 sps:$4 sm:$0xff]   ;;  %v4792_v48 = vld [vmem:[%s7105_s0 + $0x68] ss:$12 sps:$4 sm:$0xff]  }
  0x10   :  { %1099 = vmatprep.subr.bf16.mxu0 %v4755_v18  ;;  %v4789_v46 = vld [vmem:[%s7104_s1 + $0xb0] ss:$8 sps:$4 sm:$0xff]   ;;  %v4793_v49 = vld [vmem:[%s7104_s1 + $0xa0] ss:$8 sps:$4 sm:$0xff]   ;;  %v4795_v50 = vld [vmem:[%s7104_s1 + $0x94] ss:$8 sps:$4 sm:$0xff]  }
  0x11   :  { %1497 = vmatpush1.bf16.msra.mxu1 %v4754_v19  ;;  %v4831_v51 = vld [vmem:[%s7106_s3 + $0x20] sm:$0xff]   ;;  %v4797_v52 = vld [vmem:[%s7104_s1 + $0x90] ss:$8 sps:$4 sm:$0xff]   ;;  %v4806_v57 = vld [vmem:[%s7105_s0 + $0x1c] ss:$12 sps:$4 sm:$0xff]   ;;  %s5085_s27 = smov 96  }
  0x12   :  { %1498 = vmatprep.subr.bf16.mxu1 %v4757_v20  ;;  %v4798_v53 = vld [vmem:[%s7104_s1 + $0x84] ss:$8 sps:$4 sm:$0xff]   ;;  %v4801_v54 = vld [vmem:[%s7104_s1 + $0x80] ss:$8 sps:$4 sm:$0xff]   ;;  %v4848_v58 = vld [vmem:[%s7106_s3 + $0x18] sm:$0xff]   ;;  %s5086_s28 = smov 112  }
  0x13   :  { %1100 = vmatpush1.bf16.msra.mxu0 %v4759_v21  ;;  %v4800_v55 = vld [vmem:[%s7105_s0 + $0x80] ss:$12 sps:$4 sm:$0xff]   ;;  %v4805_v59 = vld [vmem:[%s7105_s0 + $0x98] ss:$12 sps:$4 sm:$0xff]   ;;  %v4865_v62 = vld [vmem:[%s7106_s3 + $0x10] sm:$0xff]   ;;  %vm3049_vm4 = vcmask 257152  }
  0x14   :  { %1101 = vmatprep.subr.bf16.mxu0 %v4761_v22  ;;  %v4802_v56 = vld [vmem:[%s7105_s0] ss:$12 sps:$4 sm:$0xff]   ;;  %v4808_v60 = vld [vmem:[%s7105_s0 + $0x18] ss:$12 sps:$4 sm:$0xff]   ;;  %v4809_v63 = vld [vmem:[%s7105_s0 + $0xb0] ss:$12 sps:$4 sm:$0xff]  }
  0x15   :  { %1499 = vmatpush1.bf16.msra.mxu1 %v4760_v23  ;;  %v4810_v61 = vld [vmem:[%s7105_s0 + $0x34] ss:$12 sps:$4 sm:$0xff]   ;;  %v4812_v0 = vld [vmem:[%s7105_s0 + $0x30] ss:$12 sps:$4 sm:$0xff]   ;;  %v4815_v2 = vld [vmem:[%s7105_s0 + $0x4c] ss:$12 sps:$4 sm:$0xff]  }
  0x16   :  { %2281 = vmatprep.subr.bf16.mxu1 %v5079_v1  ;;  %v4813_v3 = vld [vmem:[%s7105_s0 + $0xc8] ss:$12 sps:$4 sm:$0xff]   ;;  %v4819_v5 = vld [vmem:[%s7105_s0 + $0x64] ss:$12 sps:$4 sm:$0xff]   ;;  %v4818_v7 = vld [vmem:[%s7105_s0 + $0xe0] ss:$12 sps:$4 sm:$0xff]  }
  0x17   :  { %1102 = vmatpush1.bf16.msra.mxu0 %v4764_v24  ;;  %v4817_v4 = vld [vmem:[%s7105_s0 + $0x48] ss:$12 sps:$4 sm:$0xff]   ;;  %v4821_v8 = vld [vmem:[%s7105_s0 + $0x60] ss:$12 sps:$4 sm:$0xff]   ;;  %v4822_v10 = vld [vmem:[%s7105_s0 + $0xf8] ss:$12 sps:$4 sm:$0xff]  }
  0x18   :  { %4381 = vmatmul.mubr.msk.bf16.vlgmr.msra.gmra.mxu1 %vm975_vm1, %v4763_v25  ;;  %1103 = vmatprep.subr.bf16.mxu0 %v4766_v26  ;;  %v4882_v6 = vld [vmem:[%s7106_s3 + $0x8] sm:$0xff]   ;;  %v4825_v11 = vld [vmem:[%s7105_s0 + $0x78] ss:$12 sps:$4 sm:$0xff]   ;;  %v4827_v12 = vld [vmem:[%s7105_s0 + $0x94] ss:$12 sps:$4 sm:$0xff]   ;;  %vm3062_vm5 = vcmask 388352  }
  0x19   :  { %2282 = vmatpush1.bf16.msra.mxu1 %v4765_v27  ;;  %1526 = vmatprep.mubr.bf16.mxu1 %v5079_v1  ;;  %v4823_v9 = vld [vmem:[%s7105_s0 + $0x7c] ss:$12 sps:$4 sm:$0xff]   ;;  %v4832_v15 = vld [vmem:[%s7105_s0 + $0xac] ss:$12 sps:$4 sm:$0xff]   ;;  %v4836_v18 = vld [vmem:[%s7105_s0 + $0xc4] ss:$12 sps:$4 sm:$0xff]  }
  0x1a   :  { %2283 = vmatprep.subr.bf16.mxu1 %v5079_v1  ;;  %v4826_v13 = vld [vmem:[%s7105_s0 + $0x110] ss:$12 sps:$4 sm:$0xff]   ;;  %v4830_v16 = vld [vmem:[%s7105_s0 + $0x128] ss:$12 sps:$4 sm:$0xff]   ;;  %v4899_v19 = vld [vmem:[%s7106_s3] sm:$0xff]   ;;  %vm3075_vm6 = vcmask 519552  }
  0x1b   :  { %1104 = vmatpush1.bf16.msra.mxu0 %v4768_v28  ;;  %v4829_v14 = vld [vmem:[%s7105_s0 + $0x90] ss:$12 sps:$4 sm:$0xff]   ;;  %v4834_v17 = vld [vmem:[%s7105_s0 + $0xa8] ss:$12 sps:$4 sm:$0xff]   ;;  %v4835_v20 = vld [vmem:[%s7105_s0 + $0x140] ss:$12 sps:$4 sm:$0xff]  }
  0x1c   :  { %1105 = vmatprep.subr.bf16.mxu0 %v4769_v29  ;;  %v4838_v21 = vld [vmem:[%s7105_s0 + $0xc0] ss:$12 sps:$4 sm:$0xff]   ;;  %v4840_v22 = vld [vmem:[%s7105_s0 + $0xdc] ss:$12 sps:$4 sm:$0xff]   ;;  %v4839_v23 = vld [vmem:[%s7105_s0 + $0x158] ss:$12 sps:$4 sm:$0xff]  }
  0x1d   :  { %2284 = vmatpush1.bf16.msra.mxu1 %v4794_v34  ;;  %v4842_v24 = vld [vmem:[%s7105_s0 + $0xd8] ss:$12 sps:$4 sm:$0xff]   ;;  %v4844_v25 = vld [vmem:[%s7105_s0 + $0xf4] ss:$12 sps:$4 sm:$0xff]   ;;  %v4843_v26 = vld [vmem:[%s7105_s0 + $0x170] ss:$12 sps:$4 sm:$0xff]  }
  0x1e   :  { %2285 = vmatprep.subr.bf16.mxu1 %v5079_v1  ;;  %v4846_v27 = vld [vmem:[%s7105_s0 + $0xf0] ss:$12 sps:$4 sm:$0xff]   ;;  %v4849_v28 = vld [vmem:[%s7105_s0 + $0x10c] ss:$12 sps:$4 sm:$0xff]   ;;  %v4847_v29 = vld [vmem:[%s7105_s0 + $0x188] ss:$12 sps:$4 sm:$0xff]  }
  0x1f   :  { %1106 = vmatpush1.bf16.msra.mxu0 %v4772_v31  ;;  %v4853_v31 = vld [vmem:[%s7105_s0 + $0x124] ss:$12 sps:$4 sm:$0xff]   ;;  %v4855_v34 = vld [vmem:[%s7105_s0 + $0x120] ss:$12 sps:$4 sm:$0xff]   ;;  %vm3088_vm7 = vcmask 650752   ;;  %vm3101_vm8 = vcmask 781952  }
  0x20   :  { %4382 = vmatmul.mubr.msk.bf16.gmra.mxu1 %vm975_vm1, %v4771_v30  ;;  %1107 = vmatprep.subr.bf16.mxu0 %v4773_v32  ;;  %v4851_v30 = vld [vmem:[%s7105_s0 + $0x108] ss:$12 sps:$4 sm:$0xff]   ;;  %v4852_v32 = vld [vmem:[%s7105_s0 + $0x1a0] ss:$12 sps:$4 sm:$0xff]   ;;  %v4860_v39 = vld [vmem:[%s7105_s0 + $0x1d0] ss:$12 sps:$4 sm:$0xff]  }
  0x21   :  { %1536 = vmatprep.mubr.bf16.mxu1 %v5079_v1  ;;  %2286 = vmatpush1.bf16.msra.mxu1 %v4814_v43  ;;  %v4868_v43 = vld [vmem:[%s7105_s0 + $0x168] ss:$12 sps:$4 sm:$0xff]   ;;  %vm3114_vm9 = vcmask 913152   ;;  %vm3127_vm10 = vcmask 1044352   ;;  %vm3909_vm11 = vcmask 523264  }
  0x22   :  { %2287 = vmatprep.subr.bf16.mxu1 %v5079_v1 }
  0x23   :  { %1108 = vmatpush2.bf16.msra.mxu0 %v4775_v33  ;;  %v4916_v33 = vld [vmem:[%s7106_s3 + $0x40] sm:$0xff]  }
  0x24   :  { %1109 = vmatprep.subr.bf16.mxu0 %v4776_v35  ;;  %v4857_v35 = vld [vmem:[%s7105_s0 + $0x13c] ss:$12 sps:$4 sm:$0xff]  }
  0x25   :  { %2288 = vmatpush1.bf16.msra.mxu1 %v4831_v51  ;;  %v4877_v51 = vld [vmem:[%s7105_s0 + $0x230] ss:$12 sps:$4 sm:$0xff]  }
  0x26   :  { %2289 = vmatprep.subr.bf16.mxu1 %v5079_v1 }
  0x27   :  { %1110 = vmatpush2.bf16.msra.mxu0 %v4779_v37  ;;  %v4859_v37 = vld [vmem:[%s7105_s0 + $0x138] ss:$12 sps:$4 sm:$0xff]  }
  0x28   :  { %4383 = vmatmul.mubr.msk.bf16.gmra.mxu1 %vm975_vm1, %v4778_v36  ;;  %1111 = vmatprep.subr.bf16.mxu0 %v4780_v38  ;;  %v4856_v36 = vld [vmem:[%s7105_s0 + $0x1b8] ss:$12 sps:$4 sm:$0xff]   ;;  %v4861_v38 = vld [vmem:[%s7105_s0 + $0x154] ss:$12 sps:$4 sm:$0xff]  }
  0x29   :  { %1546 = vmatprep.mubr.bf16.mxu1 %v5079_v1  ;;  %2290 = vmatpush1.bf16.msra.mxu1 %v4848_v58 }
  0x2a   :  { %2291 = vmatprep.subr.bf16.mxu1 %v5079_v1 }
  0x2b   :  { %1112 = vmatpush2.bf16.msra.mxu0 %v4782_v40  ;;  %v4863_v40 = vld [vmem:[%s7105_s0 + $0x150] ss:$12 sps:$4 sm:$0xff]  }
  0x2c   :  { %1113 = vmatprep.subr.bf16.mxu0 %v4783_v41  ;;  %v4866_v41 = vld [vmem:[%s7105_s0 + $0x16c] ss:$12 sps:$4 sm:$0xff]  }
  0x2d   :  { %2292 = vmatpush1.bf16.msra.mxu1 %v4865_v62  ;;  %v4889_v62 = vld [vmem:[%s7105_s0 + $0x1e0] ss:$12 sps:$4 sm:$0xff]  }
  0x2e   :  { %2293 = vmatprep.subr.bf16.mxu1 %v5079_v1 }
  0x2f   :  { %1114 = vmatpush2.bf16.msra.mxu0 %v4786_v44  ;;  %v4870_v44 = vld [vmem:[%s7105_s0 + $0x184] ss:$12 sps:$4 sm:$0xff]  }
  0x30   :  { %4384 = vmatmul.mubr.msk.bf16.gmra.mxu1 %vm975_vm1, %v4785_v42  ;;  %1115 = vmatprep.subr.bf16.mxu0 %v4787_v45  ;;  %v4864_v42 = vld [vmem:[%s7105_s0 + $0x1e8] ss:$12 sps:$4 sm:$0xff]   ;;  %v4869_v45 = vld [vmem:[%s7105_s0 + $0x200] ss:$12 sps:$4 sm:$0xff]  }
  0x31   :  { %1556 = vmatprep.mubr.bf16.mxu1 %v5079_v1  ;;  %2294 = vmatpush1.bf16.msra.mxu1 %v4882_v6  ;;  %v4893_v6 = vld [vmem:[%s7105_s0 + $0x1f8] ss:$12 sps:$4 sm:$0xff]  }
  0x32   :  { %2295 = vmatprep.subr.bf16.mxu1 %v5079_v1 }
  0x33   :  { %1116 = vmatpush2.bf16.msra.mxu0 %v4789_v46  ;;  %v4872_v46 = vld [vmem:[%s7105_s0 + $0x180] ss:$12 sps:$4 sm:$0xff]  }
  0x34   :  { %1117 = vmatprep.subr.bf16.mxu0 %v4790_v47  ;;  %v4874_v47 = vld [vmem:[%s7105_s0 + $0x19c] ss:$12 sps:$4 sm:$0xff]  }
  0x35   :  { %2296 = vmatpush1.bf16.msra.mxu1 %v4899_v19  ;;  %v4898_v19 = vld [vmem:[%s7105_s0 + $0x2a8] ss:$12 sps:$4 sm:$0xff]  }
  0x36   :  { %2311 = vmatprep.subr.bf16.mxu1 %v5079_v1 }
  0x37   :  { %1118 = vmatpush2.bf16.msra.mxu0 %v4793_v49  ;;  %v4876_v49 = vld [vmem:[%s7105_s0 + $0x198] ss:$12 sps:$4 sm:$0xff]  }
  0x38   :  { %4385 = vmatmul.mubr.msk.bf16.gmra.mxu1 %vm975_vm1, %v4792_v48  ;;  %1119 = vmatprep.subr.bf16.mxu0 %v4795_v50  ;;  %v4873_v48 = vld [vmem:[%s7105_s0 + $0x218] ss:$12 sps:$4 sm:$0xff]   ;;  %v4878_v50 = vld [vmem:[%s7105_s0 + $0x1b4] ss:$12 sps:$4 sm:$0xff]  }
  0x39   :  { %1566 = vmatprep.mubr.bf16.mxu1 %v5079_v1  ;;  %2312 = vmatpush2.bf16.msra.mxu1 %v4916_v33 }
  0x3b   :  { %1120 = vmatpush2.bf16.msra.mxu0 %v4797_v52  ;;  %v4880_v52 = vld [vmem:[%s7105_s0 + $0x1b0] ss:$12 sps:$4 sm:$0xff]  }
  0x3c   :  { %1121 = vmatprep.subr.bf16.mxu0 %v4798_v53  ;;  %v4883_v53 = vld [vmem:[%s7105_s0 + $0x1cc] ss:$12 sps:$4 sm:$0xff]  }
  0x3f   :  { %1122 = vmatpush2.bf16.msra.mxu0 %v4801_v54  ;;  %v4881_v54 = vld [vmem:[%s7105_s0 + $0x248] ss:$12 sps:$4 sm:$0xff]  }
  0x40   :  { %4386 = vmatmul.mubr.msk.bf16.gmra.mxu1 %vm975_vm1, %v4800_v55  ;;  %v4885_v55 = vld [vmem:[%s7105_s0 + $0x1c8] ss:$12 sps:$4 sm:$0xff]  }
  0x41   :  { %1576 = vmatprep.mubr.bf16.mxu1 %v5079_v1 }
  0x42   :  { %1124 = vmatmul.mubr.bf16.vlgmr.msra.gmra.mxu0 %v4802_v56  ;;  %v4887_v56 = vld [vmem:[%s7105_s0 + $0x1e4] ss:$12 sps:$4 sm:$0xff]  }
  0x43   :  { %1133 = vmatprep.mubr.bf16.mxu0 %v4806_v57 }
  0x48   :  { %4387 = vmatmul.mubr.msk.bf16.gmra.mxu1 %vm975_vm1, %v4805_v59 }
  0x49   :  { %1586 = vmatprep.mubr.bf16.mxu1 %v5079_v1 }
  0x4a   :  { %1134 = vmatmul.mubr.bf16.gmra.mxu0 %v4808_v60  ;;  %v4886_v60 = vld [vmem:[%s7105_s0 + $0x260] ss:$12 sps:$4 sm:$0xff]  }
  0x4b   :  { %1143 = vmatprep.mubr.bf16.mxu0 %v4810_v61 }
  0x50   :  { %4388 = vmatmul.mubr.msk.bf16.gmra.mxu1 %vm975_vm1, %v4809_v63  ;;  %v4891_v63 = vld [vmem:[%s7105_s0 + $0x1fc] ss:$12 sps:$4 sm:$0xff]  }
  0x51   :  { %1596 = vmatprep.mubr.bf16.mxu1 %v5079_v1 }
  0x52   :  { %1144 = vmatmul.mubr.bf16.gmra.mxu0 %v4812_v0 }
  0x53   :  { %1153 = vmatprep.mubr.bf16.mxu0 %v4815_v2 }
  0x58   :  { %4389 = vmatmul.mubr.msk.bf16.gmra.mxu1 %vm975_vm1, %v4813_v3 }
  0x59   :  { %1606 = vmatprep.mubr.bf16.mxu1 %v5079_v1 }
  0x5a   :  { %1154 = vmatmul.mubr.bf16.gmra.mxu0 %v4817_v4  ;;  %v4890_v4 = vld [vmem:[%s7105_s0 + $0x278] ss:$12 sps:$4 sm:$0xff]  }
  0x5b   :  { %1163 = vmatprep.mubr.bf16.mxu0 %v4819_v5 }
  0x60   :  { %4390 = vmatmul.mubr.msk.bf16.gmra.mxu1 %vm975_vm1, %v4818_v7  ;;  %v4895_v7 = vld [vmem:[%s7105_s0 + $0x214] ss:$12 sps:$4 sm:$0xff]  }
  0x61   :  { %1616 = vmatprep.mubr.bf16.mxu1 %v5079_v1 }
  0x62   :  { %1164 = vmatmul.mubr.bf16.gmra.mxu0 %v4821_v8 }
  0x63   :  { %1173 = vmatprep.mubr.bf16.mxu0 %v4823_v9 }
  0x68   :  { %4391 = vmatmul.mubr.msk.bf16.gmra.mxu1 %vm975_vm1, %v4822_v10 }
  0x69   :  { %1626 = vmatprep.mubr.bf16.mxu1 %v5079_v1 }
  0x6a   :  { %1174 = vmatmul.mubr.bf16.gmra.mxu0 %v4825_v11  ;;  %v4894_v11 = vld [vmem:[%s7105_s0 + $0x290] ss:$12 sps:$4 sm:$0xff]  }
  0x6b   :  { %1183 = vmatprep.mubr.bf16.mxu0 %v4827_v12 }
  0x70   :  { %4392 = vmatmul.mubr.msk.bf16.gmra.mxu1 %vm975_vm1, %v4826_v13  ;;  %v4897_v13 = vld [vmem:[%s7105_s0 + $0x210] ss:$12 sps:$4 sm:$0xff]  }
  0x71   :  { %1636 = vmatprep.mubr.bf16.mxu1 %v5079_v1 }
  0x72   :  { %1184 = vmatmul.mubr.bf16.gmra.mxu0 %v4829_v14  ;;  %v4900_v14 = vld [vmem:[%s7105_s0 + $0x22c] ss:$12 sps:$4 sm:$0xff]  }
  0x73   :  { %1193 = vmatprep.mubr.bf16.mxu0 %v4832_v15 }
  0x78   :  { %4393 = vmatmul.mubr.msk.bf16.gmra.mxu1 %vm975_vm1, %v4830_v16 }
  0x79   :  { %1646 = vmatprep.mubr.bf16.mxu1 %v5079_v1 }
  0x7a   :  { %1194 = vmatmul.mubr.bf16.gmra.mxu0 %v4834_v17  ;;  %v220_v17 = vlaneseq }
  0x7b   :  { %1203 = vmatprep.mubr.bf16.mxu0 %v4836_v18 }
  0x80   :  { %4394 = vmatmul.mubr.msk.bf16.gmra.mxu1 %vm975_vm1, %v4835_v20 }
  0x81   :  { %1656 = vmatprep.mubr.bf16.mxu1 %v5079_v1 }
  0x82   :  { %1204 = vmatmul.mubr.bf16.gmra.mxu0 %v4838_v21  ;;  %v4902_v21 = vld [vmem:[%s7105_s0 + $0x228] ss:$12 sps:$4 sm:$0xff]  }
  0x83   :  { %1213 = vmatprep.mubr.bf16.mxu0 %v4840_v22  ;;  %v4904_v22 = vld [vmem:[%s7105_s0 + $0x244] ss:$12 sps:$4 sm:$0xff]  }
  0x88   :  { %4395 = vmatmul.mubr.msk.bf16.gmra.mxu1 %vm975_vm1, %v4839_v23  ;;  %v5619_v23 = vshrl.u32 %v220_v17, 7 }
  0x89   :  { %1666 = vmatprep.mubr.bf16.mxu1 %v5079_v1 }
  0x8a   :  { %1214 = vmatmul.mubr.bf16.gmra.mxu0 %v4842_v24 }
  0x8b   :  { %1223 = vmatprep.mubr.bf16.mxu0 %v4844_v25 }
  0x90   :  { %4396 = vmatmul.mubr.msk.bf16.gmra.mxu1 %vm975_vm1, %v4843_v26  ;;  %v222_v26 = vsub.s32 0, %v5619_v23 }
  0x91   :  { %1676 = vmatprep.mubr.bf16.mxu1 %v5079_v1 }
  0x92   :  { %1224 = vmatmul.mubr.bf16.gmra.mxu0 %v4846_v27 }
  0x93   :  { %1233 = vmatprep.mubr.bf16.mxu0 %v4849_v28  ;;  %v4903_v28 = vld [vmem:[%s7105_s0 + $0x2c0] ss:$12 sps:$4 sm:$0xff]  }
  0x98   :  { %4397 = vmatmul.mubr.msk.bf16.gmra.mxu1 %vm975_vm1, %v4847_v29  ;;  %v218_v29 = vld [vmem:[%s7107_s2] sm:$0x3] }
  0x99   :  { %1686 = vmatprep.mubr.bf16.mxu1 %v5079_v1  ;;  %v5644_v33 = vrot.slane %v218_v29, %v222_v26 }
  0x9a   :  { %1234 = vmatmul.mubr.bf16.gmra.mxu0 %v4851_v30  ;;  %v226_v30 = vsub.s32 1, %v5619_v23 }
  0x9b   :  { %1243 = vmatprep.mubr.bf16.mxu0 %v4853_v31 }
  0xa0   :  { %4398 = vmatmul.mubr.msk.bf16.gmra.mxu1 %vm975_vm1, %v4852_v32  ;;  %v4906_v32 = vld [vmem:[%s7105_s0 + $0x240] ss:$12 sps:$4 sm:$0xff]  }
  0xa1   :  { %1696 = vmatprep.mubr.bf16.mxu1 %v5079_v1 }
  0xa2   :  { %1244 = vmatmul.mubr.bf16.gmra.mxu0 %v4855_v34  ;;  %v4908_v34 = vld [vmem:[%s7105_s0 + $0x25c] ss:$12 sps:$4 sm:$0xff]  }
  0xa3   :  { %1253 = vmatprep.mubr.bf16.mxu0 %v4857_v35 }
  0xa8   :  { %4399 = vmatmul.mubr.msk.bf16.gmra.mxu1 %vm975_vm1, %v4856_v36  ;;  %v5654_v36 = vrot.slane %v218_v29, %v226_v30 }
  0xa9   :  { %1706 = vmatprep.mubr.bf16.mxu1 %v5079_v1 }
  0xaa   :  { %1254 = vmatmul.mubr.bf16.gmra.mxu0 %v4859_v37 }
  0xab   :  { %1263 = vmatprep.mubr.bf16.mxu0 %v4861_v38 }
  0xb0   :  { %4400 = vmatmul.mubr.msk.bf16.gmra.mxu1 %vm975_vm1, %v4860_v39 }
  0xb1   :  { %1716 = vmatprep.mubr.bf16.mxu1 %v5079_v1 }
  0xb2   :  { %1264 = vmatmul.mubr.bf16.gmra.mxu0 %v4863_v40 }
  0xb3   :  { %1273 = vmatprep.mubr.bf16.mxu0 %v4866_v41 }
  0xb8   :  { %4401 = vmatmul.mubr.msk.bf16.gmra.mxu1 %vm975_vm1, %v4864_v42  ;;  %v4907_v42 = vld [vmem:[%s7105_s0 + $0x2d8] ss:$12 sps:$4 sm:$0xff]  }
  0xb9   :  { %1726 = vmatprep.mubr.bf16.mxu1 %v5079_v1 }
  0xba   :  { %1274 = vmatmul.mubr.bf16.gmra.mxu0 %v4868_v43 }
  0xbb   :  { %1283 = vmatprep.mubr.bf16.mxu0 %v4870_v44 }
  0xc0   :  { %4402 = vmatmul.mubr.msk.bf16.gmra.mxu1 %vm975_vm1, %v4869_v45 }
  0xc1   :  { %1736 = vmatprep.mubr.bf16.mxu1 %v5079_v1 }
  0xc2   :  { %1284 = vmatmul.mubr.bf16.gmra.mxu0 %v4872_v46  ;;  %v4910_v46 = vld [vmem:[%s7105_s0 + $0x258] ss:$12 sps:$4 sm:$0xff]  }
  0xc3   :  { %1293 = vmatprep.mubr.bf16.mxu0 %v4874_v47 }
  0xc8   :  { %4403 = vmatmul.mubr.msk.bf16.gmra.mxu1 %vm975_vm1, %v4873_v48 }
  0xc9   :  { %1746 = vmatprep.mubr.bf16.mxu1 %v5079_v1 }
  0xca   :  { %1294 = vmatmul.mubr.bf16.gmra.mxu0 %v4876_v49  ;;  %v4912_v49 = vld [vmem:[%s7105_s0 + $0x274] ss:$12 sps:$4 sm:$0xff]  }
  0xcb   :  { %1303 = vmatprep.mubr.bf16.mxu0 %v4878_v50 }
  0xd0   :  { %4404 = vmatmul.mubr.msk.bf16.gmra.mxu1 %vm975_vm1, %v4877_v51 }
  0xd1   :  { %1756 = vmatprep.mubr.bf16.mxu1 %v5079_v1 }
  0xd2   :  { %1304 = vmatmul.mubr.bf16.gmra.mxu0 %v4880_v52 }
  0xd3   :  { %1313 = vmatprep.mubr.bf16.mxu0 %v4883_v53 }
  0xd8   :  { %v5543_v57 = vpop.f32.mrf.mxu1  ;;  %4405 = vmatmul.mubr.msk.bf16.gmra.mxu1 %vm975_vm1, %v4881_v54 }
  0xd9   :  { %1766 = vmatprep.mubr.bf16.mxu1 %v5079_v1 }
  0xda   :  { %v5547_v58 = vpop.f32.mrf.mxu1  ;;  %1314 = vmatmul.mubr.bf16.gmra.mxu0 %v4885_v55 }
  0xdb   :  { %1323 = vmatprep.mubr.bf16.mxu0 %v4887_v56 }
  0xdc   :  { %v5549_v59 = vpop.f32.mrf.mxu1 }
  0xde   :  { %v5554_v61 = vpop.f32.mrf.mxu1 }
  0xe0   :  { %v5562_v0 = vpop.f32.mrf.mxu1  ;;  %4406 = vmatmul.mubr.msk.bf16.gmra.mxu1 %vm975_vm1, %v4886_v60 }
  0xe1   :  { %1776 = vmatprep.mubr.bf16.mxu1 %v5079_v1 }
  0xe2   :  { %v5566_v2 = vpop.f32.mrf.mxu1  ;;  %1324 = vmatmul.mubr.bf16.gmra.mxu0 %v4889_v62 }
  0xe3   :  { %1333 = vmatprep.mubr.bf16.mxu0 %v4891_v63 }
  0xe4   :  { %v5568_v3 = vpop.f32.mrf.mxu1 }
  0xe6   :  { %v5573_v5 = vpop.f32.mrf.mxu1 }
  0xe8   :  { %v5581_v8 = vpop.f32.mrf.mxu1  ;;  %4407 = vmatmul.mubr.msk.bf16.gmra.mxu1 %vm975_vm1, %v4890_v4 }
  0xe9   :  { %1786 = vmatprep.mubr.bf16.mxu1 %v5079_v1 }
  0xea   :  { %v5585_v9 = vpop.f32.mrf.mxu1  ;;  %1334 = vmatmul.mubr.bf16.gmra.mxu0 %v4893_v6 }
  0xeb   :  { %1343 = vmatprep.mubr.bf16.mxu0 %v4895_v7 }
  0xec   :  { %v5587_v10 = vpop.f32.mrf.mxu1 }
  0xee   :  { %v5592_v12 = vpop.f32.mrf.mxu1 }
  0xf0   :  { %v5600_v15 = vpop.f32.mrf.mxu1  ;;  %4408 = vmatmul.mubr.msk.bf16.gmra.mxu1 %vm975_vm1, %v4894_v11 }
  0xf1   :  { %1796 = vmatprep.mubr.bf16.mxu1 %v5079_v1 }
  0xf2   :  { %v5604_v16 = vpop.f32.mrf.mxu1  ;;  %1344 = vmatmul.mubr.bf16.gmra.mxu0 %v4897_v13 }
  0xf3   :  { %1353 = vmatprep.mubr.bf16.mxu0 %v4900_v14 }
  0xf4   :  { %v5606_v18 = vpop.f32.mrf.mxu1 }
  0xf6   :  { %v5611_v20 = vpop.f32.mrf.mxu1 }
  0xf8   :  { %v5621_v24 = vpop.f32.mrf.mxu1  ;;  %4409 = vmatmul.mubr.msk.bf16.gmra.mxu1 %vm975_vm1, %v4898_v19 }
  0xf9   :  { %1806 = vmatprep.mubr.bf16.mxu1 %v5079_v1 }
  0xfa   :  { %v5625_v25 = vpop.f32.mrf.mxu1  ;;  %1354 = vmatmul.mubr.bf16.gmra.mxu0 %v4902_v21 }
  0xfb   :  { %1363 = vmatprep.mubr.bf16.mxu0 %v4904_v22 }
  0xfc   :  { %v5628_v27 = vpop.f32.mrf.mxu1 }
  0xfe   :  { %v5637_v31 = vpop.f32.mrf.mxu1 }
 0x100   :  { %v5649_v35 = vpop.f32.mrf.mxu1  ;;  %4410 = vmatmul.mubr.msk.bf16.gmra.mxu1 %vm975_vm1, %v4903_v28  ;;  %v4917_v28 = vld [vmem:[%s7105_s0 + $0x28c] ss:$12 sps:$4 sm:$0xff]  }
 0x101   :  { %1816 = vmatprep.mubr.bf16.mxu1 %v5079_v1 }
 0x102   :  { %v5657_v37 = vpop.f32.mrf.mxu1  ;;  %v1125_v38 = vpop.f32.mrf.mxu0  ;;  %1364 = vmatmul.mubr.bf16.gmra.mxu0 %v4906_v32 }
 0x103   :  { %v1126_v39 = vadd.f32 %v1125_v38, %v5644_v33  ;;  %1373 = vmatprep.mubr.bf16.mxu0 %v4908_v34 }
 0x104   :  { %v5660_v40 = vpop.f32.mrf.mxu1  ;;  %v1127_v41 = vpop.f32.mrf.mxu0 }
 0x105   :  { %v1128_v43 = vadd.f32 %v1127_v41, %v5654_v36  ;;  %v1519_v47 = vadd.f32 %v5543_v57, %v1126_v39 }
 0x106   :  { %v5666_v44 = vpop.f32.mrf.mxu1  ;;  %v1129_v45 = vpop.f32.mrf.mxu0 }
 0x107   :  { %v1130_v48 = vadd.f32 %v1129_v45, %v5644_v33  ;;  %v1521_v52 = vadd.f32 %v5547_v58, %v1128_v43  ;;  %v1877_v57 = vmax.f32 %v1519_v47, 0.0 }
 0x108   :  { %v5676_v50 = vpop.f32.mrf.mxu1  ;;  %4411 = vmatmul.mubr.msk.bf16.gmra.mxu1 %vm975_vm1, %v4907_v42  ;;  %v1131_v51 = vpop.f32.mrf.mxu0 }
 0x109   :  { %v1523_v53 = vadd.f32 %v5549_v59, %v1130_v48  ;;  %v1132_v54 = vadd.f32 %v1131_v51, %v5654_v36  ;;  %1826 = vmatprep.mubr.bf16.mxu1 %v5079_v1  ;;  %v4911_v59 = vld [vmem:[%s7105_s0 + $0x2f0] ss:$12 sps:$4 sm:$0xff]   ;;  %v1878_v6 = vmax.f32 %v1521_v52, 0.0 }
 0x10a   :  { %v5683_v55 = vpop.f32.mrf.mxu1  ;;  %v1135_v56 = vpop.f32.mrf.mxu0  ;;  %1374 = vmatmul.mubr.bf16.gmra.mxu0 %v4910_v46 }
 0x10b   :  { %v1879_v60 = vmax.f32 %v1523_v53, 0.0  ;;  %v1525_v62 = vadd.f32 %v5554_v61, %v1132_v54  ;;  %v1136_v63 = vadd.f32 %v1135_v56, %v5644_v33  ;;  %1383 = vmatprep.mubr.bf16.mxu0 %v4912_v49  ;;  %v4914_v61 = vld [vmem:[%s7105_s0 + $0x270] ss:$12 sps:$4 sm:$0xff]  }
 0x10c   :  { %v5687_v4 = vpop.f32.mrf.mxu1  ;;  %v1137_v58 = vpop.f32.mrf.mxu0 }
 0x10d   :  { %v5692_v7 = vpack.c.bf16 %v1879_v60, %v1877_v57  ;;  %v1880_v11 = vmax.f32 %v1525_v62, 0.0  ;;  %v1138_v13 = vadd.f32 %v1137_v58, %v5654_v36  ;;  %v1529_v21 = vadd.f32 %v5562_v0, %v1136_v63  ;;  %v4923_v62 = vld [vmem:[%s7105_s0 + $0x2a4] ss:$12 sps:$4 sm:$0xff]  }
 0x10e   :  { %v5695_v14 = vpop.f32.mrf.mxu1  ;;  %v1139_v17 = vpop.f32.mrf.mxu0 }
 0x10f   :  { %v5700_v19 = vpack.c.bf16 %v1880_v11, %v1878_v6  ;;  %v1140_v22 = vadd.f32 %v1139_v17, %v5644_v33  ;;  %v1531_v34 = vadd.f32 %v5566_v2, %v1138_v13  ;;  %v1881_v42 = vmax.f32 %v1529_v21, 0.0 }
 0x110   :  { %v5707_v29 = vpop.f32.mrf.mxu1  ;;  %4412 = vmatmul.mubr.msk.bf16.gmra.mxu1 %vm975_vm1, %v4911_v59  ;;  %v1141_v32 = vpop.f32.mrf.mxu0 }
 0x111   :  { %v1533_v38 = vadd.f32 %v5568_v3, %v1140_v22  ;;  %v1142_v39 = vadd.f32 %v1141_v32, %v5654_v36  ;;  %1836 = vmatprep.mubr.bf16.mxu1 %v5079_v1  ;;  %v4915_v3 = vld [vmem:[%s7105_s0 + $0x308] ss:$12 sps:$4 sm:$0xff]   ;;  %v1882_v48 = vmax.f32 %v1531_v34, 0.0 }
 0x112   :  { %v5714_v0 = vpop.f32.mrf.mxu1  ;;  %v1145_v41 = vpop.f32.mrf.mxu0  ;;  %1384 = vmatmul.mubr.bf16.gmra.mxu0 %v4914_v61 }
 0x113   :  { %v1883_v43 = vmax.f32 %v1533_v38, 0.0  ;;  %v1535_v45 = vadd.f32 %v5573_v5, %v1142_v39  ;;  %v1146_v46 = vadd.f32 %v1145_v41, %v5644_v33  ;;  %1393 = vmatprep.mubr.bf16.mxu0 %v4917_v28  ;;  %v4919_v5 = vld [vmem:[%s7105_s0 + $0x288] ss:$12 sps:$4 sm:$0xff]  }
 0x114   :  { %v5718_v47 = vpop.f32.mrf.mxu1  ;;  %v1147_v2 = vpop.f32.mrf.mxu0 }
 0x115   :  { %v5723_v49 = vpack.c.bf16 %v1883_v43, %v1881_v42  ;;  %v1884_v51 = vmax.f32 %v1535_v45, 0.0  ;;  %v1148_v52 = vadd.f32 %v1147_v2, %v5654_v36  ;;  %v1539_v57 = vadd.f32 %v5581_v8, %v1146_v46  ;;  %v4927_v2 = vld [vmem:[%s7105_s0 + $0x2bc] ss:$12 sps:$4 sm:$0xff]  }
 0x116   :  { %v5726_v53 = vpop.f32.mrf.mxu1  ;;  %v1149_v54 = vpop.f32.mrf.mxu0 }
 0x117   :  { %v5731_v56 = vpack.c.bf16 %v1884_v51, %v1882_v48  ;;  %v1150_v60 = vadd.f32 %v1149_v54, %v5644_v33  ;;  %v1541_v59 = vadd.f32 %v5585_v9, %v1148_v52  ;;  %v1885_v17 = vmax.f32 %v1539_v57, 0.0 }
 0x118   :  { %v5738_v63 = vpop.f32.mrf.mxu1  ;;  %4413 = vmatmul.mubr.msk.bf16.gmra.mxu1 %vm975_vm1, %v4915_v3  ;;  %v1151_v58 = vpop.f32.mrf.mxu0 }
 0x119   :  { %v1543_v6 = vadd.f32 %v5587_v10, %v1150_v60  ;;  %v1152_v11 = vadd.f32 %v1151_v58, %v5654_v36  ;;  %1846 = vmatprep.mubr.bf16.mxu1 %v5079_v1  ;;  %v4920_v10 = vld [vmem:[%s7105_s0 + $0x320] ss:$12 sps:$4 sm:$0xff]   ;;  %v1886_v32 = vmax.f32 %v1541_v59, 0.0 }
 0x11a   :  { %v5745_v8 = vpop.f32.mrf.mxu1  ;;  %v1155_v13 = vpop.f32.mrf.mxu0  ;;  %1394 = vmatmul.mubr.bf16.gmra.mxu0 %v4919_v5 }
 0x11b   :  { %v1887_v61 = vmax.f32 %v1543_v6, 0.0  ;;  %v1545_v21 = vadd.f32 %v5592_v12, %v1152_v11  ;;  %v1156_v22 = vadd.f32 %v1155_v13, %v5644_v33  ;;  %1403 = vmatprep.mubr.bf16.mxu0 %v4923_v62  ;;  %v4921_v12 = vld [vmem:[%s7105_s0 + $0x2a0] ss:$12 sps:$4 sm:$0xff]  }
 0x11c   :  { %v5749_v28 = vpop.f32.mrf.mxu1  ;;  %v1157_v9 = vpop.f32.mrf.mxu0 }
 0x11d   :  { %v5754_v34 = vpack.c.bf16 %v1887_v61, %v1885_v17  ;;  %v1888_v38 = vmax.f32 %v1545_v21, 0.0  ;;  %v1158_v39 = vadd.f32 %v1157_v9, %v5654_v36  ;;  %v1549_v45 = vadd.f32 %v5600_v15, %v1156_v22 }
 0x11e   :  { %v5757_v41 = vpop.f32.mrf.mxu1  ;;  %v1159_v42 = vpop.f32.mrf.mxu0 }
 0x11f   :  { %v5762_v43 = vpack.c.bf16 %v1888_v38, %v1886_v32  ;;  %v1160_v46 = vadd.f32 %v1159_v42, %v5644_v33  ;;  %v1551_v51 = vadd.f32 %v5604_v16, %v1158_v39  ;;  %v1889_v57 = vmax.f32 %v1549_v45, 0.0  ;;  %v4931_v32 = vld [vmem:[%s7105_s0 + $0x2d4] ss:$12 sps:$4 sm:$0xff]  }
 0x120   :  { %v5769_v3 = vpop.f32.mrf.mxu1  ;;  %4414 = vmatmul.mubr.msk.bf16.gmra.mxu1 %vm975_vm1, %v4920_v10  ;;  %v1161_v48 = vpop.f32.mrf.mxu0 }
 0x121   :  { %v1553_v52 = vadd.f32 %v5606_v18, %v1160_v46  ;;  %v1162_v54 = vadd.f32 %v1161_v48, %v5654_v36  ;;  %1856 = vmatprep.mubr.bf16.mxu1 %v5079_v1  ;;  %v4924_v18 = vld [vmem:[%s7105_s0 + $0x338] ss:$12 sps:$4 sm:$0xff]   ;;  %v1890_v6 = vmax.f32 %v1551_v51, 0.0 }
 0x122   :  { %v5776_v15 = vpop.f32.mrf.mxu1  ;;  %v1165_v5 = vpop.f32.mrf.mxu0  ;;  %1404 = vmatmul.mubr.bf16.gmra.mxu0 %v4921_v12 }
 0x123   :  { %v1891_v60 = vmax.f32 %v1553_v52, 0.0  ;;  %v1555_v62 = vadd.f32 %v5611_v20, %v1162_v54  ;;  %v1166_v58 = vadd.f32 %v1165_v5, %v5644_v33  ;;  %1413 = vmatprep.mubr.bf16.mxu0 %v4927_v2  ;;  %v4925_v20 = vld [vmem:[%s7105_s0 + $0x2b8] ss:$12 sps:$4 sm:$0xff]  }
 0x124   :  { %v5780_v59 = vpop.f32.mrf.mxu1  ;;  %v1167_v16 = vpop.f32.mrf.mxu0 }
 0x125   :  { %v5785_v11 = vpack.c.bf16 %v1891_v60, %v1889_v57  ;;  %v1892_v13 = vmax.f32 %v1555_v62, 0.0  ;;  %v1168_v17 = vadd.f32 %v1167_v16, %v5654_v36  ;;  %v1559_v9 = vadd.f32 %v5621_v24, %v1166_v58 }
 0x126   :  { %v5788_v61 = vpop.f32.mrf.mxu1  ;;  %v1169_v21 = vpop.f32.mrf.mxu0 }
 0x127   :  { %v5793_v22 = vpack.c.bf16 %v1892_v13, %v1890_v6  ;;  %v1170_v10 = vadd.f32 %v1169_v21, %v5644_v33  ;;  %v1561_v42 = vadd.f32 %v5625_v25, %v1168_v17  ;;  %v1893_v2 = vmax.f32 %v1559_v9, 0.0  ;;  %v4934_v17 = vld [vmem:[%s7105_s0 + $0x2ec] ss:$12 sps:$4 sm:$0xff]  }
 0x128   :  { %v5800_v38 = vpop.f32.mrf.mxu1  ;;  %4415 = vmatmul.mubr.msk.bf16.gmra.mxu1 %vm975_vm1, %v4924_v18  ;;  %v1171_v39 = vpop.f32.mrf.mxu0 }
 0x129   :  { %v1563_v12 = vadd.f32 %v5628_v27, %v1170_v10  ;;  %v1172_v45 = vadd.f32 %v1171_v39, %v5654_v36  ;;  %1866 = vmatprep.mubr.bf16.mxu1 %v5079_v1  ;;  %v4928_v27 = vld [vmem:[%s7105_s0 + $0x350] ss:$12 sps:$4 sm:$0xff]   ;;  %v1894_v5 = vmax.f32 %v1561_v42, 0.0 }
 0x12a   :  { %v5807_v24 = vpop.f32.mrf.mxu1  ;;  %v1175_v46 = vpop.f32.mrf.mxu0  ;;  %1414 = vmatmul.mubr.bf16.gmra.mxu0 %v4925_v20 }
 0x12b   :  { %v1895_v48 = vmax.f32 %v1563_v12, 0.0  ;;  %v1565_v51 = vadd.f32 %v5637_v31, %v1172_v45  ;;  %v1176_v52 = vadd.f32 %v1175_v46, %v5644_v33  ;;  %1423 = vmatprep.mubr.bf16.mxu0 %v4931_v32  ;;  %v4929_v31 = vld [vmem:[%s7105_s0 + $0x2d0] ss:$12 sps:$4 sm:$0xff]  }
 0x12c   :  { %v5811_v54 = vpop.f32.mrf.mxu1  ;;  %v1177_v25 = vpop.f32.mrf.mxu0 }
 0x12d   :  { %v5816_v57 = vpack.c.bf16 %v1895_v48, %v1893_v2  ;;  %v1896_v60 = vmax.f32 %v1565_v51, 0.0  ;;  %v1178_v62 = vadd.f32 %v1177_v25, %v5654_v36  ;;  %v1569_v6 = vadd.f32 %v5649_v35, %v1176_v52 }
 0x12e   :  { %v5819_v58 = vpop.f32.mrf.mxu1  ;;  %v1179_v16 = vpop.f32.mrf.mxu0 }
 0x12f   :  { %v5824_v18 = vpack.c.bf16 %v1896_v60, %v1894_v5  ;;  %v1180_v13 = vadd.f32 %v1179_v16, %v5644_v33  ;;  %v1571_v9 = vadd.f32 %v5657_v37, %v1178_v62  ;;  %v1897_v42 = vmax.f32 %v1569_v6, 0.0  ;;  %v4937_v62 = vld [vmem:[%s7105_s0 + $0x304] ss:$12 sps:$4 sm:$0xff]  }
 0x130   :  { %v5831_v21 = vpop.f32.mrf.mxu1  ;;  %4416 = vmatmul.mubr.msk.bf16.gmra.mxu1 %vm975_vm1, %v4928_v27  ;;  %v1181_v20 = vpop.f32.mrf.mxu0  ;;  %v4932_v27 = vld [vmem:[%s7105_s0 + $0x2e8] ss:$12 sps:$4 sm:$0xff]  }
 0x131   :  { %v1573_v10 = vadd.f32 %v5660_v40, %v1180_v13  ;;  %4427 = vmatprep.mubr.msk.bf16.mxu1 %vm2172_vm2, %v5700_v19  ;;  %v1182_v35 = vadd.f32 %v1181_v20, %v5654_v36  ;;  %v1898_v40 = vmax.f32 %v1571_v9, 0.0 }
 0x132   :  { %v5839_v32 = vpop.f32.mrf.mxu1  ;;  %v1185_v39 = vpop.f32.mrf.mxu0  ;;  %1424 = vmatmul.mubr.bf16.gmra.mxu0 %v4929_v31 }
 0x133   :  { %v1899_v12 = vmax.f32 %v1573_v10, 0.0  ;;  %v1575_v45 = vadd.f32 %v5666_v44, %v1182_v35  ;;  %v1186_v46 = vadd.f32 %v1185_v39, %v5644_v33  ;;  %1433 = vmatprep.mubr.bf16.mxu0 %v4934_v17 }
 0x134   :  { %v5843_v2 = vpop.f32.mrf.mxu1  ;;  %v1187_v37 = vpop.f32.mrf.mxu0 }
 0x135   :  { %v5845_v48 = vpack.c.bf16 %v1899_v12, %v1897_v42  ;;  %v1900_v19 = vmax.f32 %v1575_v45, 0.0  ;;  %v1188_v51 = vadd.f32 %v1187_v37, %v5654_v36  ;;  %v1579_v5 = vadd.f32 %v5676_v50, %v1186_v46  ;;  %v4935_v37 = vld [vmem:[%s7105_s0 + $0x300] ss:$12 sps:$4 sm:$0xff]  }
 0x136   :  { %v5848_v52 = vpop.f32.mrf.mxu1  ;;  %v1189_v25 = vpop.f32.mrf.mxu0 }
 0x137   :  { %v5853_v44 = vpack.c.bf16 %v1900_v19, %v1898_v40  ;;  %v1190_v60 = vadd.f32 %v1189_v25, %v5644_v33  ;;  %v1581_v6 = vadd.f32 %v5683_v55, %v1188_v51  ;;  %v1901_v9 = vmax.f32 %v1579_v5, 0.0  ;;  %v4940_v51 = vld [vmem:[%s7105_s0 + $0x31c] ss:$12 sps:$4 sm:$0xff]  }
 0x138   :  { %v5860_v16 = vpop.f32.mrf.mxu1  ;;  %2314 = vmatmul.mubr.bf16.vlgmr.msra.gmra.mxu1 %v5692_v7  ;;  %v1191_v31 = vpop.f32.mrf.mxu0 }
 0x139   :  { %v1583_v13 = vadd.f32 %v5687_v4, %v1190_v60  ;;  %4428 = vmatprep.mubr.msk.bf16.mxu1 %vm2172_vm2, %v5731_v56  ;;  %v1192_v50 = vadd.f32 %v1191_v31, %v5654_v36  ;;  %v1902_v4 = vmax.f32 %v1581_v6, 0.0 }
 0x13a   :  { %v5868_v17 = vpop.f32.mrf.mxu1  ;;  %v1195_v20 = vpop.f32.mrf.mxu0  ;;  %1434 = vmatmul.mubr.bf16.gmra.mxu0 %v4932_v27 }
 0x13b   :  { %v1903_v10 = vmax.f32 %v1583_v13, 0.0  ;;  %v1585_v35 = vadd.f32 %v5695_v14, %v1192_v50  ;;  %v1196_v7 = vadd.f32 %v1195_v20, %v5644_v33  ;;  %1443 = vmatprep.mubr.bf16.mxu0 %v4937_v62 }
 0x13c   :  { %v5872_v39 = vpop.f32.mrf.mxu1  ;;  %v1197_v55 = vpop.f32.mrf.mxu0 }
 0x13d   :  { %v5874_v42 = vpack.c.bf16 %v1903_v10, %v1901_v9  ;;  %v1904_v56 = vmax.f32 %v1585_v35, 0.0  ;;  %v1198_v12 = vadd.f32 %v1197_v55, %v5654_v36  ;;  %v1589_v40 = vadd.f32 %v5707_v29, %v1196_v7  ;;  %v4938_v55 = vld [vmem:[%s7105_s0 + $0x318] ss:$12 sps:$4 sm:$0xff]  }
 0x13e   :  { %v5877_v45 = vpop.f32.mrf.mxu1  ;;  %v1199_v46 = vpop.f32.mrf.mxu0 }
 0x13f   :  { %v5882_v14 = vpack.c.bf16 %v1904_v56, %v1902_v4  ;;  %v1200_v19 = vadd.f32 %v1199_v46, %v5644_v33  ;;  %v1591_v5 = vadd.f32 %v5714_v0, %v1198_v12  ;;  %v1905_v6 = vmax.f32 %v1589_v40, 0.0  ;;  %v4943_v12 = vld [vmem:[%s7105_s0 + $0x334] ss:$12 sps:$4 sm:$0xff]  }
 0x140   :  { %v5889_v25 = vpop.f32.mrf.mxu1  ;;  %2322 = vmatmul.mubr.bf16.gmra.mxu1 %v5723_v49  ;;  %v1201_v27 = vpop.f32.mrf.mxu0 }
 0x141   :  { %v1593_v60 = vadd.f32 %v5718_v47, %v1200_v19  ;;  %4429 = vmatprep.mubr.msk.bf16.mxu1 %vm2172_vm2, %v5762_v43  ;;  %v1202_v29 = vadd.f32 %v1201_v27, %v5654_v36  ;;  %v1906_v47 = vmax.f32 %v1591_v5, 0.0 }
 0x142   :  { %v5897_v62 = vpop.f32.mrf.mxu1  ;;  %v1205_v31 = vpop.f32.mrf.mxu0  ;;  %1444 = vmatmul.mubr.bf16.gmra.mxu0 %v4935_v37 }
 0x143   :  { %v1907_v13 = vmax.f32 %v1593_v60, 0.0  ;;  %v1595_v50 = vadd.f32 %v5726_v53, %v1202_v29  ;;  %v1206_v49 = vadd.f32 %v1205_v31, %v5644_v33  ;;  %1453 = vmatprep.mubr.bf16.mxu0 %v4940_v51 }
 0x144   :  { %v5901_v20 = vpop.f32.mrf.mxu1  ;;  %v1207_v0 = vpop.f32.mrf.mxu0 }
 0x145   :  { %v5903_v9 = vpack.c.bf16 %v1907_v13, %v1905_v6  ;;  %v1908_v43 = vmax.f32 %v1595_v50, 0.0  ;;  %v1208_v10 = vadd.f32 %v1207_v0, %v5654_v36  ;;  %v1599_v4 = vadd.f32 %v5738_v63, %v1206_v49  ;;  %v4941_v0 = vld [vmem:[%s7105_s0 + $0x330] ss:$12 sps:$4 sm:$0xff]  }
 0x146   :  { %v5906_v35 = vpop.f32.mrf.mxu1  ;;  %v1209_v7 = vpop.f32.mrf.mxu0 }
 0x147   :  { %v5911_v53 = vpack.c.bf16 %v1908_v43, %v1906_v47  ;;  %v1210_v56 = vadd.f32 %v1209_v7, %v5644_v33  ;;  %v1601_v40 = vadd.f32 %v5745_v8, %v1208_v10  ;;  %v1909_v5 = vmax.f32 %v1599_v4, 0.0  ;;  %v4946_v10 = vld [vmem:[%s7105_s0 + $0x34c] ss:$12 sps:$4 sm:$0xff]  }
 0x148   :  { %v5918_v46 = vpop.f32.mrf.mxu1  ;;  %2330 = vmatmul.mubr.bf16.gmra.mxu1 %v5754_v34  ;;  %v1211_v37 = vpop.f32.mrf.mxu0 }
 0x149   :  { %v1603_v19 = vadd.f32 %v5749_v28, %v1210_v56  ;;  %4430 = vmatprep.mubr.msk.bf16.mxu1 %vm2172_vm2, %v5793_v22  ;;  %v1212_v63 = vadd.f32 %v1211_v37, %v5654_v36  ;;  %v1910_v28 = vmax.f32 %v1601_v40, 0.0 }
 0x14a   :  { %v5926_v51 = vpop.f32.mrf.mxu1  ;;  %v1215_v27 = vpop.f32.mrf.mxu0  ;;  %1454 = vmatmul.mubr.bf16.gmra.mxu0 %v4938_v55 }
 0x14b   :  { %v1911_v60 = vmax.f32 %v1603_v19, 0.0  ;;  %v1605_v29 = vadd.f32 %v5757_v41, %v1212_v63  ;;  %v1216_v34 = vadd.f32 %v1215_v27, %v5644_v33  ;;  %1463 = vmatprep.mubr.bf16.mxu0 %v4943_v12 }
 0x14c   :  { %v5930_v31 = vpop.f32.mrf.mxu1  ;;  %v1217_v8 = vpop.f32.mrf.mxu0 }
 0x14d   :  { %v5932_v6 = vpack.c.bf16 %v1911_v60, %v1909_v5  ;;  %v1912_v22 = vmax.f32 %v1605_v29, 0.0  ;;  %v1218_v13 = vadd.f32 %v1217_v8, %v5654_v36  ;;  %v1609_v47 = vadd.f32 %v5769_v3, %v1216_v34  ;;  %v4944_v8 = vld [vmem:[%s7105_s0 + $0x348] ss:$12 sps:$4 sm:$0xff]  }
 0x14e   :  { %v5935_v50 = vpop.f32.mrf.mxu1  ;;  %v1219_v49 = vpop.f32.mrf.mxu0 }
 0x14f   :  { %v5940_v41 = vpack.c.bf16 %v1912_v22, %v1910_v28  ;;  %v1220_v43 = vadd.f32 %v1219_v49, %v5644_v33  ;;  %v1611_v4 = vadd.f32 %v5776_v15, %v1218_v13  ;;  %v1913_v40 = vmax.f32 %v1609_v47, 0.0 }
 0x150   :  { %v5947_v7 = vpop.f32.mrf.mxu1  ;;  %2338 = vmatmul.mubr.bf16.gmra.mxu1 %v5785_v11  ;;  %v1221_v55 = vpop.f32.mrf.mxu0 }
 0x151   :  { %v1613_v56 = vadd.f32 %v5780_v59, %v1220_v43  ;;  %4431 = vmatprep.mubr.msk.bf16.mxu1 %vm2172_vm2, %v5824_v18  ;;  %v1222_v3 = vadd.f32 %v1221_v55, %v5654_v36  ;;  %v1914_v59 = vmax.f32 %v1611_v4, 0.0 }
 0x152   :  { %v5955_v12 = vpop.f32.mrf.mxu1  ;;  %v1225_v37 = vpop.f32.mrf.mxu0  ;;  %1464 = vmatmul.mubr.bf16.gmra.mxu0 %v4941_v0 }
 0x153   :  { %v1915_v19 = vmax.f32 %v1613_v56, 0.0  ;;  %v1615_v63 = vadd.f32 %v5788_v61, %v1222_v3  ;;  %v1226_v11 = vadd.f32 %v1225_v37, %v5644_v33  ;;  %1473 = vmatprep.mubr.bf16.mxu0 %v4946_v10 }
 0x154   :  { %v5959_v27 = vpop.f32.mrf.mxu1  ;;  %v1227_v15 = vpop.f32.mrf.mxu0 }
 0x155   :  { %v5961_v5 = vpack.c.bf16 %v1915_v19, %v1913_v40  ;;  %v1916_v18 = vmax.f32 %v1615_v63, 0.0  ;;  %v1228_v60 = vadd.f32 %v1227_v15, %v5654_v36  ;;  %v1619_v28 = vadd.f32 %v5800_v38, %v1226_v11 }
 0x156   :  { %v5964_v29 = vpop.f32.mrf.mxu1  ;;  %v1229_v34 = vpop.f32.mrf.mxu0 }
 0x157   :  { %v5969_v61 = vpack.c.bf16 %v1916_v18, %v1914_v59  ;;  %v1230_v22 = vadd.f32 %v1229_v34, %v5644_v33  ;;  %v1621_v0 = vadd.f32 %v5807_v24, %v1228_v60  ;;  %v1917_v38 = vmax.f32 %v1619_v28, 0.0 }
 0x158   :  { %v5973_v13 = vpop.f32.mrf.mxu1  ;;  %2346 = vmatmul.mubr.bf16.gmra.mxu1 %v5816_v57  ;;  %v1231_v49 = vpop.f32.mrf.mxu0 }
 0x159   :  { %v1623_v47 = vadd.f32 %v5811_v54, %v1230_v22  ;;  %4432 = vmatprep.mubr.msk.bf16.mxu1 %vm2172_vm2, %v5853_v44  ;;  %v1232_v43 = vadd.f32 %v1231_v49, %v5654_v36  ;;  %v1918_v37 = vmax.f32 %v1621_v0, 0.0 }
 0x15a   :  { %v5981_v10 = vpop.f32.mrf.mxu1  ;;  %v1235_v55 = vpop.f32.mrf.mxu0  ;;  %1474 = vmatmul.mubr.bf16.gmra.mxu0 %v4944_v8 }
 0x15b   :  { %v1919_v4 = vmax.f32 %v1623_v47, 0.0  ;;  %v1625_v56 = vadd.f32 %v5819_v58, %v1232_v43  ;;  %v1236_v57 = vadd.f32 %v1235_v55, %v5644_v33 }
 0x15c   :  { %v5985_v3 = vpop.f32.mrf.mxu1  ;;  %v1237_v24 = vpop.f32.mrf.mxu0 }
 0x15d   :  { %v5987_v54 = vpack.c.bf16 %v1919_v4, %v1917_v38  ;;  %v1920_v40 = vmax.f32 %v1625_v56, 0.0  ;;  %v1238_v44 = vadd.f32 %v1237_v24, %v5654_v36  ;;  %v1629_v15 = vadd.f32 %v5831_v21, %v1236_v57 }
 0x15e   :  { %v5990_v19 = vpop.f32.mrf.mxu1  ;;  %v1239_v63 = vpop.f32.mrf.mxu0 }
 0x15f   :  { %v5992_v11 = vpack.c.bf16 %v1920_v40, %v1918_v37  ;;  %v1240_v58 = vadd.f32 %v1239_v63, %v5644_v33  ;;  %v1631_v60 = vadd.f32 %v5839_v32, %v1238_v44  ;;  %v1921_v21 = vmax.f32 %v1629_v15, 0.0 }
 0x160   :  { %v5996_v59 = vpop.f32.mrf.mxu1  ;;  %2354 = vmatmul.mubr.bf16.gmra.mxu1 %v5845_v48  ;;  %v1241_v18 = vpop.f32.mrf.mxu0 }
 0x161   :  { %v1633_v34 = vadd.f32 %v5843_v2, %v1240_v58  ;;  %4433 = vmatprep.mubr.msk.bf16.mxu1 %vm2172_vm2, %v5882_v14  ;;  %v1242_v8 = vadd.f32 %v1241_v18, %v5654_v36  ;;  %v1922_v32 = vmax.f32 %v1631_v60, 0.0 }
 0x162   :  { %v6004_v28 = vpop.f32.mrf.mxu1  ;;  %v1245_v22 = vpop.f32.mrf.mxu0 }
 0x163   :  { %v1923_v49 = vmax.f32 %v1633_v34, 0.0  ;;  %v1635_v0 = vadd.f32 %v5848_v52, %v1242_v8  ;;  %v1246_v47 = vadd.f32 %v1245_v22, %v5644_v33 }
 0x164   :  { %v6008_v48 = vpop.f32.mrf.mxu1  ;;  %v1247_v43 = vpop.f32.mrf.mxu0 }
 0x165   :  { %v6010_v55 = vpack.c.bf16 %v1923_v49, %v1921_v21  ;;  %v1924_v2 = vmax.f32 %v1635_v0, 0.0  ;;  %v1248_v14 = vadd.f32 %v1247_v43, %v5654_v36  ;;  %v1639_v57 = vadd.f32 %v5860_v16, %v1246_v47 }
 0x166   :  { %v6013_v38 = vpop.f32.mrf.mxu1  ;;  %v1249_v4 = vpop.f32.mrf.mxu0 }
 0x167   :  { %v6015_v56 = vpack.c.bf16 %v1924_v2, %v1922_v32  ;;  %v1250_v52 = vadd.f32 %v1249_v4, %v5644_v33  ;;  %v1641_v40 = vadd.f32 %v5868_v17, %v1248_v14  ;;  %v1925_v16 = vmax.f32 %v1639_v57, 0.0 }
 0x168   :  { %v6019_v24 = vpop.f32.mrf.mxu1  ;;  %2362 = vmatmul.mubr.bf16.gmra.mxu1 %v5874_v42  ;;  %v1251_v37 = vpop.f32.mrf.mxu0 }
 0x169   :  { %v1643_v44 = vadd.f32 %v5872_v39, %v1250_v52  ;;  %4434 = vmatprep.mubr.msk.bf16.mxu1 %vm2172_vm2, %v5911_v53  ;;  %v1252_v63 = vadd.f32 %v1251_v37, %v5654_v36  ;;  %v1926_v17 = vmax.f32 %v1641_v40, 0.0 }
 0x16a   :  { %v6027_v15 = vpop.f32.mrf.mxu1  ;;  %v1255_v58 = vpop.f32.mrf.mxu0 }
 0x16b   :  { %v1927_v18 = vmax.f32 %v1643_v44, 0.0  ;;  %v1645_v60 = vadd.f32 %v5877_v45, %v1252_v63  ;;  %v1256_v34 = vadd.f32 %v1255_v58, %v5644_v33 }
 0x16c   :  { %v6031_v42 = vpop.f32.mrf.mxu1  ;;  %v1257_v8 = vpop.f32.mrf.mxu0 }
 0x16d   :  { %v6033_v22 = vpack.c.bf16 %v1927_v18, %v1925_v16  ;;  %v1928_v39 = vmax.f32 %v1645_v60, 0.0  ;;  %v1258_v53 = vadd.f32 %v1257_v8, %v5654_v36  ;;  %v1649_v47 = vadd.f32 %v5889_v25, %v1256_v34 }
 0x16e   :  { %v6036_v21 = vpop.f32.mrf.mxu1  ;;  %v1259_v49 = vpop.f32.mrf.mxu0 }
 0x16f   :  { %v6038_v0 = vpack.c.bf16 %v1928_v39, %v1926_v17  ;;  %v1260_v45 = vadd.f32 %v1259_v49, %v5644_v33  ;;  %v1651_v2 = vadd.f32 %v5897_v62, %v1258_v53  ;;  %v1929_v25 = vmax.f32 %v1649_v47, 0.0 }
 0x170   :  { %v6042_v43 = vpop.f32.mrf.mxu1  ;;  %2370 = vmatmul.mubr.bf16.gmra.mxu1 %v5903_v9  ;;  %v1261_v32 = vpop.f32.mrf.mxu0 }
 0x171   :  { %v1653_v14 = vadd.f32 %v5901_v20, %v1260_v45  ;;  %4435 = vmatprep.mubr.msk.bf16.mxu1 %vm2172_vm2, %v5940_v41  ;;  %v1262_v4 = vadd.f32 %v1261_v32, %v5654_v36  ;;  %v1930_v62 = vmax.f32 %v1651_v2, 0.0 }
 0x172   :  { %v6050_v57 = vpop.f32.mrf.mxu1  ;;  %v1265_v52 = vpop.f32.mrf.mxu0 }
 0x173   :  { %v1931_v37 = vmax.f32 %v1653_v14, 0.0  ;;  %v1655_v40 = vadd.f32 %v5906_v35, %v1262_v4  ;;  %v1266_v44 = vadd.f32 %v1265_v52, %v5644_v33 }
 0x174   :  { %v6054_v9 = vpop.f32.mrf.mxu1  ;;  %v1267_v63 = vpop.f32.mrf.mxu0 }
 0x175   :  { %v6056_v58 = vpack.c.bf16 %v1931_v37, %v1929_v25  ;;  %v1932_v20 = vmax.f32 %v1655_v40, 0.0  ;;  %v1268_v41 = vadd.f32 %v1267_v63, %v5654_v36  ;;  %v1659_v34 = vadd.f32 %v5918_v46, %v1266_v44 }
 0x176   :  { %v6059_v16 = vpop.f32.mrf.mxu1  ;;  %v1269_v18 = vpop.f32.mrf.mxu0 }
 0x177   :  { %v6061_v60 = vpack.c.bf16 %v1932_v20, %v1930_v62  ;;  %v1270_v35 = vadd.f32 %v1269_v18, %v5644_v33  ;;  %v1661_v39 = vadd.f32 %v5926_v51, %v1268_v41  ;;  %v1933_v46 = vmax.f32 %v1659_v34, 0.0 }
 0x178   :  { %v6065_v8 = vpop.f32.mrf.mxu1  ;;  %2378 = vmatmul.mubr.bf16.gmra.mxu1 %v5932_v6  ;;  %v1271_v17 = vpop.f32.mrf.mxu0 }
 0x179   :  { %v1663_v53 = vadd.f32 %v5930_v31, %v1270_v35  ;;  %4436 = vmatprep.mubr.msk.bf16.mxu1 %vm2172_vm2, %v5969_v61  ;;  %v1272_v49 = vadd.f32 %v1271_v17, %v5654_v36  ;;  %v1934_v51 = vmax.f32 %v1661_v39, 0.0 }
 0x17a   :  { %v6073_v47 = vpop.f32.mrf.mxu1  ;;  %v1275_v45 = vpop.f32.mrf.mxu0 }
 0x17b   :  { %v1935_v32 = vmax.f32 %v1663_v53, 0.0  ;;  %v1665_v2 = vadd.f32 %v5935_v50, %v1272_v49  ;;  %v1276_v14 = vadd.f32 %v1275_v45, %v5644_v33 }
 0x17c   :  { %v6077_v6 = vpop.f32.mrf.mxu1  ;;  %v1277_v4 = vpop.f32.mrf.mxu0 }
 0x17d   :  { %v6079_v52 = vpack.c.bf16 %v1935_v32, %v1933_v46  ;;  %v1936_v31 = vmax.f32 %v1665_v2, 0.0  ;;  %v1278_v61 = vadd.f32 %v1277_v4, %v5654_v36  ;;  %v1669_v44 = vadd.f32 %v5947_v7, %v1276_v14 }
 0x17e   :  { %v6082_v25 = vpop.f32.mrf.mxu1  ;;  %v1279_v37 = vpop.f32.mrf.mxu0 }
 0x17f   :  { %v6084_v40 = vpack.c.bf16 %v1936_v31, %v1934_v51  ;;  %v1280_v50 = vadd.f32 %v1279_v37, %v5644_v33  ;;  %v1671_v20 = vadd.f32 %v5955_v12, %v1278_v61  ;;  %v1937_v7 = vmax.f32 %v1669_v44, 0.0 }
 0x180   :  { %v6088_v63 = vpop.f32.mrf.mxu1  ;;  %2386 = vmatmul.mubr.bf16.gmra.mxu1 %v5961_v5  ;;  %v1281_v62 = vpop.f32.mrf.mxu0 }
 0x181   :  { %v1673_v41 = vadd.f32 %v5959_v27, %v1280_v50  ;;  %4437 = vmatprep.mubr.msk.bf16.mxu1 %vm2172_vm2, %v5992_v11  ;;  %v1282_v18 = vadd.f32 %v1281_v62, %v5654_v36  ;;  %v1938_v12 = vmax.f32 %v1671_v20, 0.0 }
 0x182   :  { %v6096_v34 = vpop.f32.mrf.mxu1  ;;  %v1285_v35 = vpop.f32.mrf.mxu0 }
 0x183   :  { %v1939_v17 = vmax.f32 %v1673_v41, 0.0  ;;  %v1675_v39 = vadd.f32 %v5964_v29, %v1282_v18  ;;  %v1286_v53 = vadd.f32 %v1285_v35, %v5644_v33 }
 0x184   :  { %v6100_v5 = vpop.f32.mrf.mxu1  ;;  %v1287_v49 = vpop.f32.mrf.mxu0 }
 0x185   :  { %v6102_v45 = vpack.c.bf16 %v1939_v17, %v1937_v7  ;;  %v1940_v27 = vmax.f32 %v1675_v39, 0.0  ;;  %v1288_v11 = vadd.f32 %v1287_v49, %v5654_v36  ;;  %v1679_v14 = vadd.f32 %v5973_v13, %v1286_v53 }
 0x186   :  { %v6105_v46 = vpop.f32.mrf.mxu1  ;;  %v1289_v32 = vpop.f32.mrf.mxu0 }
 0x187   :  { %v6107_v2 = vpack.c.bf16 %v1940_v27, %v1938_v12  ;;  %v1290_v29 = vadd.f32 %v1289_v32, %v5644_v33  ;;  %v1681_v31 = vadd.f32 %v5981_v10, %v1288_v11  ;;  %v1941_v13 = vmax.f32 %v1679_v14, 0.0 }
 0x188   :  { %v6111_v4 = vpop.f32.mrf.mxu1  ;;  %2394 = vmatmul.mubr.bf16.gmra.mxu1 %v5987_v54  ;;  %v1291_v51 = vpop.f32.mrf.mxu0 }
 0x189   :  { %v1683_v61 = vadd.f32 %v5985_v3, %v1290_v29  ;;  %4438 = vmatprep.mubr.msk.bf16.mxu1 %vm2172_vm2, %v6015_v56  ;;  %v1292_v37 = vadd.f32 %v1291_v51, %v5654_v36  ;;  %v1942_v10 = vmax.f32 %v1681_v31, 0.0 }
 0x18a   :  { %v6119_v44 = vpop.f32.mrf.mxu1  ;;  %v1295_v50 = vpop.f32.mrf.mxu0 }
 0x18b   :  { %v1943_v62 = vmax.f32 %v1683_v61, 0.0  ;;  %v1685_v20 = vadd.f32 %v5990_v19, %v1292_v37  ;;  %v1296_v41 = vadd.f32 %v1295_v50, %v5644_v33 }
 0x18c   :  { %v6123_v54 = vpop.f32.mrf.mxu1  ;;  %v1297_v18 = vpop.f32.mrf.mxu0 }
 0x18d   :  { %v6125_v35 = vpack.c.bf16 %v1943_v62, %v1941_v13  ;;  %v1944_v3 = vmax.f32 %v1685_v20, 0.0  ;;  %v1298_v56 = vadd.f32 %v1297_v18, %v5654_v36  ;;  %v1689_v53 = vadd.f32 %v5996_v59, %v1296_v41 }
 0x18e   :  { %v6128_v7 = vpop.f32.mrf.mxu1  ;;  %v1299_v17 = vpop.f32.mrf.mxu0 }
 0x18f   :  { %v6130_v39 = vpack.c.bf16 %v1944_v3, %v1942_v10  ;;  %v1300_v19 = vadd.f32 %v1299_v17, %v5644_v33  ;;  %v1691_v27 = vadd.f32 %v6004_v28, %v1298_v56  ;;  %v1945_v59 = vmax.f32 %v1689_v53, 0.0 }
 0x190   :  { %v6134_v49 = vpop.f32.mrf.mxu1  ;;  %2402 = vmatmul.mubr.bf16.gmra.mxu1 %v6010_v55  ;;  %v1301_v12 = vpop.f32.mrf.mxu0 }
 0x191   :  { %v1693_v11 = vadd.f32 %v6008_v48, %v1300_v19  ;;  %4439 = vmatprep.mubr.msk.bf16.mxu1 %vm2172_vm2, %v6038_v0  ;;  %v1302_v32 = vadd.f32 %v1301_v12, %v5654_v36  ;;  %v1946_v28 = vmax.f32 %v1691_v27, 0.0 }
 0x192   :  { %v6142_v14 = vpop.f32.mrf.mxu1  ;;  %v1305_v29 = vpop.f32.mrf.mxu0 }
 0x193   :  { %v1947_v51 = vmax.f32 %v1693_v11, 0.0  ;;  %v1695_v31 = vadd.f32 %v6013_v38, %v1302_v32  ;;  %v1306_v61 = vadd.f32 %v1305_v29, %v5644_v33 }
 0x194   :  { %v6146_v55 = vpop.f32.mrf.mxu1  ;;  %v1307_v37 = vpop.f32.mrf.mxu0 }
 0x195   :  { %v6148_v50 = vpack.c.bf16 %v1947_v51, %v1945_v59  ;;  %v1948_v48 = vmax.f32 %v1695_v31, 0.0  ;;  %v1308_v0 = vadd.f32 %v1307_v37, %v5654_v36  ;;  %v1699_v41 = vadd.f32 %v6019_v24, %v1306_v61 }
 0x196   :  { %v6151_v13 = vpop.f32.mrf.mxu1  ;;  %v1309_v62 = vpop.f32.mrf.mxu0 }
 0x197   :  { %v6153_v20 = vpack.c.bf16 %v1948_v48, %v1946_v28  ;;  %v1310_v38 = vadd.f32 %v1309_v62, %v5644_v33  ;;  %v1701_v3 = vadd.f32 %v6027_v15, %v1308_v0  ;;  %v1949_v24 = vmax.f32 %v1699_v41, 0.0 }
 0x198   :  { %v6157_v18 = vpop.f32.mrf.mxu1  ;;  %2410 = vmatmul.mubr.bf16.gmra.mxu1 %v6033_v22  ;;  %v1311_v10 = vpop.f32.mrf.mxu0 }
 0x199   :  { %v1703_v56 = vadd.f32 %v6031_v42, %v1310_v38  ;;  %4440 = vmatprep.mubr.msk.bf16.mxu1 %vm2172_vm2, %v6061_v60  ;;  %v1312_v17 = vadd.f32 %v1311_v10, %v5654_v36  ;;  %v1950_v15 = vmax.f32 %v1701_v3, 0.0 }
 0x19a   :  { %v6165_v53 = vpop.f32.mrf.mxu1  ;;  %v1315_v19 = vpop.f32.mrf.mxu0 }
 0x19b   :  { %v1951_v12 = vmax.f32 %v1703_v56, 0.0  ;;  %v1705_v27 = vadd.f32 %v6036_v21, %v1312_v17  ;;  %v1316_v11 = vadd.f32 %v1315_v19, %v5644_v33 }
 0x19c   :  { %v6169_v22 = vpop.f32.mrf.mxu1  ;;  %v1317_v32 = vpop.f32.mrf.mxu0 }
 0x19d   :  { %v6171_v29 = vpack.c.bf16 %v1951_v12, %v1949_v24  ;;  %v1952_v42 = vmax.f32 %v1705_v27, 0.0  ;;  %v1318_v60 = vadd.f32 %v1317_v32, %v5654_v36  ;;  %v1709_v61 = vadd.f32 %v6042_v43, %v1316_v11 }
 0x19e   :  { %v6174_v59 = vpop.f32.mrf.mxu1  ;;  %v1319_v51 = vpop.f32.mrf.mxu0 }
 0x19f   :  { %v6176_v31 = vpack.c.bf16 %v1952_v42, %v1950_v15  ;;  %v1320_v21 = vadd.f32 %v1319_v51, %v5644_v33  ;;  %v1711_v48 = vadd.f32 %v6050_v57, %v1318_v60  ;;  %v1953_v43 = vmax.f32 %v1709_v61, 0.0 }
 0x1a0   :  { %v6180_v37 = vpop.f32.mrf.mxu1  ;;  %2418 = vmatmul.mubr.bf16.gmra.mxu1 %v6056_v58  ;;  %v1321_v28 = vpop.f32.mrf.mxu0 }
 0x1a1   :  { %v1713_v0 = vadd.f32 %v6054_v9, %v1320_v21  ;;  %4441 = vmatprep.mubr.msk.bf16.mxu1 %vm2172_vm2, %v6084_v40  ;;  %v1322_v62 = vadd.f32 %v1321_v28, %v5654_v36  ;;  %v1954_v57 = vmax.f32 %v1711_v48, 0.0 }
 0x1a2   :  { %v6188_v41 = vpop.f32.mrf.mxu1  ;;  %v1325_v38 = vpop.f32.mrf.mxu0 }
 0x1a3   :  { %v1955_v10 = vmax.f32 %v1713_v0, 0.0  ;;  %v1715_v3 = vadd.f32 %v6059_v16, %v1322_v62  ;;  %v1326_v56 = vadd.f32 %v1325_v38, %v5644_v33 }
 0x1a4   :  { %v6192_v58 = vpop.f32.mrf.mxu1  ;;  %v1327_v17 = vpop.f32.mrf.mxu0 }
 0x1a5   :  { %v6194_v19 = vpack.c.bf16 %v1955_v10, %v1953_v43  ;;  %v1956_v9 = vmax.f32 %v1715_v3, 0.0  ;;  %v1328_v40 = vadd.f32 %v1327_v17, %v5654_v36  ;;  %v1719_v11 = vadd.f32 %v6065_v8, %v1326_v56 }
 0x1a6   :  { %v6197_v24 = vpop.f32.mrf.mxu1  ;;  %v1329_v12 = vpop.f32.mrf.mxu0 }
 0x1a7   :  { %v6199_v27 = vpack.c.bf16 %v1956_v9, %v1954_v57  ;;  %v1330_v16 = vadd.f32 %v1329_v12, %v5644_v33  ;;  %v1721_v42 = vadd.f32 %v6073_v47, %v1328_v40  ;;  %v1957_v8 = vmax.f32 %v1719_v11, 0.0 }
 0x1a8   :  { %v6203_v32 = vpop.f32.mrf.mxu1  ;;  %2426 = vmatmul.mubr.bf16.gmra.mxu1 %v6079_v52  ;;  %v1331_v15 = vpop.f32.mrf.mxu0 }
 0x1a9   :  { %v1723_v60 = vadd.f32 %v6077_v6, %v1330_v16  ;;  %4442 = vmatprep.mubr.msk.bf16.mxu1 %vm2172_vm2, %v6107_v2  ;;  %v1332_v51 = vadd.f32 %v1331_v15, %v5654_v36  ;;  %v1958_v47 = vmax.f32 %v1721_v42, 0.0 }
 0x1aa   :  { %v6211_v61 = vpop.f32.mrf.mxu1  ;;  %v1335_v21 = vpop.f32.mrf.mxu0 }
 0x1ab   :  { %v1959_v28 = vmax.f32 %v1723_v60, 0.0  ;;  %v1725_v48 = vadd.f32 %v6082_v25, %v1332_v51  ;;  %v1336_v0 = vadd.f32 %v1335_v21, %v5644_v33 }
 0x1ac   :  { %v6215_v52 = vpop.f32.mrf.mxu1  ;;  %v1337_v62 = vpop.f32.mrf.mxu0 }
 0x1ad   :  { %v6217_v38 = vpack.c.bf16 %v1959_v28, %v1957_v8  ;;  %v1960_v6 = vmax.f32 %v1725_v48, 0.0  ;;  %v1338_v2 = vadd.f32 %v1337_v62, %v5654_v36  ;;  %v1729_v56 = vadd.f32 %v6088_v63, %v1336_v0 }
 0x1ae   :  { %v6220_v43 = vpop.f32.mrf.mxu1  ;;  %v1339_v10 = vpop.f32.mrf.mxu0 }
 0x1af   :  { %v6222_v3 = vpack.c.bf16 %v1960_v6, %v1958_v47  ;;  %v1340_v25 = vadd.f32 %v1339_v10, %v5644_v33  ;;  %v1731_v9 = vadd.f32 %v6096_v34, %v1338_v2  ;;  %v1961_v63 = vmax.f32 %v1729_v56, 0.0  ;;  %v4947_v6 = vld [vmem:[%s7108_s5 + $0x70] ss:$8 sps:$4 sm:$0xff]   ;;  %v4949_v56 = vld [vmem:[%s7108_s5 + $0x74] ss:$8 sps:$4 sm:$0xff]  }
 0x1b0   :  { %v6226_v17 = vpop.f32.mrf.mxu1  ;;  %2434 = vmatmul.mubr.bf16.gmra.mxu1 %v6102_v45  ;;  %v1341_v57 = vpop.f32.mrf.mxu0  ;;  %3913 = vmatprep.subr.bf16.mxu0 %v4949_v56 }
 0x1b1   :  { %v1733_v40 = vadd.f32 %v6100_v5, %v1340_v25  ;;  %4443 = vmatprep.mubr.msk.bf16.mxu1 %vm2172_vm2, %v6130_v39  ;;  %v1342_v12 = vadd.f32 %v1341_v57, %v5654_v36  ;;  %v1962_v34 = vmax.f32 %v1731_v9, 0.0  ;;  %3914 = vmatpush1.bf16.msra.mxu0 %v4947_v6 }
 0x1b2   :  { %v6234_v11 = vpop.f32.mrf.mxu1  ;;  %v1345_v16 = vpop.f32.mrf.mxu0 }
 0x1b3   :  { %v1963_v15 = vmax.f32 %v1733_v40, 0.0  ;;  %v1735_v42 = vadd.f32 %v6105_v46, %v1342_v12  ;;  %v1346_v60 = vadd.f32 %v1345_v16, %v5644_v33 }
 0x1b4   :  { %v6238_v45 = vpop.f32.mrf.mxu1  ;;  %v1347_v51 = vpop.f32.mrf.mxu0 }
 0x1b5   :  { %v6240_v21 = vpack.c.bf16 %v1963_v15, %v1961_v63  ;;  %v1964_v5 = vmax.f32 %v1735_v42, 0.0  ;;  %v1348_v39 = vadd.f32 %v1347_v51, %v5654_v36  ;;  %v1739_v0 = vadd.f32 %v6111_v4, %v1346_v60 }
 0x1b6   :  { %v6243_v8 = vpop.f32.mrf.mxu1  ;;  %v1349_v28 = vpop.f32.mrf.mxu0 }
 0x1b7   :  { %v6245_v48 = vpack.c.bf16 %v1964_v5, %v1962_v34  ;;  %v1350_v46 = vadd.f32 %v1349_v28, %v5644_v33  ;;  %v1741_v2 = vadd.f32 %v6119_v44, %v1348_v39  ;;  %v1965_v57 = vmax.f32 %v1739_v0, 0.0 }
 0x1b8   :  { %v6249_v62 = vpop.f32.mrf.mxu1  ;;  %2442 = vmatmul.mubr.bf16.gmra.mxu1 %v6125_v35  ;;  %v1351_v47 = vpop.f32.mrf.mxu0 }
 0x1b9   :  { %v1743_v10 = vadd.f32 %v6123_v54, %v1350_v46  ;;  %4444 = vmatprep.mubr.msk.bf16.mxu1 %vm2172_vm2, %v6153_v20  ;;  %v1352_v4 = vadd.f32 %v1351_v47, %v5654_v36  ;;  %v1966_v20 = vmax.f32 %v1741_v2, 0.0 }
 0x1ba   :  { %v6263_v25 = vpop.f32.mrf.mxu1  ;;  %v1355_v35 = vpop.f32.mrf.mxu0 }
 0x1bb   :  { %v1967_v9 = vmax.f32 %v1743_v10, 0.0  ;;  %v1745_v40 = vadd.f32 %v6128_v7, %v1352_v4  ;;  %v1356_v44 = vadd.f32 %v1355_v35, %v5644_v33 }
 0x1bc   :  { %v6267_v54 = vpop.f32.mrf.mxu1  ;;  %v1357_v12 = vpop.f32.mrf.mxu0 }
 0x1bd   :  { %v6269_v16 = vpack.c.bf16 %v1967_v9, %v1965_v57  ;;  %v1968_v63 = vmax.f32 %v1745_v40, 0.0  ;;  %v1358_v15 = vadd.f32 %v1357_v12, %v5654_v36  ;;  %v1749_v7 = vadd.f32 %v6134_v49, %v1356_v44  ;;  %v4950_v12 = vld [vmem:[%s7108_s5 + $0x60] ss:$8 sps:$4 sm:$0xff]  }
 0x1be   :  { %v6272_v42 = vpop.f32.mrf.mxu1  ;;  %v1359_v60 = vpop.f32.mrf.mxu0 }
 0x1bf   :  { %v6274_v51 = vpack.c.bf16 %v1968_v63, %v1966_v20  ;;  %v1360_v34 = vadd.f32 %v1359_v60, %v5644_v33  ;;  %v1751_v28 = vadd.f32 %v6142_v14, %v1358_v15  ;;  %v1969_v49 = vmax.f32 %v1749_v7, 0.0  ;;  %v4952_v20 = vld [vmem:[%s7108_s5 + $0x64] ss:$8 sps:$4 sm:$0xff]  }
 0x1c0   :  { %v6278_v5 = vpop.f32.mrf.mxu1  ;;  %2450 = vmatmul.mubr.bf16.gmra.mxu1 %v6148_v50  ;;  %v1361_v39 = vpop.f32.mrf.mxu0  ;;  %3915 = vmatprep.subr.bf16.mxu0 %v4952_v20 }
 0x1c1   :  { %v1753_v0 = vadd.f32 %v6146_v55, %v1360_v34  ;;  %4445 = vmatprep.mubr.msk.bf16.mxu1 %vm2172_vm2, %v6176_v31  ;;  %v1362_v46 = vadd.f32 %v1361_v39, %v5654_v36  ;;  %v1970_v14 = vmax.f32 %v1751_v28, 0.0  ;;  %3916 = vmatpush1.bf16.msra.mxu0 %v4950_v12 }
 0x1c2   :  { %v6286_v47 = vpop.f32.mrf.mxu1  ;;  %v1365_v6 = vpop.f32.mrf.mxu0 }
 0x1c3   :  { %v1971_v2 = vmax.f32 %v1753_v0, 0.0  ;;  %v1755_v10 = vadd.f32 %v6151_v13, %v1362_v46  ;;  %v1366_v4 = vadd.f32 %v1365_v6, %v5644_v33 }
 0x1c4   :  { %v6290_v50 = vpop.f32.mrf.mxu1  ;;  %v1367_v56 = vpop.f32.mrf.mxu0 }
 0x1c5   :  { %v6292_v35 = vpack.c.bf16 %v1971_v2, %v1969_v49  ;;  %v1972_v55 = vmax.f32 %v1755_v10, 0.0  ;;  %v1368_v31 = vadd.f32 %v1367_v56, %v5654_v36  ;;  %v1759_v44 = vadd.f32 %v6157_v18, %v1366_v4 }
 0x1c6   :  { %v6295_v57 = vpop.f32.mrf.mxu1  ;;  %v1369_v9 = vpop.f32.mrf.mxu0 }
 0x1c7   :  { %v6297_v40 = vpack.c.bf16 %v1972_v55, %v1970_v14  ;;  %v1370_v13 = vadd.f32 %v1369_v9, %v5644_v33  ;;  %v1761_v60 = vadd.f32 %v6165_v53, %v1368_v31  ;;  %v1973_v28 = vmax.f32 %v1759_v44, 0.0 }
 0x1c8   :  { %v6307_v63 = vpop.f32.mrf.mxu1  ;;  %2458 = vmatmul.mubr.bf16.gmra.mxu1 %v6171_v29  ;;  %v1371_v15 = vpop.f32.mrf.mxu0 }
 0x1c9   :  { %v1763_v7 = vadd.f32 %v6169_v22, %v1370_v13  ;;  %4446 = vmatprep.mubr.msk.bf16.mxu1 %vm2172_vm2, %v6199_v27  ;;  %v1372_v18 = vadd.f32 %v1371_v15, %v5654_v36  ;;  %v1974_v22 = vmax.f32 %v1761_v60, 0.0 }
 0x1ca   :  { %v6315_v34 = vpop.f32.mrf.mxu1  ;;  %v1375_v39 = vpop.f32.mrf.mxu0 }
 0x1cb   :  { %v1975_v0 = vmax.f32 %v1763_v7, 0.0  ;;  %v1765_v46 = vadd.f32 %v6174_v59, %v1372_v18  ;;  %v1376_v29 = vadd.f32 %v1375_v39, %v5644_v33 }
 0x1cc   :  { %v6319_v6 = vpop.f32.mrf.mxu1  ;;  %v1377_v53 = vpop.f32.mrf.mxu0 }
 0x1cd   :  { %v6321_v49 = vpack.c.bf16 %v1975_v0, %v1973_v28  ;;  %v1976_v27 = vmax.f32 %v1765_v46, 0.0  ;;  %v1378_v2 = vadd.f32 %v1377_v53, %v5654_v36  ;;  %v1769_v14 = vadd.f32 %v6180_v37, %v1376_v29 }
 0x1ce   :  { %v6324_v10 = vpop.f32.mrf.mxu1  ;;  %v1379_v4 = vpop.f32.mrf.mxu0 }
 0x1cf   :  { %v6326_v56 = vpack.c.bf16 %v1976_v27, %v1974_v22  ;;  %v1380_v59 = vadd.f32 %v1379_v4, %v5644_v33  ;;  %v1771_v9 = vadd.f32 %v6188_v41, %v1378_v2  ;;  %v1977_v37 = vmax.f32 %v1769_v14, 0.0 }
 0x1d0   :  { %v6330_v55 = vpop.f32.mrf.mxu1  ;;  %2466 = vmatmul.mubr.bf16.gmra.mxu1 %v6194_v19  ;;  %v1381_v31 = vpop.f32.mrf.mxu0 }
 0x1d1   :  { %v1773_v44 = vadd.f32 %v6192_v58, %v1380_v59  ;;  %4447 = vmatprep.mubr.msk.bf16.mxu1 %vm2172_vm2, %v6222_v3  ;;  %v1382_v13 = vadd.f32 %v1381_v31, %v5654_v36  ;;  %v1978_v41 = vmax.f32 %v1771_v9, 0.0 }
 0x1d2   :  { %v6338_v12 = vpop.f32.mrf.mxu1  ;;  %v1385_v20 = vpop.f32.mrf.mxu0 }
 0x1d3   :  { %v1979_v15 = vmax.f32 %v1773_v44, 0.0  ;;  %v1775_v60 = vadd.f32 %v6197_v24, %v1382_v13  ;;  %v1386_v7 = vadd.f32 %v1385_v20, %v5644_v33 }
 0x1d4   :  { %v6342_v19 = vpop.f32.mrf.mxu1  ;;  %v1387_v18 = vpop.f32.mrf.mxu0 }
 0x1d5   :  { %v6344_v39 = vpack.c.bf16 %v1979_v15, %v1977_v37  ;;  %v1980_v58 = vmax.f32 %v1775_v60, 0.0  ;;  %v1388_v3 = vadd.f32 %v1387_v18, %v5654_v36  ;;  %v1779_v29 = vadd.f32 %v6203_v32, %v1386_v7 }
 0x1d6   :  { %v6347_v28 = vpop.f32.mrf.mxu1  ;;  %v1389_v0 = vpop.f32.mrf.mxu0 }
 0x1d7   :  { %v6349_v46 = vpack.c.bf16 %v1980_v58, %v1978_v41  ;;  %v1390_v24 = vadd.f32 %v1389_v0, %v5644_v33  ;;  %v1781_v27 = vadd.f32 %v6211_v61, %v1388_v3  ;;  %v1981_v32 = vmax.f32 %v1779_v29, 0.0  ;;  %v4953_v61 = vld [vmem:[%s7108_s5 + $0x50] ss:$8 sps:$4 sm:$0xff]  }
 0x1d8   :  { %v6353_v53 = vpop.f32.mrf.mxu1  ;;  %2474 = vmatmul.mubr.bf16.gmra.mxu1 %v6217_v38  ;;  %v1391_v22 = vpop.f32.mrf.mxu0 }
 0x1d9   :  { %v1783_v2 = vadd.f32 %v6215_v52, %v1390_v24  ;;  %4448 = vmatprep.mubr.msk.bf16.mxu1 %vm2172_vm2, %v6245_v48  ;;  %v1392_v4 = vadd.f32 %v1391_v22, %v5654_v36  ;;  %v4955_v52 = vld [vmem:[%s7108_s5 + $0x54] ss:$8 sps:$4 sm:$0xff]   ;;  %v1982_v13 = vmax.f32 %v1781_v27, 0.0 }
 0x1da   :  { %v6361_v14 = vpop.f32.mrf.mxu1  ;;  %v1395_v59 = vpop.f32.mrf.mxu0  ;;  %3917 = vmatprep.subr.bf16.mxu0 %v4955_v52 }
 0x1db   :  { %v1983_v31 = vmax.f32 %v1783_v2, 0.0  ;;  %v1785_v9 = vadd.f32 %v6220_v43, %v1392_v4  ;;  %v1396_v44 = vadd.f32 %v1395_v59, %v5644_v33  ;;  %3918 = vmatpush1.bf16.msra.mxu0 %v4953_v61 }
 0x1dc   :  { %v6371_v38 = vpop.f32.mrf.mxu1  ;;  %v1397_v48 = vpop.f32.mrf.mxu0 }
 0x1dd   :  { %v6373_v20 = vpack.c.bf16 %v1983_v31, %v1981_v32  ;;  %v1984_v37 = vmax.f32 %v1785_v9, 0.0  ;;  %v1398_v15 = vadd.f32 %v1397_v48, %v5654_v36  ;;  %v1789_v18 = vadd.f32 %v6226_v17, %v1396_v44 }
 0x1de   :  { %v6376_v43 = vpop.f32.mrf.mxu1  ;;  %v1399_v60 = vpop.f32.mrf.mxu0 }
 0x1df   :  { %v6378_v7 = vpack.c.bf16 %v1984_v37, %v1982_v13  ;;  %v1400_v41 = vadd.f32 %v1399_v60, %v5644_v33  ;;  %v1791_v0 = vadd.f32 %v6234_v11, %v1398_v15  ;;  %v1985_v17 = vmax.f32 %v1789_v18, 0.0 }
 0x1e0   :  { %v6382_v58 = vpop.f32.mrf.mxu1  ;;  %2482 = vmatmul.mubr.bf16.gmra.mxu1 %v6240_v21  ;;  %v1401_v3 = vpop.f32.mrf.mxu0 }
 0x1e1   :  { %v1793_v29 = vadd.f32 %v6238_v45, %v1400_v41  ;;  %4449 = vmatprep.mubr.msk.bf16.mxu1 %vm2172_vm2, %v6274_v51  ;;  %v1402_v24 = vadd.f32 %v1401_v3, %v5654_v36  ;;  %v1986_v11 = vmax.f32 %v1791_v0, 0.0 }
 0x1e2   :  { %v6390_v22 = vpop.f32.mrf.mxu1  ;;  %v1405_v27 = vpop.f32.mrf.mxu0 }
 0x1e3   :  { %v1987_v2 = vmax.f32 %v1793_v29, 0.0  ;;  %v1795_v4 = vadd.f32 %v6243_v8, %v1402_v24  ;;  %v1406_v59 = vadd.f32 %v1405_v27, %v5644_v33 }
 0x1e4   :  { %v6394_v21 = vpop.f32.mrf.mxu1  ;;  %v1407_v32 = vpop.f32.mrf.mxu0 }
 0x1e5   :  { %v6396_v31 = vpack.c.bf16 %v1987_v2, %v1985_v17  ;;  %v1988_v45 = vmax.f32 %v1795_v4, 0.0  ;;  %v1408_v51 = vadd.f32 %v1407_v32, %v5654_v36  ;;  %v1799_v52 = vadd.f32 %v6249_v62, %v1406_v59 }
 0x1e6   :  { %v6399_v9 = vpop.f32.mrf.mxu1  ;;  %v1409_v44 = vpop.f32.mrf.mxu0 }
 0x1e7   :  { %v6401_v61 = vpack.c.bf16 %v1988_v45, %v1986_v11  ;;  %v1410_v8 = vadd.f32 %v1409_v44, %v5644_v33  ;;  %v1801_v37 = vadd.f32 %v6263_v25, %v1408_v51  ;;  %v1989_v62 = vmax.f32 %v1799_v52, 0.0  ;;  %v4956_v25 = vld [vmem:[%s7108_s5 + $0x40] ss:$8 sps:$4 sm:$0xff]  }
 0x1e8   :  { %v6405_v48 = vpop.f32.mrf.mxu1  ;;  %2490 = vmatmul.mubr.bf16.gmra.mxu1 %v6269_v16  ;;  %v1411_v13 = vpop.f32.mrf.mxu0 }
 0x1e9   :  { %v1803_v15 = vadd.f32 %v6267_v54, %v1410_v8  ;;  %4450 = vmatprep.mubr.msk.bf16.mxu1 %vm2172_vm2, %v6297_v40  ;;  %v1412_v60 = vadd.f32 %v1411_v13, %v5654_v36  ;;  %v4958_v54 = vld [vmem:[%s7108_s5 + $0x44] ss:$8 sps:$4 sm:$0xff]   ;;  %v1990_v24 = vmax.f32 %v1801_v37, 0.0 }
 0x1ea   :  { %v6413_v18 = vpop.f32.mrf.mxu1  ;;  %v1415_v41 = vpop.f32.mrf.mxu0  ;;  %3919 = vmatprep.subr.bf16.mxu0 %v4958_v54 }
 0x1eb   :  { %v1991_v3 = vmax.f32 %v1803_v15, 0.0  ;;  %v1805_v0 = vadd.f32 %v6272_v42, %v1412_v60  ;;  %v1416_v29 = vadd.f32 %v1415_v41, %v5644_v33  ;;  %3920 = vmatpush1.bf16.msra.mxu0 %v4956_v25 }
 0x1ec   :  { %v6423_v16 = vpop.f32.mrf.mxu1  ;;  %v1417_v40 = vpop.f32.mrf.mxu0 }
 0x1ed   :  { %v6425_v27 = vpack.c.bf16 %v1991_v3, %v1989_v62  ;;  %v1992_v17 = vmax.f32 %v1805_v0, 0.0  ;;  %v1418_v2 = vadd.f32 %v1417_v40, %v5654_v36  ;;  %v1809_v32 = vadd.f32 %v6278_v5, %v1416_v29 }
 0x1ee   :  { %v6428_v42 = vpop.f32.mrf.mxu1  ;;  %v1419_v4 = vpop.f32.mrf.mxu0 }
 0x1ef   :  { %v6430_v59 = vpack.c.bf16 %v1992_v17, %v1990_v24  ;;  %v1420_v11 = vadd.f32 %v1419_v4, %v5644_v33  ;;  %v1811_v44 = vadd.f32 %v6286_v47, %v1418_v2  ;;  %v1993_v5 = vmax.f32 %v1809_v32, 0.0 }
 0x1f0   :  { %v6434_v45 = vpop.f32.mrf.mxu1  ;;  %2498 = vmatmul.mubr.bf16.gmra.mxu1 %v6292_v35  ;;  %v1421_v51 = vpop.f32.mrf.mxu0 }
 0x1f1   :  { %v1813_v52 = vadd.f32 %v6290_v50, %v1420_v11  ;;  %4451 = vmatprep.mubr.msk.bf16.mxu1 %vm2172_vm2, %v6326_v56  ;;  %v1422_v8 = vadd.f32 %v1421_v51, %v5654_v36  ;;  %v1994_v47 = vmax.f32 %v1811_v44, 0.0 }
 0x1f2   :  { %v6442_v13 = vpop.f32.mrf.mxu1  ;;  %v1425_v37 = vpop.f32.mrf.mxu0 }
 0x1f3   :  { %v1995_v15 = vmax.f32 %v1813_v52, 0.0  ;;  %v1815_v60 = vadd.f32 %v6295_v57, %v1422_v8  ;;  %v1426_v41 = vadd.f32 %v1425_v37, %v5644_v33  ;;  %v6457_v57 = vld [vmem:[%s7109_s4] ss:$0 sm:$0xff] }
 0x1f4   :  { %v6446_v35 = vpop.f32.mrf.mxu1  ;;  %v1427_v62 = vpop.f32.mrf.mxu0 }
 0x1f5   :  { %v6448_v3 = vpack.c.bf16 %v1995_v15, %v1993_v5  ;;  %v1996_v50 = vmax.f32 %v1815_v60, 0.0  ;;  %v1428_v56 = vadd.f32 %v1427_v62, %v5654_v36  ;;  %v1819_v0 = vadd.f32 %v6307_v63, %v1426_v41 }
 0x1f6   :  { %v6452_v29 = vpop.f32.mrf.mxu1  ;;  %v1429_v25 = vpop.f32.mrf.mxu0 }
 0x1f7   :  { %v6459_v54 = vpack.c.bf16 %v1996_v50, %v1994_v47  ;;  %v1430_v40 = vadd.f32 %v1429_v25, %v5644_v33  ;;  %v1821_v2 = vadd.f32 %v6315_v34, %v1428_v56  ;;  %v1997_v11 = vmax.f32 %v1819_v0, 0.0  ;;  %v4959_v25 = vld [vmem:[%s7108_s5 + $0x30] ss:$8 sps:$4 sm:$0xff]  }
 0x1f8   :  { %v2315_v24 = vpop.f32.mrf.mxu1  ;;  %2506 = vmatmul.mubr.bf16.gmra.mxu1 %v6321_v49  ;;  %v1431_v17 = vpop.f32.mrf.mxu0 }
 0x1f9   :  { %v1823_v63 = vadd.f32 %v6319_v6, %v1430_v40  ;;  %v2316_v4 = vadd.f32 %v6457_v57, %v2315_v24  ;;  %4452 = vmatprep.mubr.msk.bf16.mxu1 %vm2172_vm2, %v6349_v46  ;;  %v1432_v32 = vadd.f32 %v1431_v17, %v5654_v36  ;;  %v1998_v6 = vmax.f32 %v1821_v2, 0.0 }
 0x1fa   :  { %v2317_v51 = vpop.f32.mrf.mxu1  ;;  %v1435_v44 = vpop.f32.mrf.mxu0 }
 0x1fb   :  { %v1999_v52 = vmax.f32 %v1823_v63, 0.0  ;;  %v2602_v8 = vmax.f32 %v2316_v4, 0.0  ;;  %v1825_v37 = vadd.f32 %v6324_v10, %v1432_v32  ;;  %v1436_v49 = vadd.f32 %v1435_v44, %v5644_v33 }
 0x1fc   :  { %v2318_v34 = vpop.f32.mrf.mxu1  ;;  %v1437_v5 = vpop.f32.mrf.mxu0 }
 0x1fd   :  { %v6471_v15 = vpack.c.bf16 %v1999_v52, %v1997_v11  ;;  %v4630_v60 = vpack.c.bf16 %v2602_v8, %v2602_v8  ;;  %v2000_v41 = vmax.f32 %v1825_v37, 0.0  ;;  %v1829_v46 = vadd.f32 %v6330_v55, %v1436_v49  ;;  %v4961_v55 = vld [vmem:[%s7108_s5 + $0x34] ss:$8 sps:$4 sm:$0xff]  }
 0x1fe   :  { %v2319_v62 = vadd.f32 %v6457_v57, %v2318_v34  ;;  %v1438_v47 = vadd.f32 %v1437_v5, %v5654_v36  ;;  %v2320_v50 = vpop.f32.mrf.mxu1  ;;  %v1439_v56 = vpop.f32.mrf.mxu0  ;;  %3921 = vmatprep.subr.bf16.mxu0 %v4961_v55 }
 0x1ff   :  { %2963 = vst.msk [vmem:[#allocation2] sm:$0xf] %vm2962_vm3, %v4630_v60  ;;  %v6477_v10 = vpack.c.bf16 %v2000_v41, %v1998_v6  ;;  %v1440_v0 = vadd.f32 %v1439_v56, %v5644_v33  ;;  %v2001_v11 = vmax.f32 %v1829_v46, 0.0  ;;  %3922 = vmatpush1.bf16.msra.mxu0 %v4959_v25 }
 0x200   :  { %v2603_v40 = vmax.f32 %v2319_v62, 0.0  ;;  %v1831_v24 = vadd.f32 %v6338_v12, %v1438_v47  ;;  %v2323_v17 = vpop.f32.mrf.mxu1  ;;  %2514 = vmatmul.mubr.bf16.gmra.mxu1 %v6344_v39  ;;  %v1441_v2 = vpop.f32.mrf.mxu0 }
 0x201   :  { %v1833_v63 = vadd.f32 %v6342_v19, %v1440_v0  ;;  %v2324_v4 = vadd.f32 %v6457_v57, %v2323_v17  ;;  %4453 = vmatprep.mubr.msk.bf16.mxu1 %vm2172_vm2, %v6378_v7  ;;  %v1442_v32 = vadd.f32 %v1441_v2, %v5654_v36 }
 0x202   :  { %v4631_v51 = vpack.c.bf16 %v2603_v40, %v2603_v40  ;;  %v2325_v44 = vpop.f32.mrf.mxu1  ;;  %v1445_v52 = vpop.f32.mrf.mxu0  ;;  %v2002_v34 = vmax.f32 %v1831_v24, 0.0 }
 0x203   :  { %v2003_v12 = vmax.f32 %v1833_v63, 0.0  ;;  %v2604_v8 = vmax.f32 %v2324_v4, 0.0  ;;  %v1835_v39 = vadd.f32 %v6347_v28, %v1442_v32  ;;  %v1446_v37 = vadd.f32 %v1445_v52, %v5644_v33 }
 0x204   :  { %2964 = vst.msk [vmem:[#allocation2 + $0x4] sm:$0xf] %vm2962_vm3, %v4631_v51  ;;  %v2326_v19 = vpop.f32.mrf.mxu1  ;;  %v1447_v49 = vpop.f32.mrf.mxu0 }
 0x205   :  { %v6496_v7 = vpack.c.bf16 %v2003_v12, %v2001_v11  ;;  %v4632_v5 = vpack.c.bf16 %v2604_v8, %v2604_v8  ;;  %v2004_v6 = vmax.f32 %v1835_v39, 0.0  ;;  %v1839_v60 = vadd.f32 %v6353_v53, %v1446_v37 }
 0x206   :  { %v2327_v41 = vadd.f32 %v6457_v57, %v2326_v19  ;;  %v1448_v46 = vadd.f32 %v1447_v49, %v5654_v36  ;;  %v2328_v62 = vpop.f32.mrf.mxu1  ;;  %v1449_v47 = vpop.f32.mrf.mxu0  ;;  %v3035_v28 = vld [vmem:[#allocation2] sm:$0xf] }
 0x207   :  { %2965 = vst.msk [vmem:[#allocation2 + $0x8] sm:$0xf] %vm2962_vm3, %v4632_v5  ;;  %v6502_v50 = vpack.c.bf16 %v2004_v6, %v2002_v34  ;;  %v1450_v56 = vadd.f32 %v1449_v47, %v5644_v33  ;;  %3037 = vst.msk [vmem:[#allocation3] sm:$0xf] %vm2962_vm3, %v3035_v28  ;;  %v2005_v2 = vmax.f32 %v1839_v60, 0.0 }
 0x208   :  { %v2605_v0 = vmax.f32 %v2327_v41, 0.0  ;;  %v2331_v25 = vpop.f32.mrf.mxu1  ;;  %2522 = vmatmul.mubr.bf16.gmra.mxu1 %v6373_v20  ;;  %v1451_v53 = vpop.f32.mrf.mxu0  ;;  %v1841_v55 = vadd.f32 %v6361_v14, %v1448_v46  ;;  %v4964_v41 = vld [vmem:[%s7108_s5 + $0x24] ss:$8 sps:$4 sm:$0xff]  }
 0x209   :  { %v1843_v40 = vadd.f32 %v6371_v38, %v1450_v56  ;;  %v2332_v24 = vadd.f32 %v6457_v57, %v2331_v25  ;;  %4454 = vmatprep.mubr.msk.bf16.mxu1 %vm2172_vm2, %v6401_v61  ;;  %v1452_v17 = vadd.f32 %v1451_v53, %v5654_v36  ;;  %3923 = vmatprep.subr.bf16.mxu0 %v4964_v41 }
 0x20a   :  { %v4633_v63 = vpack.c.bf16 %v2605_v0, %v2605_v0  ;;  %v2333_v4 = vpop.f32.mrf.mxu1  ;;  %v1455_v32 = vpop.f32.mrf.mxu0  ;;  %v2006_v61 = vmax.f32 %v1841_v55, 0.0 }
 0x20b   :  { %v2007_v11 = vmax.f32 %v1843_v40, 0.0  ;;  %v2606_v51 = vmax.f32 %v2332_v24, 0.0  ;;  %v1845_v20 = vadd.f32 %v6376_v43, %v1452_v17  ;;  %v1456_v44 = vadd.f32 %v1455_v32, %v5644_v33  ;;  %v3036_v14 = vld [vmem:[#allocation2 + $0x4] sm:$0xf] }
 0x20c   :  { %2966 = vst.msk [vmem:[#allocation2 + $0xc] sm:$0xf] %vm2962_vm3, %v4633_v63  ;;  %v2334_v38 = vpop.f32.mrf.mxu1  ;;  %v1457_v52 = vpop.f32.mrf.mxu0  ;;  %3038 = vst.msk [vmem:[#allocation3 + $0x14] sm:$0xf] %vm2962_vm3, %v3036_v14 }
 0x20d   :  { %v6517_v12 = vpack.c.bf16 %v2007_v11, %v2005_v2  ;;  %v4634_v8 = vpack.c.bf16 %v2606_v51, %v2606_v51  ;;  %v2008_v39 = vmax.f32 %v1845_v20, 0.0  ;;  %v1849_v37 = vadd.f32 %v6382_v58, %v1456_v44  ;;  %v4962_v58 = vld [vmem:[%s7108_s5 + $0x20] ss:$8 sps:$4 sm:$0xff]  }
 0x20e   :  { %v2335_v19 = vadd.f32 %v6457_v57, %v2334_v38  ;;  %v1458_v43 = vadd.f32 %v1457_v52, %v5654_v36  ;;  %v2336_v49 = vpop.f32.mrf.mxu1  ;;  %v3039_v34 = vld [vmem:[#allocation2 + $0x8] sm:$0xf]  ;;  %v1459_v5 = vpop.f32.mrf.mxu0  ;;  %3924 = vmatpush1.bf16.msra.mxu0 %v4962_v58 }
 0x20f   :  { %2967 = vst.msk [vmem:[#allocation2 + $0x10] sm:$0xf] %vm2962_vm3, %v4634_v8  ;;  %v6523_v6 = vpack.c.bf16 %v2008_v39, %v2006_v61  ;;  %3043 = vrot.lane.b32.xlu0 %v3039_v34, %s5080_s12  ;;  %v1460_v60 = vadd.f32 %v1459_v5, %v5644_v33  ;;  %v2009_v53 = vmax.f32 %v1849_v37, 0.0 }
 0x210   :  { %v2607_v46 = vmax.f32 %v2335_v19, 0.0  ;;  %v1851_v62 = vadd.f32 %v6390_v22, %v1458_v43  ;;  %v2339_v47 = vpop.f32.mrf.mxu1  ;;  %2530 = vmatmul.mubr.bf16.gmra.mxu1 %v6396_v31  ;;  %v1461_v28 = vpop.f32.mrf.mxu0 }
 0x211   :  { %v1853_v56 = vadd.f32 %v6394_v21, %v1460_v60  ;;  %v2340_v0 = vadd.f32 %v6457_v57, %v2339_v47  ;;  %4455 = vmatprep.mubr.msk.bf16.mxu1 %vm2172_vm2, %v6430_v59  ;;  %v1462_v25 = vadd.f32 %v1461_v28, %v5654_v36 }
 0x212   :  { %v4635_v55 = vpack.c.bf16 %v2607_v46, %v2607_v46  ;;  %v2341_v40 = vpop.f32.mrf.mxu1  ;;  %v1465_v24 = vpop.f32.mrf.mxu0  ;;  %v2010_v4 = vmax.f32 %v1851_v62, 0.0 }
 0x213   :  { %v2011_v22 = vmax.f32 %v1853_v56, 0.0  ;;  %v2608_v17 = vmax.f32 %v2340_v0, 0.0  ;;  %v1855_v31 = vadd.f32 %v6399_v9, %v1462_v25  ;;  %v3040_v2 = vld [vmem:[#allocation2 + $0xc] sm:$0xf]  ;;  %v1466_v21 = vadd.f32 %v1465_v24, %v5644_v33 }
 0x214   :  { %2968 = vst.msk [vmem:[#allocation2 + $0x14] sm:$0xf] %vm2962_vm3, %v4635_v55  ;;  %3045 = vrot.lane.b32.xlu0 %v3040_v2, %s5080_s12  ;;  %v2342_v59 = vpop.f32.mrf.mxu1  ;;  %v1467_v63 = vpop.f32.mrf.mxu0 }
 0x215   :  { %v6544_v32 = vpack.c.bf16 %v2011_v22, %v2009_v53  ;;  %v4636_v11 = vpack.c.bf16 %v2608_v17, %v2608_v17  ;;  %v2012_v51 = vmax.f32 %v1855_v31, 0.0  ;;  %v1859_v20 = vadd.f32 %v6405_v48, %v1466_v21 }
 0x216   :  { %v2343_v44 = vadd.f32 %v6457_v57, %v2342_v59  ;;  %v1468_v9 = vadd.f32 %v1467_v63, %v5654_v36  ;;  %v2344_v14 = vpop.f32.mrf.mxu1  ;;  %v3052_v38 = vld [vmem:[#allocation2 + $0x10] sm:$0xf]  ;;  %v1469_v52 = vpop.f32.mrf.mxu0 }
 0x217   :  { %2969 = vst.msk [vmem:[#allocation2 + $0x18] sm:$0xf] %vm2962_vm3, %v4636_v11  ;;  %v6550_v61 = vpack.c.bf16 %v2012_v51, %v2010_v4  ;;  %v1470_v8 = vadd.f32 %v1469_v52, %v5644_v33  ;;  %v2013_v5 = vmax.f32 %v1859_v20, 0.0 }
 0x218   :  { %v2609_v39 = vmax.f32 %v2343_v44, 0.0  ;;  %3056 = vrot.lane.b32.xlu0 %v3052_v38, %s5081_s15  ;;  %v2347_v37 = vpop.f32.mrf.mxu1  ;;  %2538 = vmatmul.mubr.bf16.gmra.mxu1 %v6425_v27  ;;  %v1471_v48 = vpop.f32.mrf.mxu0  ;;  %v1861_v19 = vadd.f32 %v6413_v18, %v1468_v9 }
 0x219   :  { %v1863_v43 = vadd.f32 %v6423_v16, %v1470_v8  ;;  %v2348_v49 = vadd.f32 %v6457_v57, %v2347_v37  ;;  %4456 = vmatprep.mubr.msk.bf16.mxu1 %vm2172_vm2, %v6459_v54  ;;  %v1472_v34 = vadd.f32 %v1471_v48, %v5654_v36 }
 0x21a   :  { %v4637_v60 = vpack.c.bf16 %v2609_v39, %v2609_v39  ;;  %v2349_v58 = vpop.f32.mrf.mxu1  ;;  %v1475_v41 = vpop.f32.mrf.mxu0  ;;  %v2014_v54 = vmax.f32 %v1861_v19, 0.0 }
 0x21b   :  { %v2015_v46 = vmax.f32 %v1863_v43, 0.0  ;;  %v2610_v62 = vmax.f32 %v2348_v49, 0.0  ;;  %v1865_v27 = vadd.f32 %v6428_v42, %v1472_v34  ;;  %v3053_v47 = vld [vmem:[#allocation2 + $0x14] sm:$0xf]  ;;  %v1476_v18 = vadd.f32 %v1475_v41, %v5644_v33 }
 0x21c   :  { %2970 = vst.msk [vmem:[#allocation2 + $0x1c] sm:$0xf] %vm2962_vm3, %v4637_v60  ;;  %3058 = vrot.lane.b32.xlu1 %v3053_v47, %s5081_s15  ;;  %v2350_v16 = vpop.f32.mrf.mxu1  ;;  %v1477_v28 = vpop.f32.mrf.mxu0 }
 0x21d   :  { %v6565_v56 = vpack.c.bf16 %v2015_v46, %v2013_v5  ;;  %v4638_v0 = vpack.c.bf16 %v2610_v62, %v2610_v62  ;;  %v2016_v25 = vmax.f32 %v1865_v27, 0.0  ;;  %v1869_v53 = vadd.f32 %v6434_v45, %v1476_v18 }
 0x21e   :  { %v2351_v55 = vadd.f32 %v6457_v57, %v2350_v16  ;;  %v1478_v42 = vadd.f32 %v1477_v28, %v5654_v36  ;;  %v2352_v40 = vpop.f32.mrf.mxu1  ;;  %v3065_v24 = vld [vmem:[#allocation2 + $0x18] sm:$0xf]  ;;  %v1479_v22 = vpop.f32.mrf.mxu0 }
 0x21f   :  { %2971 = vst.msk [vmem:[#allocation2 + $0x20] sm:$0xf] %vm2962_vm3, %v4638_v0  ;;  %v6571_v17 = vpack.c.bf16 %v2016_v25, %v2014_v54  ;;  %3069 = vrot.lane.b32.xlu0 %v3065_v24, %s5082_s16  ;;  %v1480_v31 = vadd.f32 %v1479_v22, %v5644_v33  ;;  %v2017_v51 = vmax.f32 %v1869_v53, 0.0  ;;  %v4968_v25 = vld [vmem:[%s7108_s5] ss:$8 sps:$4 sm:$0xff]  }
 0x220   :  { %v2611_v2 = vmax.f32 %v2351_v55, 0.0  ;;  %v1871_v21 = vadd.f32 %v6442_v13, %v1478_v42  ;;  %v2355_v45 = vpop.f32.mrf.mxu1  ;;  %2546 = vmatmul.mubr.bf16.gmra.mxu1 %v6448_v3  ;;  %v1481_v59 = vpop.f32.mrf.mxu0  ;;  %v4965_v3 = vld [vmem:[%s7108_s5 + $0x10] ss:$8 sps:$4 sm:$0xff]  }
 0x221   :  { %v1873_v63 = vadd.f32 %v6446_v35, %v1480_v31  ;;  %v2356_v4 = vadd.f32 %v6457_v57, %v2355_v45  ;;  %4457 = vmatprep.mubr.msk.bf16.mxu1 %vm2172_vm2, %v6477_v10  ;;  %v1482_v11 = vadd.f32 %v1481_v59, %v5654_v36  ;;  %v4967_v36 = vld [vmem:[%s7108_s5 + $0x14] ss:$8 sps:$4 sm:$0xff]  }
 0x222   :  { %v4639_v20 = vpack.c.bf16 %v2611_v2, %v2611_v2  ;;  %v2357_v44 = vpop.f32.mrf.mxu1  ;;  %v2018_v35 = vmax.f32 %v1871_v21, 0.0  ;;  %3925 = vmatprep.subr.bf16.mxu0 %v4967_v36 }
 0x223   :  { %v2019_v33 = vmax.f32 %v1873_v63, 0.0  ;;  %v2612_v9 = vmax.f32 %v2356_v4, 0.0  ;;  %v1875_v13 = vadd.f32 %v6452_v29, %v1482_v11  ;;  %v3066_v14 = vld [vmem:[#allocation2 + $0x1c] sm:$0xf]  ;;  %3926 = vmatpush1.bf16.msra.mxu0 %v4965_v3 }
 0x224   :  { %2972 = vst.msk [vmem:[#allocation2 + $0x24] sm:$0xf] %vm2962_vm3, %v4639_v20  ;;  %3071 = vrot.lane.b32.xlu1 %v3066_v14, %s5082_s16  ;;  %v2358_v10 = vpop.f32.mrf.mxu1 }
 0x225   :  { %v6591_v38 = vpack.c.bf16 %v2019_v33, %v2017_v51  ;;  %v4640_v52 = vpack.c.bf16 %v2612_v9, %v2612_v9  ;;  %v2020_v8 = vmax.f32 %v1875_v13, 0.0  ;;  %v2359_v29 = vadd.f32 %v6457_v57, %v2358_v10 }
 0x226   :  { %v2360_v39 = vpop.f32.mrf.mxu1  ;;  %v3078_v37 = vld [vmem:[#allocation2 + $0x20] sm:$0xf] }
 0x227   :  { %2973 = vst.msk [vmem:[#allocation2 + $0x28] sm:$0xf] %vm2962_vm3, %v4640_v52  ;;  %v6595_v48 = vpack.c.bf16 %v2020_v8, %v2018_v35  ;;  %v2613_v19 = vmax.f32 %v2359_v29, 0.0  ;;  %3082 = vrot.lane.b32.xlu0 %v3078_v37, %s5083_s21  ;;  %v4973_v8 = vld [vmem:[%s7108_s5 + $0xf4] ss:$8 sps:$4 sm:$0xff]  }
 0x228   :  { %v2363_v43 = vpop.f32.mrf.mxu1  ;;  %2554 = vmatmul.mubr.bf16.gmra.mxu1 %v6471_v15 }
 0x229   :  { %v4641_v49 = vpack.c.bf16 %v2613_v19, %v2613_v19  ;;  %v2364_v34 = vadd.f32 %v6457_v57, %v2363_v43  ;;  %4458 = vmatprep.mubr.msk.bf16.mxu1 %vm2172_vm2, %v6502_v50 }
 0x22a   :  { %v2365_v5 = vpop.f32.mrf.mxu1 }
 0x22b   :  { %2974 = vst.msk [vmem:[#allocation2 + $0x2c] sm:$0xf] %vm2962_vm3, %v4641_v49  ;;  %v2614_v60 = vmax.f32 %v2364_v34, 0.0  ;;  %v3079_v58 = vld [vmem:[#allocation2 + $0x24] sm:$0xf] }
 0x22c   :  { %3084 = vrot.lane.b32.xlu1 %v3079_v58, %s5083_s21  ;;  %v2366_v41 = vpop.f32.mrf.mxu1 }
 0x22d   :  { %v4642_v46 = vpack.c.bf16 %v2614_v60, %v2614_v60  ;;  %v2367_v62 = vadd.f32 %v6457_v57, %v2366_v41 }
 0x22e   :  { %v2368_v27 = vpop.f32.mrf.mxu1  ;;  %v3091_v47 = vld [vmem:[#allocation2 + $0x28] sm:$0xf] }
 0x22f   :  { %2975 = vst.msk [vmem:[#allocation2 + $0x30] sm:$0xf] %vm2962_vm3, %v4642_v46  ;;  %v2615_v15 = vmax.f32 %v2367_v62, 0.0  ;;  %3095 = vrot.lane.b32.xlu0 %v3091_v47, %s5084_s22 }
 0x230   :  { %v2371_v50 = vpop.f32.mrf.mxu1  ;;  %2562 = vmatmul.mubr.bf16.gmra.mxu1 %v6496_v7  ;;  %v4970_v7 = vld [vmem:[%s7108_s5 + $0x4] ss:$8 sps:$4 sm:$0xff]  }
 0x231   :  { %v4643_v18 = vpack.c.bf16 %v2615_v15, %v2615_v15  ;;  %v2372_v16 = vadd.f32 %v6457_v57, %v2371_v50  ;;  %4459 = vmatprep.mubr.msk.bf16.mxu1 %vm2172_vm2, %v6523_v6  ;;  %3927 = vmatprep.subr.bf16.mxu0 %v4970_v7 }
 0x232   :  { %v2373_v28 = vpop.f32.mrf.mxu1  ;;  %v3092_v54 = vld [vmem:[#allocation2 + $0x2c] sm:$0xf]  ;;  %3928 = vmatpush1.bf16.msra.mxu0 %v4968_v25 }
 0x233   :  { %2976 = vst.msk [vmem:[#allocation2 + $0x34] sm:$0xf] %vm2962_vm3, %v4643_v18  ;;  %v2616_v0 = vmax.f32 %v2372_v16, 0.0  ;;  %3097 = vrot.lane.b32.xlu1 %v3092_v54, %s5084_s22  ;;  %3929 = vmatprep.subr.bf16.mxu0 %v4973_v8  ;;  %v4976_v25 = vld [vmem:[%s7108_s5 + $0xe4] ss:$8 sps:$4 sm:$0xff]  }
 0x234   :  { %v2374_v53 = vpop.f32.mrf.mxu1  ;;  %v4982_v8 = vld [vmem:[%s7108_s5 + $0xc4] ss:$8 sps:$4 sm:$0xff]  }
 0x235   :  { %v4644_v55 = vpack.c.bf16 %v2616_v0, %v2616_v0  ;;  %v2375_v42 = vadd.f32 %v6457_v57, %v2374_v53 }
 0x236   :  { %v2376_v6 = vpop.f32.mrf.mxu1  ;;  %v3104_v40 = vld [vmem:[#allocation2 + $0x30] sm:$0xf] }
 0x237   :  { %2977 = vst.msk [vmem:[#allocation2 + $0x38] sm:$0xf] %vm2962_vm3, %v4644_v55  ;;  %v2617_v24 = vmax.f32 %v2375_v42, 0.0  ;;  %3108 = vrot.lane.b32.xlu0 %v3104_v40, %s5085_s27 }
 0x238   :  { %v2379_v22 = vpop.f32.mrf.mxu1  ;;  %2570 = vmatmul.mubr.bf16.gmra.mxu1 %v6517_v12 }
 0x239   :  { %v4645_v31 = vpack.c.bf16 %v2617_v24, %v2617_v24  ;;  %v2380_v2 = vadd.f32 %v6457_v57, %v2379_v22  ;;  %4460 = vmatprep.mubr.msk.bf16.mxu1 %vm2172_vm2, %v6550_v61 }
 0x23a   :  { %v2381_v21 = vpop.f32.mrf.mxu1  ;;  %v3105_v45 = vld [vmem:[#allocation2 + $0x34] sm:$0xf] }
 0x23b   :  { %2978 = vst.msk [vmem:[#allocation2 + $0x3c] sm:$0xf] %vm2962_vm3, %v4645_v31  ;;  %v2618_v59 = vmax.f32 %v2380_v2, 0.0  ;;  %3110 = vrot.lane.b32.xlu1 %v3105_v45, %s5085_s27 }
 0x23c   :  { %v2382_v63 = vpop.f32.mrf.mxu1 }
 0x23d   :  { %v4646_v4 = vpack.c.bf16 %v2618_v59, %v2618_v59  ;;  %v2383_v11 = vadd.f32 %v6457_v57, %v2382_v63 }
 0x23e   :  { %v2384_v51 = vpop.f32.mrf.mxu1  ;;  %v3117_v20 = vld [vmem:[#allocation2 + $0x38] sm:$0xf] }
 0x23f   :  { %2979 = vst.msk [vmem:[#allocation2 + $0x40] sm:$0xf] %vm2962_vm3, %v4646_v4  ;;  %v2619_v12 = vmax.f32 %v2383_v11, 0.0  ;;  %3121 = vrot.lane.b32.xlu0 %v3117_v20, %s5086_s28 }
 0x240   :  { %v2387_v61 = vpop.f32.mrf.mxu1  ;;  %2578 = vmatmul.mubr.bf16.gmra.mxu1 %v6544_v32 }
 0x241   :  { %v4647_v44 = vpack.c.bf16 %v2619_v12, %v2619_v12  ;;  %v2388_v33 = vadd.f32 %v6457_v57, %v2387_v61  ;;  %4461 = vmatprep.mubr.msk.bf16.mxu1 %vm2172_vm2, %v6571_v17  ;;  %v4971_v17 = vld [vmem:[%s7108_s5 + $0xf0] ss:$8 sps:$4 sm:$0xff]  }
 0x242   :  { %v2389_v9 = vpop.f32.mrf.mxu1  ;;  %v3118_v13 = vld [vmem:[#allocation2 + $0x3c] sm:$0xf]  ;;  %3930 = vmatpush2.bf16.msra.mxu0 %v4971_v17 }
 0x243   :  { %2980 = vst.msk [vmem:[#allocation2 + $0x44] sm:$0xf] %vm2962_vm3, %v4647_v44  ;;  %v2620_v14 = vmax.f32 %v2388_v33, 0.0  ;;  %3123 = vrot.lane.b32.xlu1 %v3118_v13, %s5086_s28  ;;  %3931 = vmatprep.subr.bf16.mxu0 %v4976_v25  ;;  %v4989_v25 = vld [vmem:[%s7108_s5 + $0x90] ss:$8 sps:$4 sm:$0xff]  }
 0x244   :  { %v2390_v3 = vpop.f32.mrf.mxu1 }
 0x245   :  { %v4648_v35 = vpack.c.bf16 %v2620_v14, %v2620_v14  ;;  %v2391_v10 = vadd.f32 %v6457_v57, %v2390_v3  ;;  %v4979_v14 = vld [vmem:[%s7108_s5 + $0xd4] ss:$8 sps:$4 sm:$0xff]  }
 0x246   :  { %v2392_v36 = vpop.f32.mrf.mxu1  ;;  %v3130_v52 = vld [vmem:[#allocation2 + $0x40] sm:$0xf] }
 0x247   :  { %2981 = vst.msk [vmem:[#allocation2 + $0x48] sm:$0xf] %vm2962_vm3, %v4648_v35  ;;  %v2621_v32 = vmax.f32 %v2391_v10, 0.0  ;;  %3132 = vst.msk [vmem:[#allocation3 + $0x4] sm:$0xf] %vm2962_vm3, %v3130_v52 }
 0x248   :  { %v2395_v29 = vpop.f32.mrf.mxu1  ;;  %2586 = vmatmul.mubr.bf16.gmra.mxu1 %v6565_v56  ;;  %v4977_v35 = vld [vmem:[%s7108_s5 + $0xd0] ss:$8 sps:$4 sm:$0xff]  }
 0x249   :  { %v4649_v39 = vpack.c.bf16 %v2621_v32, %v2621_v32  ;;  %v2396_v37 = vadd.f32 %v6457_v57, %v2395_v29  ;;  %4462 = vmatprep.mubr.msk.bf16.mxu1 %vm2172_vm2, %v6595_v48 }
 0x24a   :  { %v2397_v19 = vpop.f32.mrf.mxu1  ;;  %v3131_v43 = vld [vmem:[#allocation2 + $0x44] sm:$0xf] }
 0x24b   :  { %2982 = vst.msk [vmem:[#allocation2 + $0x4c] sm:$0xf] %vm2962_vm3, %v4649_v39  ;;  %v2622_v49 = vmax.f32 %v2396_v37, 0.0  ;;  %3133 = vst.msk [vmem:[#allocation3 + $0x18] sm:$0xf] %vm2962_vm3, %v3131_v43 }
 0x24c   :  { %v2398_v34 = vpop.f32.mrf.mxu1  ;;  %v4980_v39 = vld [vmem:[%s7108_s5 + $0xc0] ss:$8 sps:$4 sm:$0xff]  }
 0x24d   :  { %v4650_v5 = vpack.c.bf16 %v2622_v49, %v2622_v49  ;;  %v2399_v60 = vadd.f32 %v6457_v57, %v2398_v34 }
 0x24e   :  { %v2400_v56 = vpop.f32.mrf.mxu1  ;;  %v3134_v58 = vld [vmem:[#allocation2 + $0x48] sm:$0xf] }
 0x24f   :  { %2983 = vst.msk [vmem:[#allocation2 + $0x50] sm:$0xf] %vm2962_vm3, %v4650_v5  ;;  %v2623_v41 = vmax.f32 %v2399_v60, 0.0  ;;  %3138 = vrot.lane.b32.xlu1 %v3134_v58, %s5080_s12  ;;  %v4985_v5 = vld [vmem:[%s7108_s5 + $0xb4] ss:$8 sps:$4 sm:$0xff]  }
 0x250   :  { %v2403_v48 = vpop.f32.mrf.mxu1  ;;  %2594 = vmatmul.mubr.bf16.gmra.mxu1 %v6591_v38  ;;  %v4974_v38 = vld [vmem:[%s7108_s5 + $0xe0] ss:$8 sps:$4 sm:$0xff]   ;;  %v4983_v56 = vld [vmem:[%s7108_s5 + $0xb0] ss:$8 sps:$4 sm:$0xff]  }
 0x251   :  { %v4651_v46 = vpack.c.bf16 %v2623_v41, %v2623_v41  ;;  %v2404_v62 = vadd.f32 %v6457_v57, %v2403_v48  ;;  %3932 = vmatpush2.bf16.msra.mxu0 %v4974_v38 }
 0x252   :  { %v2405_v27 = vpop.f32.mrf.mxu1  ;;  %v3135_v47 = vld [vmem:[#allocation2 + $0x4c] sm:$0xf]  ;;  %3933 = vmatprep.subr.bf16.mxu0 %v4979_v14 }
 0x253   :  { %2984 = vst.msk [vmem:[#allocation2 + $0x54] sm:$0xf] %vm2962_vm3, %v4651_v46  ;;  %v2624_v15 = vmax.f32 %v2404_v62, 0.0  ;;  %3140 = vrot.lane.b32.xlu1 %v3135_v47, %s5080_s12  ;;  %v4988_v27 = vld [vmem:[%s7108_s5 + $0xa4] ss:$8 sps:$4 sm:$0xff]  }
 0x254   :  { %v2406_v50 = vpop.f32.mrf.mxu1 }
 0x255   :  { %v4652_v18 = vpack.c.bf16 %v2624_v15, %v2624_v15  ;;  %v2407_v16 = vadd.f32 %v6457_v57, %v2406_v50  ;;  %3934 = vmatpush2.bf16.msra.mxu0 %v4977_v35  ;;  %v4986_v15 = vld [vmem:[%s7108_s5 + $0xa0] ss:$8 sps:$4 sm:$0xff]  }
 0x256   :  { %v2408_v28 = vpop.f32.mrf.mxu1  ;;  %v3146_v54 = vld [vmem:[#allocation2 + $0x50] sm:$0xf]  ;;  %3935 = vmatprep.subr.bf16.mxu0 %v4982_v8 }
 0x257   :  { %2985 = vst.msk [vmem:[#allocation2 + $0x58] sm:$0xf] %vm2962_vm3, %v4652_v18  ;;  %v2625_v0 = vmax.f32 %v2407_v16, 0.0  ;;  %3150 = vrot.lane.b32.xlu0 %v3146_v54, %s5081_s15 }
 0x258   :  { %v2411_v7 = vpop.f32.mrf.mxu1 }
 0x259   :  { %v4653_v53 = vpack.c.bf16 %v2625_v0, %v2625_v0  ;;  %v2412_v55 = vadd.f32 %v6457_v57, %v2411_v7  ;;  %3936 = vmatpush2.bf16.msra.mxu0 %v4980_v39  ;;  %v4991_v0 = vld [vmem:[%s7108_s5 + $0x94] ss:$8 sps:$4 sm:$0xff]  }
 0x25a   :  { %v2413_v42 = vpop.f32.mrf.mxu1  ;;  %v3147_v6 = vld [vmem:[#allocation2 + $0x54] sm:$0xf]  ;;  %3937 = vmatprep.subr.bf16.mxu0 %v4985_v5 }
 0x25b   :  { %2986 = vst.msk [vmem:[#allocation2 + $0x5c] sm:$0xf] %vm2962_vm3, %v4653_v53  ;;  %v2626_v40 = vmax.f32 %v2412_v55, 0.0  ;;  %3152 = vrot.lane.b32.xlu1 %v3147_v6, %s5081_s15 }
 0x25c   :  { %v2414_v24 = vpop.f32.mrf.mxu1 }
 0x25d   :  { %v4654_v22 = vpack.c.bf16 %v2626_v40, %v2626_v40  ;;  %v2415_v31 = vadd.f32 %v6457_v57, %v2414_v24  ;;  %3938 = vmatpush2.bf16.msra.mxu0 %v4983_v56  ;;  %v4994_v40 = vld [vmem:[%s7108_s5 + $0x84] ss:$8 sps:$4 sm:$0xff]  }
 0x25e   :  { %v2416_v2 = vpop.f32.mrf.mxu1  ;;  %v3158_v21 = vld [vmem:[#allocation2 + $0x58] sm:$0xf]  ;;  %3939 = vmatprep.subr.bf16.mxu0 %v4988_v27 }
 0x25f   :  { %2987 = vst.msk [vmem:[#allocation2 + $0x60] sm:$0xf] %vm2962_vm3, %v4654_v22  ;;  %v2627_v45 = vmax.f32 %v2415_v31, 0.0  ;;  %3162 = vrot.lane.b32.xlu0 %v3158_v21, %s5082_s16  ;;  %v4992_v22 = vld [vmem:[%s7108_s5 + $0x80] ss:$8 sps:$4 sm:$0xff]  }
 0x260   :  { %v2419_v59 = vpop.f32.mrf.mxu1 }
 0x261   :  { %v4655_v63 = vpack.c.bf16 %v2627_v45, %v2627_v45  ;;  %v2420_v4 = vadd.f32 %v6457_v57, %v2419_v59  ;;  %3940 = vmatpush2.bf16.msra.mxu0 %v4986_v15 }
 0x262   :  { %v2421_v11 = vpop.f32.mrf.mxu1  ;;  %v3159_v51 = vld [vmem:[#allocation2 + $0x5c] sm:$0xf]  ;;  %3941 = vmatprep.subr.bf16.mxu0 %v4991_v0 }
 0x263   :  { %2988 = vst.msk [vmem:[#allocation2 + $0x64] sm:$0xf] %vm2962_vm3, %v4655_v63  ;;  %v2628_v20 = vmax.f32 %v2420_v4, 0.0  ;;  %3164 = vrot.lane.b32.xlu1 %v3159_v51, %s5082_s16 }
 0x264   :  { %v2422_v12 = vpop.f32.mrf.mxu1 }
 0x265   :  { %v4656_v61 = vpack.c.bf16 %v2628_v20, %v2628_v20  ;;  %v2423_v44 = vadd.f32 %v6457_v57, %v2422_v12  ;;  %3942 = vmatpush2.bf16.msra.mxu0 %v4989_v25 }
 0x266   :  { %v2424_v33 = vpop.f32.mrf.mxu1  ;;  %v3170_v9 = vld [vmem:[#allocation2 + $0x60] sm:$0xf]  ;;  %3943 = vmatprep.subr.bf16.mxu0 %v4994_v40 }
 0x267   :  { %2989 = vst.msk [vmem:[#allocation2 + $0x68] sm:$0xf] %vm2962_vm3, %v4656_v61  ;;  %v2629_v13 = vmax.f32 %v2423_v44, 0.0  ;;  %3174 = vrot.lane.b32.xlu0 %v3170_v9, %s5083_s21 }
 0x268   :  { %v2427_v3 = vpop.f32.mrf.mxu1 }
 0x269   :  { %v4657_v10 = vpack.c.bf16 %v2629_v13, %v2629_v13  ;;  %v2428_v36 = vadd.f32 %v6457_v57, %v2427_v3  ;;  %3944 = vmatpush2.bf16.msra.mxu0 %v4992_v22 }
 0x26a   :  { %v2429_v52 = vpop.f32.mrf.mxu1  ;;  %v3171_v32 = vld [vmem:[#allocation2 + $0x64] sm:$0xf] }
 0x26b   :  { %2990 = vst.msk [vmem:[#allocation2 + $0x6c] sm:$0xf] %vm2962_vm3, %v4657_v10  ;;  %v2630_v17 = vmax.f32 %v2428_v36, 0.0  ;;  %3176 = vrot.lane.b32.xlu1 %v3171_v32, %s5083_s21 }
 0x26c   :  { %v2430_v29 = vpop.f32.mrf.mxu1 }
 0x26d   :  { %v4658_v37 = vpack.c.bf16 %v2630_v17, %v2630_v17  ;;  %v2431_v19 = vadd.f32 %v6457_v57, %v2430_v29 }
 0x26e   :  { %v2432_v43 = vpop.f32.mrf.mxu1  ;;  %v3182_v49 = vld [vmem:[#allocation2 + $0x68] sm:$0xf] }
 0x26f   :  { %2991 = vst.msk [vmem:[#allocation2 + $0x70] sm:$0xf] %vm2962_vm3, %v4658_v37  ;;  %v2631_v34 = vmax.f32 %v2431_v19, 0.0  ;;  %3186 = vrot.lane.b32.xlu0 %v3182_v49, %s5084_s22 }
 0x270   :  { %v2435_v60 = vpop.f32.mrf.mxu1 }
 0x271   :  { %v4659_v58 = vpack.c.bf16 %v2631_v34, %v2631_v34  ;;  %v2436_v41 = vadd.f32 %v6457_v57, %v2435_v60 }
 0x272   :  { %v2437_v48 = vpop.f32.mrf.mxu1  ;;  %v3183_v46 = vld [vmem:[#allocation2 + $0x6c] sm:$0xf] }
 0x273   :  { %2992 = vst.msk [vmem:[#allocation2 + $0x74] sm:$0xf] %vm2962_vm3, %v4659_v58  ;;  %v2632_v62 = vmax.f32 %v2436_v41, 0.0  ;;  %3188 = vrot.lane.b32.xlu1 %v3183_v46, %s5084_s22 }
 0x274   :  { %v2438_v47 = vpop.f32.mrf.mxu1 }
 0x275   :  { %v4660_v50 = vpack.c.bf16 %v2632_v62, %v2632_v62  ;;  %v2439_v18 = vadd.f32 %v6457_v57, %v2438_v47 }
 0x276   :  { %v2440_v16 = vpop.f32.mrf.mxu1  ;;  %v3194_v28 = vld [vmem:[#allocation2 + $0x70] sm:$0xf] }
 0x277   :  { %2993 = vst.msk [vmem:[#allocation2 + $0x78] sm:$0xf] %vm2962_vm3, %v4660_v50  ;;  %v2633_v54 = vmax.f32 %v2439_v18, 0.0  ;;  %3198 = vrot.lane.b32.xlu0 %v3194_v28, %s5085_s27 }
 0x278   :  { %v2443_v38 = vpop.f32.mrf.mxu1 }
 0x279   :  { %v4661_v7 = vpack.c.bf16 %v2633_v54, %v2633_v54  ;;  %v2444_v53 = vadd.f32 %v6457_v57, %v2443_v38  ;;  %v6761_v38 = vld [vmem:[%s7109_s4] ss:$0 sm:$0xff] }
 0x27a   :  { %v2445_v55 = vpop.f32.mrf.mxu1  ;;  %v3195_v42 = vld [vmem:[#allocation2 + $0x74] sm:$0xf] }
 0x27b   :  { %2994 = vst.msk [vmem:[#allocation2 + $0x7c] sm:$0xf] %vm2962_vm3, %v4661_v7  ;;  %v2634_v6 = vmax.f32 %v2444_v53, 0.0  ;;  %3200 = vrot.lane.b32.xlu1 %v3195_v42, %s5085_s27 }
 0x27c   :  { %v2446_v24 = vpop.f32.mrf.mxu1 }
 0x27d   :  { %v4662_v31 = vpack.c.bf16 %v2634_v6, %v2634_v6  ;;  %v2447_v2 = vadd.f32 %v6457_v57, %v2446_v24 }
 0x27e   :  { %v2448_v21 = vpop.f32.mrf.mxu1  ;;  %v3206_v45 = vld [vmem:[#allocation2 + $0x78] sm:$0xf] }
 0x27f   :  { %2995 = vst.msk [vmem:[#allocation2 + $0x80] sm:$0xf] %vm2962_vm3, %v4662_v31  ;;  %v2635_v59 = vmax.f32 %v2447_v2, 0.0  ;;  %3210 = vrot.lane.b32.xlu0 %v3206_v45, %s5086_s28 }
 0x280   :  { %v2451_v63 = vpop.f32.mrf.mxu1 }
 0x281   :  { %v4663_v4 = vpack.c.bf16 %v2635_v59, %v2635_v59  ;;  %v2452_v11 = vadd.f32 %v6457_v57, %v2451_v63  ;;  %v3044_v51 = vpop.permute.xlu0 %3043 }
 0x282   :  { %3050 = vst.msk [vmem:[#allocation3] sm:$0xf] %vm3049_vm4, %v3044_v51  ;;  %v2453_v20 = vpop.f32.mrf.mxu1  ;;  %v3207_v12 = vld [vmem:[#allocation2 + $0x7c] sm:$0xf] }
 0x283   :  { %2996 = vst.msk [vmem:[#allocation2 + $0x84] sm:$0xf] %vm2962_vm3, %v4663_v4  ;;  %v2636_v61 = vmax.f32 %v2452_v11, 0.0  ;;  %3212 = vrot.lane.b32.xlu1 %v3207_v12, %s5086_s28 }
 0x284   :  { %v2454_v44 = vpop.f32.mrf.mxu1 }
 0x285   :  { %v4664_v33 = vpack.c.bf16 %v2636_v61, %v2636_v61  ;;  %v2455_v9 = vadd.f32 %v6457_v57, %v2454_v44 }
 0x286   :  { %v3046_v13 = vpop.permute.xlu0 %3045  ;;  %v2456_v14 = vpop.f32.mrf.mxu1  ;;  %v3218_v3 = vld [vmem:[#allocation2 + $0x80] sm:$0xf] }
 0x287   :  { %2997 = vst.msk [vmem:[#allocation2 + $0x88] sm:$0xf] %vm2962_vm3, %v4664_v33  ;;  %v2637_v35 = vmax.f32 %v2455_v9, 0.0  ;;  %3220 = vst.msk [vmem:[#allocation3 + $0x8] sm:$0xf] %vm2962_vm3, %v3218_v3 }
 0x288   :  { %3051 = vst.msk [vmem:[#allocation3 + $0x14] sm:$0xf] %vm3049_vm4, %v3046_v13  ;;  %v2459_v10 = vpop.f32.mrf.mxu1 }
 0x289   :  { %v4665_v36 = vpack.c.bf16 %v2637_v35, %v2637_v35  ;;  %v2460_v52 = vadd.f32 %v6457_v57, %v2459_v10 }
 0x28a   :  { %v3057_v32 = vpop.permute.xlu0 %3056  ;;  %v2461_v17 = vpop.f32.mrf.mxu1  ;;  %v3219_v8 = vld [vmem:[#allocation2 + $0x84] sm:$0xf] }
 0x28b   :  { %2998 = vst.msk [vmem:[#allocation2 + $0x8c] sm:$0xf] %vm2962_vm3, %v4665_v36  ;;  %v2638_v29 = vmax.f32 %v2460_v52, 0.0  ;;  %3221 = vst.msk [vmem:[#allocation3 + $0x1c] sm:$0xf] %vm2962_vm3, %v3219_v8 }
 0x28c   :  { %3063 = vst.msk [vmem:[#allocation3] sm:$0xf] %vm3062_vm5, %v3057_v32  ;;  %v2462_v39 = vpop.f32.mrf.mxu1 }
 0x28d   :  { %v4666_v37 = vpack.c.bf16 %v2638_v29, %v2638_v29  ;;  %v2463_v19 = vadd.f32 %v6457_v57, %v2462_v39 }
 0x28e   :  { %v3059_v43 = vpop.permute.xlu1 %3058  ;;  %v2464_v49 = vpop.f32.mrf.mxu1  ;;  %v3222_v34 = vld [vmem:[#allocation2 + $0x88] sm:$0xf] }
 0x28f   :  { %2999 = vst.msk [vmem:[#allocation2 + $0x90] sm:$0xf] %vm2962_vm3, %v4666_v37  ;;  %v2639_v5 = vmax.f32 %v2463_v19, 0.0  ;;  %3226 = vrot.lane.b32.xlu0 %v3222_v34, %s5080_s12 }
 0x290   :  { %3064 = vst.msk [vmem:[#allocation3 + $0x14] sm:$0xf] %vm3062_vm5, %v3059_v43  ;;  %v2467_v60 = vpop.f32.mrf.mxu1 }
 0x291   :  { %v4667_v56 = vpack.c.bf16 %v2639_v5, %v2639_v5  ;;  %v2468_v58 = vadd.f32 %v6457_v57, %v2467_v60  ;;  %v3070_v41 = vpop.permute.xlu0 %3069 }
 0x292   :  { %3076 = vst.msk [vmem:[#allocation3] sm:$0xf] %vm3075_vm6, %v3070_v41  ;;  %v2469_v48 = vpop.f32.mrf.mxu1  ;;  %v3223_v46 = vld [vmem:[#allocation2 + $0x8c] sm:$0xf] }
 0x293   :  { %3000 = vst.msk [vmem:[#allocation2 + $0x94] sm:$0xf] %vm2962_vm3, %v4667_v56  ;;  %v2640_v62 = vmax.f32 %v2468_v58, 0.0  ;;  %3228 = vrot.lane.b32.xlu1 %v3223_v46, %s5080_s12 }
 0x294   :  { %v2470_v27 = vpop.f32.mrf.mxu1 }
 0x295   :  { %v4668_v47 = vpack.c.bf16 %v2640_v62, %v2640_v62  ;;  %v2471_v15 = vadd.f32 %v6457_v57, %v2470_v27 }
 0x296   :  { %v3072_v50 = vpop.permute.xlu1 %3071  ;;  %v2472_v18 = vpop.f32.mrf.mxu1  ;;  %v3234_v16 = vld [vmem:[#allocation2 + $0x90] sm:$0xf] }
 0x297   :  { %3001 = vst.msk [vmem:[#allocation2 + $0x98] sm:$0xf] %vm2962_vm3, %v4668_v47  ;;  %v2641_v28 = vmax.f32 %v2471_v15, 0.0  ;;  %3238 = vrot.lane.b32.xlu0 %v3234_v16, %s5081_s15 }
 0x298   :  { %3077 = vst.msk [vmem:[#allocation3 + $0x14] sm:$0xf] %vm3075_vm6, %v3072_v50  ;;  %v2475_v54 = vpop.f32.mrf.mxu1  ;;  %v5000_v50 = vld [vmem:[%s7108_s5 + $0x174] ss:$8 sps:$4 sm:$0xff]  }
 0x299   :  { %v4669_v0 = vpack.c.bf16 %v2641_v28, %v2641_v28  ;;  %v2476_v57 = vadd.f32 %v6761_v38, %v2475_v54  ;;  %v3083_v25 = vpop.permute.xlu0 %3082  ;;  %3956 = vmatprep.subr.bf16.mxu0 %v5000_v50 }
 0x29a   :  { %3089 = vst.msk [vmem:[#allocation3] sm:$0xf] %vm3088_vm7, %v3083_v25  ;;  %v2477_v7 = vpop.f32.mrf.mxu1  ;;  %v3235_v53 = vld [vmem:[#allocation2 + $0x94] sm:$0xf] }
 0x29b   :  { %3002 = vst.msk [vmem:[#allocation2 + $0x9c] sm:$0xf] %vm2962_vm3, %v4669_v0  ;;  %v2642_v55 = vmax.f32 %v2476_v57, 0.0  ;;  %3240 = vrot.lane.b32.xlu1 %v3235_v53, %s5081_s15 }
 0x29c   :  { %v2478_v42 = vpop.f32.mrf.mxu1 }
 0x29d   :  { %v4670_v6 = vpack.c.bf16 %v2642_v55, %v2642_v55  ;;  %v2479_v40 = vadd.f32 %v6761_v38, %v2478_v42 }
 0x29e   :  { %v3085_v24 = vpop.permute.xlu1 %3084  ;;  %v2480_v22 = vpop.f32.mrf.mxu1  ;;  %v3246_v31 = vld [vmem:[#allocation2 + $0x98] sm:$0xf] }
 0x29f   :  { %3003 = vst.msk [vmem:[#allocation2 + $0xa0] sm:$0xf] %vm2962_vm3, %v4670_v6  ;;  %v2643_v2 = vmax.f32 %v2479_v40, 0.0  ;;  %3250 = vrot.lane.b32.xlu0 %v3246_v31, %s5082_s16 }
 0x2a0   :  { %3090 = vst.msk [vmem:[#allocation3 + $0x14] sm:$0xf] %vm3088_vm7, %v3085_v24  ;;  %v2483_v21 = vpop.f32.mrf.mxu1 }
 0x2a1   :  { %v4671_v45 = vpack.c.bf16 %v2643_v2, %v2643_v2  ;;  %v2484_v59 = vadd.f32 %v6761_v38, %v2483_v21  ;;  %v3096_v63 = vpop.permute.xlu0 %3095 }
 0x2a2   :  { %3102 = vst.msk [vmem:[#allocation3] sm:$0xf] %vm3101_vm8, %v3096_v63  ;;  %v2485_v4 = vpop.f32.mrf.mxu1  ;;  %v3247_v11 = vld [vmem:[#allocation2 + $0x9c] sm:$0xf] }
 0x2a3   :  { %3004 = vst.msk [vmem:[#allocation2 + $0xa4] sm:$0xf] %vm2962_vm3, %v4671_v45  ;;  %v2644_v51 = vmax.f32 %v2484_v59, 0.0  ;;  %3252 = vrot.lane.b32.xlu1 %v3247_v11, %s5082_s16 }
 0x2a4   :  { %v2486_v20 = vpop.f32.mrf.mxu1 }
 0x2a5   :  { %v4672_v12 = vpack.c.bf16 %v2644_v51, %v2644_v51  ;;  %v2487_v61 = vadd.f32 %v6761_v38, %v2486_v20  ;;  %v3098_v44 = vpop.permute.xlu1 %3097 }
 0x2a6   :  { %3103 = vst.msk [vmem:[#allocation3 + $0x14] sm:$0xf] %vm3101_vm8, %v3098_v44  ;;  %v2488_v33 = vpop.f32.mrf.mxu1  ;;  %v3258_v9 = vld [vmem:[#allocation2 + $0xa0] sm:$0xf] }
 0x2a7   :  { %3005 = vst.msk [vmem:[#allocation2 + $0xa8] sm:$0xf] %vm2962_vm3, %v4672_v12  ;;  %v2645_v13 = vmax.f32 %v2487_v61, 0.0  ;;  %3262 = vrot.lane.b32.xlu0 %v3258_v9, %s5083_s21 }
 0x2a8   :  { %v2491_v14 = vpop.f32.mrf.mxu1 }
 0x2a9   :  { %v4673_v3 = vpack.c.bf16 %v2645_v13, %v2645_v13  ;;  %v2492_v35 = vadd.f32 %v6761_v38, %v2491_v14  ;;  %v3109_v10 = vpop.permute.xlu0 %3108 }
 0x2aa   :  { %3115 = vst.msk [vmem:[#allocation3] sm:$0xf] %vm3114_vm9, %v3109_v10  ;;  %v2493_v36 = vpop.f32.mrf.mxu1  ;;  %v3259_v52 = vld [vmem:[#allocation2 + $0xa4] sm:$0xf] }
 0x2ab   :  { %3006 = vst.msk [vmem:[#allocation2 + $0xac] sm:$0xf] %vm2962_vm3, %v4673_v3  ;;  %v2646_v32 = vmax.f32 %v2492_v35, 0.0  ;;  %3264 = vrot.lane.b32.xlu1 %v3259_v52, %s5083_s21 }
 0x2ac   :  { %v2494_v17 = vpop.f32.mrf.mxu1 }
 0x2ad   :  { %v4674_v8 = vpack.c.bf16 %v2646_v32, %v2646_v32  ;;  %v2495_v29 = vadd.f32 %v6761_v38, %v2494_v17  ;;  %v3111_v39 = vpop.permute.xlu1 %3110 }
 0x2ae   :  { %3116 = vst.msk [vmem:[#allocation3 + $0x14] sm:$0xf] %vm3114_vm9, %v3111_v39  ;;  %v2496_v37 = vpop.f32.mrf.mxu1  ;;  %v3270_v19 = vld [vmem:[#allocation2 + $0xa8] sm:$0xf] }
 0x2af   :  { %3007 = vst.msk [vmem:[#allocation2 + $0xb0] sm:$0xf] %vm2962_vm3, %v4674_v8  ;;  %v2647_v43 = vmax.f32 %v2495_v29, 0.0  ;;  %3274 = vrot.lane.b32.xlu0 %v3270_v19, %s5084_s22 }
 0x2b0   :  { %v2499_v49 = vpop.f32.mrf.mxu1 }
 0x2b1   :  { %v4675_v34 = vpack.c.bf16 %v2647_v43, %v2647_v43  ;;  %v2500_v5 = vadd.f32 %v6761_v38, %v2499_v49  ;;  %v3122_v60 = vpop.permute.xlu0 %3121 }
 0x2b2   :  { %3128 = vst.msk [vmem:[#allocation3] sm:$0xf] %vm3127_vm10, %v3122_v60  ;;  %v2501_v56 = vpop.f32.mrf.mxu1  ;;  %v3271_v58 = vld [vmem:[#allocation2 + $0xac] sm:$0xf] }
 0x2b3   :  { %3008 = vst.msk [vmem:[#allocation2 + $0xb4] sm:$0xf] %vm2962_vm3, %v4675_v34  ;;  %v2648_v41 = vmax.f32 %v2500_v5, 0.0  ;;  %3276 = vrot.lane.b32.xlu1 %v3271_v58, %s5084_s22 }
 0x2b4   :  { %v2502_v48 = vpop.f32.mrf.mxu1 }
 0x2b5   :  { %v4676_v46 = vpack.c.bf16 %v2648_v41, %v2648_v41  ;;  %v2503_v62 = vadd.f32 %v6761_v38, %v2502_v48  ;;  %v3124_v27 = vpop.permute.xlu1 %3123 }
 0x2b6   :  { %3129 = vst.msk [vmem:[#allocation3 + $0x14] sm:$0xf] %vm3127_vm10, %v3124_v27  ;;  %v2504_v47 = vpop.f32.mrf.mxu1  ;;  %v3282_v15 = vld [vmem:[#allocation2 + $0xb0] sm:$0xf] }
 0x2b7   :  { %3009 = vst.msk [vmem:[#allocation2 + $0xb8] sm:$0xf] %vm2962_vm3, %v4676_v46  ;;  %v2649_v18 = vmax.f32 %v2503_v62, 0.0  ;;  %3286 = vrot.lane.b32.xlu0 %v3282_v15, %s5085_s27 }
 0x2b8   :  { %v2507_v16 = vpop.f32.mrf.mxu1 }
 0x2b9   :  { %v4677_v28 = vpack.c.bf16 %v2649_v18, %v2649_v18  ;;  %v2508_v54 = vadd.f32 %v6761_v38, %v2507_v16 }
 0x2ba   :  { %v2509_v0 = vpop.f32.mrf.mxu1  ;;  %v3283_v57 = vld [vmem:[#allocation2 + $0xb4] sm:$0xf] }
 0x2bb   :  { %3010 = vst.msk [vmem:[#allocation2 + $0xbc] sm:$0xf] %vm2962_vm3, %v4677_v28  ;;  %v2650_v25 = vmax.f32 %v2508_v54, 0.0  ;;  %3288 = vrot.lane.b32.xlu1 %v3283_v57, %s5085_s27 }
 0x2bc   :  { %v2510_v7 = vpop.f32.mrf.mxu1 }
 0x2bd   :  { %v4678_v53 = vpack.c.bf16 %v2650_v25, %v2650_v25  ;;  %v2511_v55 = vadd.f32 %v6761_v38, %v2510_v7 }
 0x2be   :  { %v2512_v42 = vpop.f32.mrf.mxu1  ;;  %v3294_v6 = vld [vmem:[#allocation2 + $0xb8] sm:$0xf] }
 0x2bf   :  { %3011 = vst.msk [vmem:[#allocation2 + $0xc0] sm:$0xf] %vm2962_vm3, %v4678_v53  ;;  %v2651_v40 = vmax.f32 %v2511_v55, 0.0  ;;  %3298 = vrot.lane.b32.xlu0 %v3294_v6, %s5086_s28 }
 0x2c0   :  { %v2515_v24 = vpop.f32.mrf.mxu1 }
 0x2c1   :  { %v4679_v22 = vpack.c.bf16 %v2651_v40, %v2651_v40  ;;  %v2516_v31 = vadd.f32 %v6761_v38, %v2515_v24  ;;  %v3139_v2 = vpop.permute.xlu1 %3138 }
 0x2c2   :  { %3144 = vst.msk [vmem:[#allocation3 + $0x4] sm:$0xf] %vm3049_vm4, %v3139_v2  ;;  %v2517_v21 = vpop.f32.mrf.mxu1  ;;  %v3295_v45 = vld [vmem:[#allocation2 + $0xbc] sm:$0xf] }
 0x2c3   :  { %3012 = vst.msk [vmem:[#allocation2 + $0xc4] sm:$0xf] %vm2962_vm3, %v4679_v22  ;;  %v2652_v59 = vmax.f32 %v2516_v31, 0.0  ;;  %3300 = vrot.lane.b32.xlu1 %v3295_v45, %s5086_s28 }
 0x2c4   :  { %v2518_v63 = vpop.f32.mrf.mxu1 }
 0x2c5   :  { %v4680_v4 = vpack.c.bf16 %v2652_v59, %v2652_v59  ;;  %v2519_v11 = vadd.f32 %v6761_v38, %v2518_v63  ;;  %v3141_v51 = vpop.permute.xlu1 %3140 }
 0x2c6   :  { %3145 = vst.msk [vmem:[#allocation3 + $0x18] sm:$0xf] %vm3049_vm4, %v3141_v51  ;;  %v2520_v20 = vpop.f32.mrf.mxu1  ;;  %v3306_v12 = vld [vmem:[#allocation2 + $0xc0] sm:$0xf] }
 0x2c7   :  { %3013 = vst.msk [vmem:[#allocation2 + $0xc8] sm:$0xf] %vm2962_vm3, %v4680_v4  ;;  %v2653_v61 = vmax.f32 %v2519_v11, 0.0  ;;  %3308 = vst.msk [vmem:[#allocation3 + $0xc] sm:$0xf] %vm2962_vm3, %v3306_v12 }
 0x2c8   :  { %v2523_v44 = vpop.f32.mrf.mxu1 }
 0x2c9   :  { %v4681_v33 = vpack.c.bf16 %v2653_v61, %v2653_v61  ;;  %v2524_v9 = vadd.f32 %v6761_v38, %v2523_v44  ;;  %v3151_v13 = vpop.permute.xlu0 %3150 }
 0x2ca   :  { %3156 = vst.msk [vmem:[#allocation3 + $0x4] sm:$0xf] %vm3062_vm5, %v3151_v13  ;;  %v2525_v14 = vpop.f32.mrf.mxu1  ;;  %v3307_v3 = vld [vmem:[#allocation2 + $0xc4] sm:$0xf] }
 0x2cb   :  { %3014 = vst.msk [vmem:[#allocation2 + $0xcc] sm:$0xf] %vm2962_vm3, %v4681_v33  ;;  %v2654_v35 = vmax.f32 %v2524_v9, 0.0  ;;  %3309 = vst.msk [vmem:[#allocation3 + $0x20] sm:$0xf] %vm2962_vm3, %v3307_v3 }
 0x2cc   :  { %v2526_v10 = vpop.f32.mrf.mxu1 }
 0x2cd   :  { %v4682_v36 = vpack.c.bf16 %v2654_v35, %v2654_v35  ;;  %v2527_v52 = vadd.f32 %v6761_v38, %v2526_v10  ;;  %v3153_v32 = vpop.permute.xlu1 %3152 }
 0x2ce   :  { %3157 = vst.msk [vmem:[#allocation3 + $0x18] sm:$0xf] %vm3062_vm5, %v3153_v32  ;;  %v2528_v17 = vpop.f32.mrf.mxu1  ;;  %v3310_v8 = vld [vmem:[#allocation2 + $0xc8] sm:$0xf] }
 0x2cf   :  { %3015 = vst.msk [vmem:[#allocation2 + $0xd0] sm:$0xf] %vm2962_vm3, %v4682_v36  ;;  %v2655_v29 = vmax.f32 %v2527_v52, 0.0  ;;  %3314 = vrot.lane.b32.xlu0 %v3310_v8, %s5080_s12 }
 0x2d0   :  { %v2531_v39 = vpop.f32.mrf.mxu1 }
 0x2d1   :  { %v4683_v37 = vpack.c.bf16 %v2655_v29, %v2655_v29  ;;  %v2532_v19 = vadd.f32 %v6761_v38, %v2531_v39  ;;  %v3163_v43 = vpop.permute.xlu0 %3162 }
 0x2d2   :  { %3168 = vst.msk [vmem:[#allocation3 + $0x4] sm:$0xf] %vm3075_vm6, %v3163_v43  ;;  %v2533_v49 = vpop.f32.mrf.mxu1  ;;  %v3311_v34 = vld [vmem:[#allocation2 + $0xcc] sm:$0xf] }
 0x2d3   :  { %3016 = vst.msk [vmem:[#allocation2 + $0xd4] sm:$0xf] %vm2962_vm3, %v4683_v37  ;;  %v2656_v5 = vmax.f32 %v2532_v19, 0.0  ;;  %3316 = vrot.lane.b32.xlu1 %v3311_v34, %s5080_s12 }
 0x2d4   :  { %v2534_v60 = vpop.f32.mrf.mxu1 }
 0x2d5   :  { %v4684_v56 = vpack.c.bf16 %v2656_v5, %v2656_v5  ;;  %v2535_v58 = vadd.f32 %v6761_v38, %v2534_v60  ;;  %v3165_v41 = vpop.permute.xlu1 %3164 }
 0x2d6   :  { %3169 = vst.msk [vmem:[#allocation3 + $0x18] sm:$0xf] %vm3075_vm6, %v3165_v41  ;;  %v2536_v48 = vpop.f32.mrf.mxu1  ;;  %v3322_v46 = vld [vmem:[#allocation2 + $0xd0] sm:$0xf] }
 0x2d7   :  { %3017 = vst.msk [vmem:[#allocation2 + $0xd8] sm:$0xf] %vm2962_vm3, %v4684_v56  ;;  %v2657_v62 = vmax.f32 %v2535_v58, 0.0  ;;  %3326 = vrot.lane.b32.xlu0 %v3322_v46, %s5081_s15 }
 0x2d8   :  { %v2539_v27 = vpop.f32.mrf.mxu1 }
 0x2d9   :  { %v4685_v47 = vpack.c.bf16 %v2657_v62, %v2657_v62  ;;  %v2540_v15 = vadd.f32 %v6761_v38, %v2539_v27  ;;  %v3175_v50 = vpop.permute.xlu0 %3174 }
 0x2da   :  { %3180 = vst.msk [vmem:[#allocation3 + $0x4] sm:$0xf] %vm3088_vm7, %v3175_v50  ;;  %v2541_v18 = vpop.f32.mrf.mxu1  ;;  %v3323_v16 = vld [vmem:[#allocation2 + $0xd4] sm:$0xf] }
 0x2db   :  { %3018 = vst.msk [vmem:[#allocation2 + $0xdc] sm:$0xf] %vm2962_vm3, %v4685_v47  ;;  %v2658_v28 = vmax.f32 %v2540_v15, 0.0  ;;  %3328 = vrot.lane.b32.xlu1 %v3323_v16, %s5081_s15  ;;  %v4998_v18 = vld [vmem:[%s7108_s5 + $0x170] ss:$8 sps:$4 sm:$0xff]  }
 0x2dc   :  { %v2542_v54 = vpop.f32.mrf.mxu1 }
 0x2dd   :  { %v4686_v0 = vpack.c.bf16 %v2658_v28, %v2658_v28  ;;  %v2543_v57 = vadd.f32 %v6761_v38, %v2542_v54  ;;  %v3177_v25 = vpop.permute.xlu1 %3176  ;;  %v4995_v54 = vld [vmem:[#allocation3] ss:$20 sps:$4 sm:$0xff]  }
 0x2de   :  { %3181 = vst.msk [vmem:[#allocation3 + $0x18] sm:$0xf] %vm3088_vm7, %v3177_v25  ;;  %v2544_v7 = vpop.f32.mrf.mxu1  ;;  %v3334_v53 = vld [vmem:[#allocation2 + $0xd8] sm:$0xf] }
 0x2df   :  { %3019 = vst.msk [vmem:[#allocation2 + $0xe0] sm:$0xf] %vm2962_vm3, %v4686_v0  ;;  %v2659_v55 = vmax.f32 %v2543_v57, 0.0  ;;  %3338 = vrot.lane.b32.xlu0 %v3334_v53, %s5082_s16  ;;  %v5003_v7 = vld [vmem:[%s7108_s5 + $0x164] ss:$8 sps:$4 sm:$0xff]  }
 0x2e0   :  { %v2547_v42 = vpop.f32.mrf.mxu1 }
 0x2e1   :  { %v4687_v6 = vpack.c.bf16 %v2659_v55, %v2659_v55  ;;  %v2548_v40 = vadd.f32 %v6761_v38, %v2547_v42  ;;  %v3187_v24 = vpop.permute.xlu0 %3186 }
 0x2e2   :  { %3192 = vst.msk [vmem:[#allocation3 + $0x4] sm:$0xf] %vm3101_vm8, %v3187_v24  ;;  %v2549_v22 = vpop.f32.mrf.mxu1  ;;  %v3335_v31 = vld [vmem:[#allocation2 + $0xdc] sm:$0xf]  ;;  %v5001_v24 = vld [vmem:[%s7108_s5 + $0x160] ss:$8 sps:$4 sm:$0xff]  }
 0x2e3   :  { %3020 = vst.msk [vmem:[#allocation2 + $0xe4] sm:$0xf] %vm2962_vm3, %v4687_v6  ;;  %v2660_v2 = vmax.f32 %v2548_v40, 0.0  ;;  %3340 = vrot.lane.b32.xlu1 %v3335_v31, %s5082_s16 }
 0x2e4   :  { %v2550_v21 = vpop.f32.mrf.mxu1 }
 0x2e5   :  { %v4688_v45 = vpack.c.bf16 %v2660_v2, %v2660_v2  ;;  %v2551_v59 = vadd.f32 %v6761_v38, %v2550_v21  ;;  %v3189_v63 = vpop.permute.xlu1 %3188  ;;  %v5006_v2 = vld [vmem:[%s7108_s5 + $0x154] ss:$8 sps:$4 sm:$0xff]  }
 0x2e6   :  { %3193 = vst.msk [vmem:[#allocation3 + $0x18] sm:$0xf] %vm3101_vm8, %v3189_v63  ;;  %v2552_v4 = vpop.f32.mrf.mxu1  ;;  %v3346_v11 = vld [vmem:[#allocation2 + $0xe0] sm:$0xf] }
 0x2e7   :  { %3021 = vst.msk [vmem:[#allocation2 + $0xe8] sm:$0xf] %vm2962_vm3, %v4688_v45  ;;  %v2661_v51 = vmax.f32 %v2551_v59, 0.0  ;;  %3350 = vrot.lane.b32.xlu0 %v3346_v11, %s5083_s21  ;;  %v5004_v11 = vld [vmem:[%s7108_s5 + $0x150] ss:$8 sps:$4 sm:$0xff]  }
 0x2e8   :  { %v2555_v20 = vpop.f32.mrf.mxu1 }
 0x2e9   :  { %v4689_v12 = vpack.c.bf16 %v2661_v51, %v2661_v51  ;;  %v2556_v61 = vadd.f32 %v6761_v38, %v2555_v20  ;;  %v3199_v44 = vpop.permute.xlu0 %3198  ;;  %v5009_v20 = vld [vmem:[%s7108_s5 + $0x144] ss:$8 sps:$4 sm:$0xff]  }
 0x2ea   :  { %3204 = vst.msk [vmem:[#allocation3 + $0x4] sm:$0xf] %vm3114_vm9, %v3199_v44  ;;  %v2557_v33 = vpop.f32.mrf.mxu1  ;;  %v3347_v9 = vld [vmem:[#allocation2 + $0xe4] sm:$0xf] }
 0x2eb   :  { %3022 = vst.msk [vmem:[#allocation2 + $0xec] sm:$0xf] %vm2962_vm3, %v4689_v12  ;;  %v2662_v13 = vmax.f32 %v2556_v61, 0.0  ;;  %3352 = vrot.lane.b32.xlu1 %v3347_v9, %s5083_s21 }
 0x2ec   :  { %v2558_v14 = vpop.f32.mrf.mxu1 }
 0x2ed   :  { %v4690_v3 = vpack.c.bf16 %v2662_v13, %v2662_v13  ;;  %v2559_v35 = vadd.f32 %v6761_v38, %v2558_v14  ;;  %v3201_v10 = vpop.permute.xlu1 %3200  ;;  %v5007_v14 = vld [vmem:[%s7108_s5 + $0x140] ss:$8 sps:$4 sm:$0xff]  }
 0x2ee   :  { %3205 = vst.msk [vmem:[#allocation3 + $0x18] sm:$0xf] %vm3114_vm9, %v3201_v10  ;;  %v2560_v36 = vpop.f32.mrf.mxu1  ;;  %v3358_v52 = vld [vmem:[#allocation2 + $0xe8] sm:$0xf] }
 0x2ef   :  { %3023 = vst.msk [vmem:[#allocation2 + $0xf0] sm:$0xf] %vm2962_vm3, %v4690_v3  ;;  %v2663_v32 = vmax.f32 %v2559_v35, 0.0  ;;  %3362 = vrot.lane.b32.xlu0 %v3358_v52, %s5084_s22  ;;  %v5012_v35 = vld [vmem:[%s7108_s5 + $0x134] ss:$8 sps:$4 sm:$0xff]  }
 0x2f0   :  { %v2563_v17 = vpop.f32.mrf.mxu1 }
 0x2f1   :  { %v4691_v8 = vpack.c.bf16 %v2663_v32, %v2663_v32  ;;  %v2564_v29 = vadd.f32 %v6761_v38, %v2563_v17  ;;  %v3211_v39 = vpop.permute.xlu0 %3210 }
 0x2f2   :  { %3216 = vst.msk [vmem:[#allocation3 + $0x4] sm:$0xf] %vm3127_vm10, %v3211_v39  ;;  %v2565_v37 = vpop.f32.mrf.mxu1  ;;  %v3359_v19 = vld [vmem:[#allocation2 + $0xec] sm:$0xf] }
 0x2f3   :  { %3024 = vst.msk [vmem:[#allocation2 + $0xf4] sm:$0xf] %vm2962_vm3, %v4691_v8  ;;  %v2664_v43 = vmax.f32 %v2564_v29, 0.0  ;;  %3364 = vrot.lane.b32.xlu1 %v3359_v19, %s5084_s22  ;;  %v5010_v29 = vld [vmem:[%s7108_s5 + $0x130] ss:$8 sps:$4 sm:$0xff]  }
 0x2f4   :  { %v2566_v49 = vpop.f32.mrf.mxu1  ;;  %v5015_v19 = vld [vmem:[%s7108_s5 + $0x124] ss:$8 sps:$4 sm:$0xff]  }
 0x2f5   :  { %v4692_v34 = vpack.c.bf16 %v2664_v43, %v2664_v43  ;;  %v2567_v5 = vadd.f32 %v6761_v38, %v2566_v49  ;;  %v3213_v60 = vpop.permute.xlu1 %3212 }
 0x2f6   :  { %3217 = vst.msk [vmem:[#allocation3 + $0x18] sm:$0xf] %vm3127_vm10, %v3213_v60  ;;  %v2568_v56 = vpop.f32.mrf.mxu1  ;;  %v3370_v58 = vld [vmem:[#allocation2 + $0xf0] sm:$0xf] }
 0x2f7   :  { %3025 = vst.msk [vmem:[#allocation2 + $0xf8] sm:$0xf] %vm2962_vm3, %v4692_v34  ;;  %v2665_v41 = vmax.f32 %v2567_v5, 0.0  ;;  %3374 = vrot.lane.b32.xlu0 %v3370_v58, %s5085_s27  ;;  %v5013_v56 = vld [vmem:[%s7108_s5 + $0x120] ss:$8 sps:$4 sm:$0xff]  }
 0x2f8   :  { %v2571_v48 = vpop.f32.mrf.mxu1 }
 0x2f9   :  { %v4693_v46 = vpack.c.bf16 %v2665_v41, %v2665_v41  ;;  %v2572_v62 = vadd.f32 %v6761_v38, %v2571_v48  ;;  %v5018_v48 = vld [vmem:[%s7108_s5 + $0x114] ss:$8 sps:$4 sm:$0xff]  }
 0x2fa   :  { %v2573_v27 = vpop.f32.mrf.mxu1  ;;  %v3371_v47 = vld [vmem:[#allocation2 + $0xf4] sm:$0xf] }
 0x2fb   :  { %3026 = vst.msk [vmem:[#allocation2 + $0xfc] sm:$0xf] %vm2962_vm3, %v4693_v46  ;;  %v2666_v15 = vmax.f32 %v2572_v62, 0.0  ;;  %3376 = vrot.lane.b32.xlu1 %v3371_v47, %s5085_s27 }
 0x2fc   :  { %v2574_v50 = vpop.f32.mrf.mxu1 }
 0x2fd   :  { %v4694_v16 = vpack.c.bf16 %v2666_v15, %v2666_v15  ;;  %v2575_v28 = vadd.f32 %v6761_v38, %v2574_v50  ;;  %v4997_v0 = vld [vmem:[#allocation3 + $0x4] ss:$20 sps:$4 sm:$0xff]  }
 0x2fe   :  { %v2576_v57 = vpop.f32.mrf.mxu1  ;;  %v3382_v25 = vld [vmem:[#allocation2 + $0xf8] sm:$0xf]  ;;  %3945 = vmatprep.mubr.bf16.mxu0 %v4997_v0 }
 0x2ff   :  { %3027 = vst.msk [vmem:[#allocation2 + $0x100] sm:$0xf] %vm2962_vm3, %v4694_v16  ;;  %v2667_v53 = vmax.f32 %v2575_v28, 0.0  ;;  %3386 = vrot.lane.b32.xlu0 %v3382_v25, %s5086_s28  ;;  %3946 = vmatmul.mubr.bf16.vlgmr.msra.gmra.mxu0 %v4995_v54  ;;  %v5016_v50 = vld [vmem:[%s7108_s5 + $0x110] ss:$8 sps:$4 sm:$0xff]  }
 0x300   :  { %v2579_v55 = vpop.f32.mrf.mxu1  ;;  %3957 = vmatpush1.bf16.msra.mxu0 %v4998_v18  ;;  %v5021_v28 = vld [vmem:[%s7108_s5 + $0x104] ss:$8 sps:$4 sm:$0xff]   ;;  %v5019_v57 = vld [vmem:[%s7108_s5 + $0x100] ss:$8 sps:$4 sm:$0xff]  }
 0x301   :  { %v4695_v42 = vpack.c.bf16 %v2667_v53, %v2667_v53  ;;  %v2580_v6 = vadd.f32 %v6761_v38, %v2579_v55  ;;  %v3227_v40 = vpop.permute.xlu0 %3226  ;;  %3958 = vmatprep.subr.bf16.mxu0 %v5003_v7  ;;  %v5024_v7 = vld [vmem:[%s7108_s5 + $0x1f4] ss:$8 sps:$4 sm:$0xff]   ;;  %v5022_v55 = vld [vmem:[%s7108_s5 + $0x1f0] ss:$8 sps:$4 sm:$0xff]  }
 0x302   :  { %3232 = vst.msk [vmem:[#allocation3 + $0x8] sm:$0xf] %vm3049_vm4, %v3227_v40  ;;  %v2581_v22 = vpop.f32.mrf.mxu1  ;;  %v3383_v31 = vld [vmem:[#allocation2 + $0xfc] sm:$0xf] }
 0x303   :  { %3028 = vst.msk [vmem:[#allocation2 + $0x104] sm:$0xf] %vm2962_vm3, %v4695_v42  ;;  %v2668_v21 = vmax.f32 %v2580_v6, 0.0  ;;  %3388 = vrot.lane.b32.xlu1 %v3383_v31, %s5086_s28  ;;  %v5027_v6 = vld [vmem:[%s7108_s5 + $0x1e4] ss:$8 sps:$4 sm:$0xff]  }
 0x304   :  { %v2582_v45 = vpop.f32.mrf.mxu1  ;;  %3959 = vmatpush1.bf16.msra.mxu0 %v5001_v24  ;;  %v5025_v24 = vld [vmem:[%s7108_s5 + $0x1e0] ss:$8 sps:$4 sm:$0xff]   ;;  %v5030_v31 = vld [vmem:[%s7108_s5 + $0x1d4] ss:$8 sps:$4 sm:$0xff]  }
 0x305   :  { %v4696_v59 = vpack.c.bf16 %v2668_v21, %v2668_v21  ;;  %v2583_v63 = vadd.f32 %v6761_v38, %v2582_v45  ;;  %v3229_v4 = vpop.permute.xlu1 %3228  ;;  %3960 = vmatprep.subr.bf16.mxu0 %v5006_v2  ;;  %v5028_v21 = vld [vmem:[%s7108_s5 + $0x1d0] ss:$8 sps:$4 sm:$0xff]   ;;  %v5033_v45 = vld [vmem:[%s7108_s5 + $0x1c4] ss:$8 sps:$4 sm:$0xff]  }
 0x306   :  { %3233 = vst.msk [vmem:[#allocation3 + $0x1c] sm:$0xf] %vm3049_vm4, %v3229_v4  ;;  %v2584_v51 = vpop.f32.mrf.mxu1  ;;  %v3394_v12 = vld [vmem:[#allocation2 + $0x100] sm:$0xf]  ;;  %v5036_v4 = vld [vmem:[%s7108_s5 + $0x1b4] ss:$8 sps:$4 sm:$0xff]  }
 0x307   :  { %3029 = vst.msk [vmem:[#allocation2 + $0x108] sm:$0xf] %vm2962_vm3, %v4696_v59  ;;  %v2669_v61 = vmax.f32 %v2583_v63, 0.0  ;;  %3396 = vst.msk [vmem:[#allocation3 + $0x10] sm:$0xf] %vm2962_vm3, %v3394_v12 }
 0x308   :  { %v2587_v44 = vpop.f32.mrf.mxu1  ;;  %3961 = vmatpush1.bf16.msra.mxu0 %v5004_v11  ;;  %v5031_v63 = vld [vmem:[%s7108_s5 + $0x1c0] ss:$8 sps:$4 sm:$0xff]   ;;  %v5034_v51 = vld [vmem:[%s7108_s5 + $0x1b0] ss:$8 sps:$4 sm:$0xff]  }
 0x309   :  { %v4697_v33 = vpack.c.bf16 %v2669_v61, %v2669_v61  ;;  %v2588_v9 = vadd.f32 %v6761_v38, %v2587_v44  ;;  %v3239_v13 = vpop.permute.xlu0 %3238  ;;  %3962 = vmatprep.subr.bf16.mxu0 %v5009_v20  ;;  %v5039_v20 = vld [vmem:[%s7108_s5 + $0x1a4] ss:$8 sps:$4 sm:$0xff]   ;;  %v5037_v61 = vld [vmem:[%s7108_s5 + $0x1a0] ss:$8 sps:$4 sm:$0xff]   ;;  %v5042_v44 = vld [vmem:[%s7108_s5 + $0x194] ss:$8 sps:$4 sm:$0xff]  }
 0x30a   :  { %3244 = vst.msk [vmem:[#allocation3 + $0x8] sm:$0xf] %vm3062_vm5, %v3239_v13  ;;  %v2589_v3 = vpop.f32.mrf.mxu1  ;;  %v3395_v10 = vld [vmem:[#allocation2 + $0x104] sm:$0xf] }
 0x30b   :  { %3030 = vst.msk [vmem:[#allocation2 + $0x10c] sm:$0xf] %vm2962_vm3, %v4697_v33  ;;  %v2670_v36 = vmax.f32 %v2588_v9, 0.0  ;;  %3397 = vst.msk [vmem:[#allocation3 + $0x24] sm:$0xf] %vm2962_vm3, %v3395_v10 }
 0x30c   :  { %v2590_v52 = vpop.f32.mrf.mxu1  ;;  %3963 = vmatpush1.bf16.msra.mxu0 %v5007_v14  ;;  %v5040_v9 = vld [vmem:[%s7108_s5 + $0x190] ss:$8 sps:$4 sm:$0xff]   ;;  %v5045_v13 = vld [vmem:[%s7108_s5 + $0x184] ss:$8 sps:$4 sm:$0xff]   ;;  %v5043_v14 = vld [vmem:[%s7108_s5 + $0x180] ss:$8 sps:$4 sm:$0xff]  }
 0x30d   :  { %v4698_v32 = vpack.c.bf16 %v2670_v36, %v2670_v36  ;;  %v2591_v17 = vadd.f32 %v6761_v38, %v2590_v52  ;;  %v3241_v8 = vpop.permute.xlu1 %3240  ;;  %3964 = vmatprep.subr.bf16.mxu0 %v5012_v35  ;;  %v5051_v3 = vld [vmem:[%s7108_s5 + $0x234] ss:$8 sps:$4 sm:$0xff]  }
 0x30e   :  { %3245 = vst.msk [vmem:[#allocation3 + $0x1c] sm:$0xf] %vm3062_vm5, %v3241_v8  ;;  %v2592_v39 = vpop.f32.mrf.mxu1  ;;  %v3398_v37 = vld [vmem:[#allocation2 + $0x108] sm:$0xf] }
 0x30f   :  { %3031 = vst.msk [vmem:[#allocation2 + $0x110] sm:$0xf] %vm2962_vm3, %v4698_v32  ;;  %v2671_v43 = vmax.f32 %v2591_v17, 0.0  ;;  %3402 = vrot.lane.b32.xlu0 %v3398_v37, %s5080_s12 }
 0x310   :  { %v2595_v49 = vpop.f32.mrf.mxu1  ;;  %3965 = vmatpush1.bf16.msra.mxu0 %v5010_v29 }
 0x311   :  { %v4699_v34 = vpack.c.bf16 %v2671_v43, %v2671_v43  ;;  %v2596_v5 = vadd.f32 %v6761_v38, %v2595_v49  ;;  %v3251_v60 = vpop.permute.xlu0 %3250  ;;  %3966 = vmatprep.subr.bf16.mxu0 %v5015_v19 }
 0x312   :  { %3256 = vst.msk [vmem:[#allocation3 + $0x8] sm:$0xf] %vm3075_vm6, %v3251_v60  ;;  %v2597_v58 = vpop.f32.mrf.mxu1  ;;  %v3399_v41 = vld [vmem:[#allocation2 + $0x10c] sm:$0xf] }
 0x313   :  { %3032 = vst.msk [vmem:[#allocation2 + $0x114] sm:$0xf] %vm2962_vm3, %v4699_v34  ;;  %v2672_v46 = vmax.f32 %v2596_v5, 0.0  ;;  %3404 = vrot.lane.b32.xlu1 %v3399_v41, %s5080_s12  ;;  %v5049_v5 = vld [vmem:[%s7108_s5 + $0x230] ss:$8 sps:$4 sm:$0xff]  }
 0x314   :  { %v2598_v62 = vpop.f32.mrf.mxu1  ;;  %3967 = vmatpush1.bf16.msra.mxu0 %v5013_v56  ;;  %v5054_v58 = vld [vmem:[%s7108_s5 + $0x224] ss:$8 sps:$4 sm:$0xff]  }
 0x315   :  { %v4700_v27 = vpack.c.bf16 %v2672_v46, %v2672_v46  ;;  %v2599_v47 = vadd.f32 %v6761_v38, %v2598_v62  ;;  %v3253_v15 = vpop.permute.xlu1 %3252  ;;  %3968 = vmatprep.subr.bf16.mxu0 %v5018_v48  ;;  %v5052_v48 = vld [vmem:[%s7108_s5 + $0x220] ss:$8 sps:$4 sm:$0xff]   ;;  %v5057_v46 = vld [vmem:[%s7108_s5 + $0x214] ss:$8 sps:$4 sm:$0xff]  }
 0x316   :  { %3257 = vst.msk [vmem:[#allocation3 + $0x1c] sm:$0xf] %vm3075_vm6, %v3253_v15  ;;  %v2600_v18 = vpop.f32.mrf.mxu1  ;;  %v3410_v16 = vld [vmem:[#allocation2 + $0x110] sm:$0xf]  ;;  %v5058_v15 = vld [vmem:[%s7108_s5 + $0x200] ss:$8 sps:$4 sm:$0xff]  }
 0x317   :  { %3033 = vst.msk [vmem:[#allocation2 + $0x118] sm:$0xf] %vm2962_vm3, %v4700_v27  ;;  %v2673_v54 = vmax.f32 %v2599_v47, 0.0  ;;  %3414 = vrot.lane.b32.xlu0 %v3410_v16, %s5081_s15  ;;  %v5055_v27 = vld [vmem:[%s7108_s5 + $0x210] ss:$8 sps:$4 sm:$0xff]  }
 0x318   :  { %3969 = vmatpush1.bf16.msra.mxu0 %v5016_v50 }
 0x319   :  { %v4701_v38 = vpack.c.bf16 %v2673_v54, %v2673_v54  ;;  %v3263_v0 = vpop.permute.xlu0 %3262  ;;  %3970 = vmatprep.subr.bf16.mxu0 %v5021_v28  ;;  %v5062_v54 = vld [vmem:[%s7110_s7 + $0x78] sm:$0xff]  }
 0x31a   :  { %3268 = vst.msk [vmem:[#allocation3 + $0x8] sm:$0xf] %vm3088_vm7, %v3263_v0  ;;  %v3411_v25 = vld [vmem:[#allocation2 + $0x114] sm:$0xf] }
 0x31b   :  { %3034 = vst.msk [vmem:[#allocation2 + $0x11c] sm:$0xf] %vm2962_vm3, %v4701_v38  ;;  %3416 = vrot.lane.b32.xlu1 %v3411_v25, %s5081_s15  ;;  %v5063_v38 = vld [vmem:[%s7110_s7 + $0x38] sm:$0xff]   ;;  %v5064_v0 = vld [vmem:[%s7110_s7 + $0x70] sm:$0xff]   ;;  %v5066_v25 = vld [vmem:[%s7110_s7 + $0x68] sm:$0xff]  }
 0x31c   :  { %3971 = vmatpush1.bf16.msra.mxu0 %v5019_v57  ;;  %v5065_v57 = vld [vmem:[%s7110_s7 + $0x30] sm:$0xff]  }
 0x31d   :  { %v3265_v53 = vpop.permute.xlu1 %3264  ;;  %3972 = vmatprep.subr.bf16.mxu0 %v5024_v7  ;;  %v5067_v7 = vld [vmem:[%s7110_s7 + $0x28] sm:$0xff]  }
 0x31e   :  { %3269 = vst.msk [vmem:[#allocation3 + $0x1c] sm:$0xf] %vm3088_vm7, %v3265_v53  ;;  %v3422_v42 = vld [vmem:[#allocation2 + $0x118] sm:$0xf]  ;;  %v5068_v53 = vld [vmem:[%s7110_s7 + $0x60] sm:$0xff]  }
 0x31f   :  { %3426 = vrot.lane.b32.xlu0 %v3422_v42, %s5082_s16  ;;  %v5070_v42 = vld [vmem:[%s7110_s7 + $0x58] sm:$0xff]  }
 0x320   :  { %3973 = vmatpush2.bf16.msra.mxu0 %v5022_v55  ;;  %v5069_v55 = vld [vmem:[%s7110_s7 + $0x20] sm:$0xff]  }
 0x321   :  { %v3275_v40 = vpop.permute.xlu0 %3274  ;;  %3974 = vmatprep.subr.bf16.mxu0 %v5027_v6  ;;  %v5071_v6 = vld [vmem:[%s7110_s7 + $0x18] sm:$0xff]  }
 0x322   :  { %3280 = vst.msk [vmem:[#allocation3 + $0x8] sm:$0xf] %vm3101_vm8, %v3275_v40  ;;  %v3423_v22 = vld [vmem:[#allocation2 + $0x11c] sm:$0xf]  ;;  %v5072_v40 = vld [vmem:[%s7110_s7 + $0x50] sm:$0xff]  }
 0x323   :  { %3428 = vrot.lane.b32.xlu1 %v3423_v22, %s5082_s16  ;;  %v5074_v22 = vld [vmem:[%s7110_s7 + $0x48] sm:$0xff]  }
 0x324   :  { %3975 = vmatpush2.bf16.msra.mxu0 %v5025_v24  ;;  %v5073_v24 = vld [vmem:[%s7110_s7 + $0x10] sm:$0xff]  }
 0x325   :  { %v3277_v2 = vpop.permute.xlu1 %3276  ;;  %3976 = vmatprep.subr.bf16.mxu0 %v5030_v31  ;;  %v5075_v31 = vld [vmem:[%s7110_s7 + $0x8] sm:$0xff]  }
 0x326   :  { %3281 = vst.msk [vmem:[#allocation3 + $0x1c] sm:$0xf] %vm3101_vm8, %v3277_v2  ;;  %v5076_v2 = vld [vmem:[%s7110_s7 + $0x40] sm:$0xff]  }
 0x328   :  { %3977 = vmatpush2.bf16.msra.mxu0 %v5028_v21  ;;  %v5077_v21 = vld [vmem:[%s7110_s7] sm:$0xff]  }
 0x329   :  { %v3287_v59 = vpop.permute.xlu0 %3286  ;;  %3978 = vmatprep.subr.bf16.mxu0 %v5033_v45 }
 0x32a   :  { %3292 = vst.msk [vmem:[#allocation3 + $0x8] sm:$0xf] %vm3114_vm9, %v3287_v59 }
 0x32c   :  { %3979 = vmatpush2.bf16.msra.mxu0 %v5031_v63 }
 0x32d   :  { %v3289_v11 = vpop.permute.xlu1 %3288  ;;  %3980 = vmatprep.subr.bf16.mxu0 %v5036_v4 }
 0x32e   :  { %3293 = vst.msk [vmem:[#allocation3 + $0x1c] sm:$0xf] %vm3114_vm9, %v3289_v11 }
 0x330   :  { %3981 = vmatpush2.bf16.msra.mxu0 %v5034_v51 }
 0x331   :  { %v3299_v12 = vpop.permute.xlu0 %3298  ;;  %3982 = vmatprep.subr.bf16.mxu0 %v5039_v20 }
 0x332   :  { %3304 = vst.msk [vmem:[#allocation3 + $0x8] sm:$0xf] %vm3127_vm10, %v3299_v12  ;;  %v3512_v12 = vld [vmem:[%s7111_s6] sm:$0x3] }
 0x334   :  { %3983 = vmatpush2.bf16.msra.mxu0 %v5037_v61  ;;  %v3521_v61 = vrot.slane %v3512_v12, %v226_v30 }
 0x335   :  { %v3301_v33 = vpop.permute.xlu1 %3300  ;;  %3984 = vmatprep.subr.bf16.mxu0 %v5042_v44  ;;  %v3517_v44 = vrot.slane %v3512_v12, %v222_v26 }
 0x336   :  { %3305 = vst.msk [vmem:[#allocation3 + $0x1c] sm:$0xf] %vm3127_vm10, %v3301_v33 }
 0x338   :  { %3985 = vmatpush2.bf16.msra.mxu0 %v5040_v9 }
 0x339   :  { %3986 = vmatprep.subr.bf16.mxu0 %v5045_v13 }
 0x33c   :  { %3987 = vmatpush2.bf16.msra.mxu0 %v5043_v14 }
 0x33d   :  { %4007 = vmatprep.subr.bf16.mxu0 %v5051_v3  ;;  %v5046_v60 = vld [vmem:[#allocation3 + $0x8] ss:$20 sps:$4 sm:$0xff]  }
 0x341   :  { %v3315_v35 = vpop.permute.xlu0 %3314 }
 0x342   :  { %3320 = vst.msk [vmem:[#allocation3 + $0xc] sm:$0xf] %vm3049_vm4, %v3315_v35 }
 0x345   :  { %v3317_v10 = vpop.permute.xlu1 %3316 }
 0x346   :  { %3321 = vst.msk [vmem:[#allocation3 + $0x20] sm:$0xf] %vm3049_vm4, %v3317_v10 }
 0x349   :  { %v3327_v36 = vpop.permute.xlu0 %3326 }
 0x34a   :  { %3332 = vst.msk [vmem:[#allocation3 + $0xc] sm:$0xf] %vm3062_vm5, %v3327_v36 }
 0x34d   :  { %v3329_v52 = vpop.permute.xlu1 %3328 }
 0x34e   :  { %3333 = vst.msk [vmem:[#allocation3 + $0x20] sm:$0xf] %vm3062_vm5, %v3329_v52 }
 0x351   :  { %v3339_v32 = vpop.permute.xlu0 %3338 }
 0x352   :  { %3344 = vst.msk [vmem:[#allocation3 + $0xc] sm:$0xf] %vm3075_vm6, %v3339_v32 }
 0x355   :  { %v3341_v17 = vpop.permute.xlu1 %3340 }
 0x356   :  { %3345 = vst.msk [vmem:[#allocation3 + $0x20] sm:$0xf] %vm3075_vm6, %v3341_v17 }
 0x359   :  { %v3351_v8 = vpop.permute.xlu0 %3350 }
 0x35a   :  { %3356 = vst.msk [vmem:[#allocation3 + $0xc] sm:$0xf] %vm3088_vm7, %v3351_v8 }
 0x35d   :  { %v3353_v29 = vpop.permute.xlu1 %3352 }
 0x35e   :  { %3357 = vst.msk [vmem:[#allocation3 + $0x20] sm:$0xf] %vm3088_vm7, %v3353_v29 }
 0x361   :  { %v3363_v39 = vpop.permute.xlu0 %3362 }
 0x362   :  { %3368 = vst.msk [vmem:[#allocation3 + $0xc] sm:$0xf] %vm3101_vm8, %v3363_v39 }
 0x365   :  { %v3365_v37 = vpop.permute.xlu1 %3364 }
 0x366   :  { %3369 = vst.msk [vmem:[#allocation3 + $0x20] sm:$0xf] %vm3101_vm8, %v3365_v37 }
 0x369   :  { %v3375_v19 = vpop.permute.xlu0 %3374 }
 0x36a   :  { %3380 = vst.msk [vmem:[#allocation3 + $0xc] sm:$0xf] %vm3114_vm9, %v3375_v19 }
 0x36d   :  { %v3377_v43 = vpop.permute.xlu1 %3376 }
 0x36e   :  { %3381 = vst.msk [vmem:[#allocation3 + $0x20] sm:$0xf] %vm3114_vm9, %v3377_v43 }
 0x371   :  { %v3387_v49 = vpop.permute.xlu0 %3386 }
 0x372   :  { %3392 = vst.msk [vmem:[#allocation3 + $0xc] sm:$0xf] %vm3127_vm10, %v3387_v49 }
 0x375   :  { %v3389_v34 = vpop.permute.xlu1 %3388 }
 0x376   :  { %3393 = vst.msk [vmem:[#allocation3 + $0x20] sm:$0xf] %vm3127_vm10, %v3389_v34 }
 0x37d   :  { %v5048_v56 = vld [vmem:[#allocation3 + $0xc] ss:$20 sps:$4 sm:$0xff]  }
 0x37e   :  { %3988 = vmatprep.mubr.bf16.mxu0 %v5048_v56  ;;  %v4613_v56 = vld [vmem:[%s7112_s8] ss:$0 sm:$0xff] }
 0x37f   :  { %3989 = vmatmul.mubr.bf16.vlgmr.msra.gmra.mxu0 %v5046_v60 }
 0x380   :  { %4008 = vmatpush1.bf16.msra.mxu0 %v5049_v5  ;;  %4031 = vmatprep.mubr.bf16.mxu0 %v5079_v1  ;;  %v5060_v1 = vld [vmem:[%s7108_s5 + $0x204] ss:$8 sps:$4 sm:$0xff]  }
 0x381   :  { %v3403_v41 = vpop.permute.xlu0 %3402  ;;  %4009 = vmatprep.subr.bf16.mxu0 %v5054_v58 }
 0x382   :  { %3408 = vst.msk [vmem:[#allocation3 + $0x10] sm:$0xf] %vm3049_vm4, %v3403_v41 }
 0x384   :  { %4010 = vmatpush1.bf16.msra.mxu0 %v5052_v48 }
 0x385   :  { %v3405_v62 = vpop.permute.xlu1 %3404  ;;  %4011 = vmatprep.subr.bf16.mxu0 %v5057_v46 }
 0x386   :  { %3409 = vst.msk [vmem:[#allocation3 + $0x24] sm:$0xf] %vm3049_vm4, %v3405_v62 }
 0x388   :  { %4012 = vmatpush1.bf16.msra.mxu0 %v5055_v27 }
 0x389   :  { %v3415_v47 = vpop.permute.xlu0 %3414  ;;  %4013 = vmatprep.subr.bf16.mxu0 %v5060_v1 }
 0x38a   :  { %3420 = vst.msk [vmem:[#allocation3 + $0x10] sm:$0xf] %vm3062_vm5, %v3415_v47 }
 0x38c   :  { %4014 = vmatpush1.bf16.msra.mxu0 %v5058_v15 }
 0x38d   :  { %v3417_v50 = vpop.permute.xlu1 %3416  ;;  %4702 = vmatprep.subr.bf16.mxu0 %v5062_v54 }
 0x38e   :  { %3421 = vst.msk [vmem:[#allocation3 + $0x24] sm:$0xf] %vm3062_vm5, %v3417_v50 }
 0x391   :  { %v3427_v18 = vpop.permute.xlu0 %3426 }
 0x392   :  { %3432 = vst.msk [vmem:[#allocation3 + $0x10] sm:$0xf] %vm3075_vm6, %v3427_v18 }
 0x395   :  { %v3429_v16 = vpop.permute.xlu1 %3428 }
 0x396   :  { %3433 = vst.msk [vmem:[#allocation3 + $0x24] sm:$0xf] %vm3075_vm6, %v3429_v16 }
 0x39d   :  { %v5061_v28 = vld [vmem:[#allocation3 + $0x10] ss:$20 sps:$4 sm:$0xff]  }
 0x39e   :  { %4612 = vmatmul.mubr.msk.bf16.vlgmr.msra.gmra.mxu0 %vm3909_vm11, %v5061_v28 }
 0x39f   :  { %4703 = vmatpush3.bf16.msra.mxu0 %v5063_v38 }
 0x3a0   :  { %4704 = vmatprep.subr.bf16.mxu0 %v5064_v0 }
 0x3a3   :  { %4705 = vmatpush3.bf16.msra.mxu0 %v5065_v57 }
 0x3a4   :  { %4706 = vmatprep.subr.bf16.mxu0 %v5066_v25 }
 0x3a7   :  { %4707 = vmatpush3.bf16.msra.mxu0 %v5067_v7 }
 0x3a8   :  { %4708 = vmatprep.subr.bf16.mxu0 %v5068_v53 }
 0x3ab   :  { %4709 = vmatpush3.bf16.msra.mxu0 %v5069_v55 }
 0x3ac   :  { %4710 = vmatprep.subr.bf16.mxu0 %v5070_v42 }
 0x3af   :  { %4711 = vmatpush3.bf16.msra.mxu0 %v5071_v6 }
 0x3b0   :  { %4712 = vmatprep.subr.bf16.mxu0 %v5072_v40 }
 0x3b3   :  { %4713 = vmatpush3.bf16.msra.mxu0 %v5073_v24 }
 0x3b4   :  { %4714 = vmatprep.subr.bf16.mxu0 %v5074_v22 }
 0x3b7   :  { %4715 = vmatpush3.bf16.msra.mxu0 %v5075_v31 }
 0x3b8   :  { %4716 = vmatprep.subr.bf16.mxu0 %v5076_v2 }
 0x3bb   :  { %4717 = vmatpush3.bf16.msra.mxu0 %v5077_v21 }
 0x3bf   :  { %v3947_v45 = vpop.f32.mrf.mxu0 }
 0x3c0   :  { %v3948_v3 = vadd.f32 %v3947_v45, %v3517_v44 }
 0x3c1   :  { %v3949_v59 = vpop.f32.mrf.mxu0 }
 0x3c2   :  { %v3950_v13 = vadd.f32 %v3949_v59, %v3521_v61 }
 0x3c3   :  { %v3951_v63 = vpop.f32.mrf.mxu0 }
 0x3c4   :  { %v3952_v14 = vadd.f32 %v3951_v63, %v3517_v44 }
 0x3c5   :  { %v3953_v4 = vpop.f32.mrf.mxu0 }
 0x3c6   :  { %v3954_v10 = vadd.f32 %v3953_v4, %v3521_v61 }
 0x43f   :  { %v3990_v11 = vpop.f32.mrf.mxu0 }
 0x440   :  { %v3991_v32 = vadd.f32 %v3990_v11, %v3948_v3 }
 0x441   :  { %v3992_v51 = vpop.f32.mrf.mxu0 }
 0x442   :  { %v3993_v36 = vadd.f32 %v3992_v51, %v3950_v13 }
 0x443   :  { %v3994_v20 = vpop.f32.mrf.mxu0 }
 0x444   :  { %v3995_v52 = vadd.f32 %v3994_v20, %v3952_v14 }
 0x445   :  { %v3996_v33 = vpop.f32.mrf.mxu0 }
 0x446   :  { %v3997_v8 = vadd.f32 %v3996_v33, %v3954_v10 }
 0x45e   :  { %v4033_v9 = vpop.f32.mrf.mxu0 }
 0x45f   :  { %v4034_v37 = vadd.f32 %v4033_v9, %v3991_v32 }
 0x460   :  { %v4035_v35 = vpop.f32.mrf.mxu0 }
 0x461   :  { %v4036_v29 = vadd.f32 %v4035_v35, %v3993_v36  ;;  %v4042_v49 = vmax.f32 %v4034_v37, 0.0 }
 0x462   :  { %v4037_v17 = vpop.f32.mrf.mxu0 }
 0x463   :  { %v4038_v39 = vadd.f32 %v4037_v17, %v3995_v52  ;;  %v4043_v23 = vmax.f32 %v4036_v29, 0.0 }
 0x464   :  { %v4039_v19 = vpop.f32.mrf.mxu0 }
 0x465   :  { %v4040_v30 = vadd.f32 %v4039_v19, %v3997_v8  ;;  %v4044_v43 = vmax.f32 %v4038_v39, 0.0 }
 0x467   :  { %v4045_v26 = vmax.f32 %v4040_v30, 0.0  ;;  %v4046_v5 = vpack.c.bf16 %v4044_v43, %v4042_v49 }
 0x469   :  { %v4047_v34 = vpack.c.bf16 %v4045_v26, %v4043_v23 }
 0x46b   :  { %4215 = vmatprep.mubr.bf16.mxu0 %v4047_v34 }
 0x46c   :  { %4216 = vmatmul.mubr.bf16.vlgmr.msra.gmra.mxu0 %v4046_v5 }
 0x52c   :  { %v4718_v60 = vpop.f32.mrf.mxu0 }
 0x52e   :  { %v4719_v58 = vpop.f32.mrf.mxu0 }
 0x52f   :  { %v4720_v41 = vadd.f32 %v4719_v58, %v4718_v60 }
 0x530   :  { %v4721_v48 = vpop.f32.mrf.mxu0 }
 0x531   :  { %v4218_v46 = vadd.f32 %v4720_v41, %v4613_v56 }
 0x532   :  { %v4722_v62 = vpop.f32.mrf.mxu0 }
 0x533   :  { %4224 = vst [vmem:[%s7113_s9] sm:$0xff] %v4218_v46  ;;  %v4723_v27 = vadd.f32 %v4722_v62, %v4721_v48 }
 0x535   :  { %v4221_v1 = vadd.f32 %v4723_v27, %v4613_v56 }
 0x537   :  { %4225 = vst [vmem:[%s7113_s9 + $0x8] sm:$0xff] %v4221_v1 }

</bundles_post_ra>
